<compile_context>
chip_gen: v7x
topology: tpu7x:2x2x1
jax: 0.10.0
libtpu: 0.0.40
codegen_flags: <defaults>
</compile_context>

<pallas_src>
import math

import jax
import jax.numpy as jnp
from jax.experimental import pallas as pl
from jax.experimental.pallas import tpu as pltpu


def _pick_tile(n, candidates):
    """Largest candidate tile that divides n, else the full extent."""
    for c in candidates:
        if n % c == 0:
            return c
    return n


def _gru_tiles(S, B, E, H, budget_bytes=24 << 20):
    """VMEM-budget-aware (ts, tb) choice for the fused recurrence kernel."""
    tb = _pick_tile(B, (64, 32, 16, 8))
    f32 = 4
    for ts in (32, 16, 8, 4, 2, 1):
        if S % ts:
            continue
        use = (
            2 * ts * tb * E          # double-buffered x block
            + 2 * ts * tb * H        # double-buffered out block
            + ts * tb * 3 * H        # gi VMEM scratch
            + 2 * (E * 3 * H + H * 3 * H + 4 * H)   # (double-buffered) weights/biases
            + tb * H                 # hidden-state scratch
        ) * f32
        if use <= budget_bytes:
            return ts, tb
    return 1, tb


# ---------------------------------------------------------------------------
# Kernel 1: fused GRU layer.
#   - per grid step: gi = x_block @ w_ih_cat + gi_b  (one N=3H matmul,
#     off the serial path, result held in VMEM scratch)
#   - then ts unrolled recurrence steps, hidden state carried in VMEM scratch
#     across the (sequential) time grid axis; batch axis is 'parallel'.
# ---------------------------------------------------------------------------
def _gru_layer_kernel(x_ref, w_ih_ref, w_hh_ref, gi_b_ref, b_hh_n_ref,
                      out_ref, h_ref, gi_ref):
    # Reset hidden state whenever the time sweep (grid axis 1) restarts.
    @pl.when(pl.program_id(1) == 0)
    def _():
        h_ref[...] = jnp.zeros_like(h_ref)

    ts, tb, e_in = x_ref.shape
    H = h_ref.shape[-1]

    # Input-side gate matmul for the whole (ts, tb) block: single (ts*tb, 3H)
    # lane-dense result, stored in VMEM scratch; folded biases added here.
    x_blk = x_ref[...].reshape(ts * tb, e_in)
    gi_ref[...] = (
        jnp.dot(x_blk, w_ih_ref[...], preferred_element_type=jnp.float32)
        + gi_b_ref[...]
    ).reshape(ts, tb, 3 * H)

    w_hh = w_hh_ref[...]                                  # (H, 3H), hoisted
    b_hh_n = jnp.broadcast_to(b_hh_n_ref[...], (tb, H))   # hoisted broadcast

    def step(t, h):
        # One hidden-side matmul for all three gates (N = 3H).
        gh = jnp.dot(h, w_hh, preferred_element_type=jnp.float32)   # (tb, 3H)
        gi_t = gi_ref[t]                                             # (tb, 3H)
        # 128-lane-aligned slices -> free vreg selection, no XLU.
        r = jax.nn.sigmoid(gi_t[:, 0 * H:1 * H] + gh[:, 0 * H:1 * H])
        z = jax.nn.sigmoid(gi_t[:, 1 * H:2 * H] + gh[:, 1 * H:2 * H])
        n = jnp.tanh(gi_t[:, 2 * H:3 * H] + r * (gh[:, 2 * H:3 * H] + b_hh_n))
        h_new = (1.0 - z) * n + z * h
        out_ref[t] = h_new.astype(out_ref.dtype)
        return h_new

    h_ref[...] = jax.lax.fori_loop(0, ts, step, h_ref[...], unroll=True)


def gru_layer(x, w_ih_cat, w_hh_cat, gi_b, b_hh_n):
    """x: (S, B, E) time-major; w_ih_cat: (E, 3H); w_hh_cat: (H, 3H);
    gi_b: (1, 3H); b_hh_n: (1, H)  ->  (S, B, H) time-major."""
    S, B, E = x.shape
    H = w_hh_cat.shape[0]
    ts, tb = _gru_tiles(S, B, E, H)
    return pl.pallas_call(
        _gru_layer_kernel,
        out_shape=jax.ShapeDtypeStruct((S, B, H), jnp.float32),
        grid_spec=pltpu.PrefetchScalarGridSpec(
            num_scalar_prefetch=0,
            grid=(B // tb, S // ts),
            in_specs=[
                pl.BlockSpec((ts, tb, E), lambda b, s: (s, b, 0)),
                pl.BlockSpec((E, 3 * H), lambda b, s: (0, 0)),
                pl.BlockSpec((H, 3 * H), lambda b, s: (0, 0)),
                pl.BlockSpec((1, 3 * H), lambda b, s: (0, 0)),
                pl.BlockSpec((1, H), lambda b, s: (0, 0)),
            ],
            out_specs=pl.BlockSpec((ts, tb, H), lambda b, s: (s, b, 0)),
            scratch_shapes=[
                pltpu.VMEM((tb, H), jnp.float32),          # hidden state
                pltpu.VMEM((ts, tb, 3 * H), jnp.float32),  # gi block
            ],
        ),
        compiler_params=pltpu.CompilerParams(
            dimension_semantics=("parallel", "arbitrary")),
    )(x, w_ih_cat, w_hh_cat, gi_b, b_hh_n)


# ---------------------------------------------------------------------------
# Kernel 2: output projection (nn.Linear), tiled over rows x vocab.
# TODO(synk): K-tile with an f32 accumulator + pl.Buffered(3) weight spec for
#             large hidden_dim / vocab; unnecessary at these block sizes.
# ---------------------------------------------------------------------------
def _ffn_kernel(x_ref, w_t_ref, b_ref, o_ref):
    o_ref[...] = (jnp.dot(x_ref[...], w_t_ref[...],
                          preferred_element_type=jnp.float32)
                  + b_ref[...]).astype(o_ref.dtype)


def ffn(x2d, w_t, b_row):
    """x2d: (N, H); w_t: (H, V); b_row: (1, V) -> (N, V)."""
    N, H = x2d.shape
    V = w_t.shape[1]
    tm = _pick_tile(N, (512, 256, 128, 64, 32, 16, 8))
    tn = _pick_tile(V, (2048, 1024, 512, 256, 128))
    return pl.pallas_call(
        _ffn_kernel,
        out_shape=jax.ShapeDtypeStruct((N, V), jnp.float32),
        grid_spec=pltpu.PrefetchScalarGridSpec(
            num_scalar_prefetch=0,
            grid=(N // tm, V // tn),
            in_specs=[
                pl.BlockSpec((tm, H), lambda i, j: (i, 0)),
                pl.BlockSpec((H, tn), lambda i, j: (0, j)),
                pl.BlockSpec((1, tn), lambda i, j: (0, j)),
            ],
            out_specs=pl.BlockSpec((tm, tn), lambda i, j: (i, j)),
        ),
        compiler_params=pltpu.CompilerParams(
            dimension_semantics=("parallel", "parallel")),
    )(x2d, w_t, b_row)


# ---------------------------------------------------------------------------
# Parameter init (matches module's init_weights: xavier_normal_ weights,
# zero biases), stored directly in kernel-ready concatenated/transposed layout.
# ---------------------------------------------------------------------------
def _xavier_normal(key, fan_out, fan_in, shape):
    std = math.sqrt(2.0 / (fan_in + fan_out))
    return std * jax.random.normal(key, shape, dtype=jnp.float32)


def init_params(key, vocab_size, embedding_dim, hidden_dim, num_layers):
    params = {}
    keys = jax.random.split(key, 2 + 2 * num_layers)
    params["emb"] = _xavier_normal(keys[0], vocab_size, embedding_dim,
                                   (vocab_size, embedding_dim))
    H = hidden_dim
    for l in range(num_layers):
        in_dim = embedding_dim if l == 0 else hidden_dim
        # Same iid xavier_normal stats as PyTorch's (3H, in)/(3H, H) matrices,
        # sampled directly in transposed, gate-concatenated [r|z|n] layout.
        params[f"w_ih_cat_{l}"] = _xavier_normal(keys[1 + 2 * l], 3 * H, in_dim,
                                                 (in_dim, 3 * H))
        params[f"w_hh_cat_{l}"] = _xavier_normal(keys[2 + 2 * l], 3 * H, H,
                                                 (H, 3 * H))
        # Folded biases: [b_ih_r+b_hh_r | b_ih_z+b_hh_z | b_ih_n]; b_hh_n kept
        # separate (it sits under the r* gate).  Zero-init matches the module.
        params[f"gi_b_{l}"] = jnp.zeros((1, 3 * H), jnp.float32)
        params[f"b_hh_n_{l}"] = jnp.zeros((1, H), jnp.float32)
    params["ffn_w_t"] = _xavier_normal(keys[-1], vocab_size, hidden_dim,
                                       (hidden_dim, vocab_size))
    params["ffn_b"] = jnp.zeros((1, vocab_size), jnp.float32)
    return params


# ---------------------------------------------------------------------------
# Forward (wrapper glue + Pallas kernels on the hot path)
# ---------------------------------------------------------------------------
def grulm_forward(tokens, params, num_layers):
    # tokens: (B, S) int32
    B, S = tokens.shape
    # Gather embeddings directly in time-major order (transpose the tiny int
    # token matrix, not the f32 activation).
    x = jnp.take(params["emb"], tokens.T, axis=0)         # (S, B, E)
    for l in range(num_layers):
        x = gru_layer(x, params[f"w_ih_cat_{l}"], params[f"w_hh_cat_{l}"],
                      params[f"gi_b_{l}"], params[f"b_hh_n_{l}"])   # (S, B, H)
    H = x.shape[-1]
    out = jnp.transpose(x, (1, 0, 2)).reshape(B * S, H)    # (B*S, H)
    logits = ffn(out, params["ffn_w_t"], params["ffn_b"])  # (B*S, V)
    return logits.reshape(B, S, -1)


# ---------------------------------------------------------------------------
# Pure-JAX reference (same parametrization; mathematically identical to the
# PyTorch GRU gate equations with gate order r, z, n).
# ---------------------------------------------------------------------------
def grulm_reference(tokens, params, num_layers):
    B, S = tokens.shape
    x = jnp.take(params["emb"], tokens.T, axis=0)          # (S, B, E)
    for l in range(num_layers):
        w_ih = params[f"w_ih_cat_{l}"]
        w_hh = params[f"w_hh_cat_{l}"]
        gi_b = params[f"gi_b_{l}"]
        b_hh_n = params[f"b_hh_n_{l}"]
        H = w_hh.shape[0]

        def step(h, x_t, w_ih=w_ih, w_hh=w_hh, gi_b=gi_b, b_hh_n=b_hh_n, H=H):
            gi = x_t @ w_ih + gi_b                          # (B, 3H)
            gh = h @ w_hh                                   # (B, 3H)
            r = jax.nn.sigmoid(gi[:, :H] + gh[:, :H])
            z = jax.nn.sigmoid(gi[:, H:2 * H] + gh[:, H:2 * H])
            n = jnp.tanh(gi[:, 2 * H:] + r * (gh[:, 2 * H:] + b_hh_n))
            h_new = (1.0 - z) * n + z * h
            return h_new, h_new

        h0 = jnp.zeros((B, H), jnp.float32)
        _, x = jax.lax.scan(step, h0, x)
    out = jnp.transpose(x, (1, 0, 2))
    return out @ params["ffn_w_t"] + params["ffn_b"]


if __name__ == "__main__":
    # Small but tile-friendly shapes: B multiple of 8 (sublanes),
    # H / V multiples of 128 (lane-dense stores / lane-aligned gate slices).
    vocab_size = 256
    embedding_dim = 64
    hidden_dim = 128
    num_layers = 2
    B, S = 8, 16

    key = jax.random.PRNGKey(0)
    k_params, k_tokens = jax.random.split(key)
    params = init_params(k_params, vocab_size, embedding_dim, hidden_dim,
                         num_layers)
    tokens = jax.random.randint(k_tokens, (B, S), 0, vocab_size,
                                dtype=jnp.int32)

    logits = jax.block_until_ready(grulm_forward(tokens, params, num_layers))
    ref = grulm_reference(tokens, params, num_layers)

    assert logits.shape == (B, S, vocab_size)
    assert jnp.allclose(logits, ref, atol=2e-3, rtol=2e-3), "mismatch vs reference"

    print("KERNEL_OK")
</pallas_src>

<mosaic_0001>
module attributes {stable_mosaic.version = 11 : i64} {
  func.func @_gru_layer_kernel(%arg0: i32, %arg1: i32, %arg2: memref<16x8x64xf32, #tpu.memory_space<vmem>>, %arg3: memref<64x384xf32, #tpu.memory_space<vmem>>, %arg4: memref<128x384xf32, #tpu.memory_space<vmem>>, %arg5: memref<1x384xf32, #tpu.memory_space<vmem>>, %arg6: memref<1x128xf32, #tpu.memory_space<vmem>>, %arg7: memref<16x8x128xf32, #tpu.memory_space<vmem>>, %arg8: memref<8x128xf32, #tpu.memory_space<vmem>>, %arg9: memref<16x8x384xf32, #tpu.memory_space<vmem>>) attributes {dimension_semantics = [#tpu.dimension_semantics<parallel>, #tpu.dimension_semantics<arbitrary>], iteration_bounds = array<i64: 1, 1>, scalar_prefetch = 0 : i64, scratch_operands = 2 : i64, tpu.core_type = #tpu.core_type<tc>, window_params = [{transform_indices = @transform_0, window_bounds = array<i64: 16, 8, 64>}, {pipeline_mode = #tpu.pipeline_mode<synchronous>, transform_indices = @transform_1, window_bounds = array<i64: 64, 384>}, {pipeline_mode = #tpu.pipeline_mode<synchronous>, transform_indices = @transform_2, window_bounds = array<i64: 128, 384>}, {pipeline_mode = #tpu.pipeline_mode<synchronous>, transform_indices = @transform_3, window_bounds = array<i64: 1, 384>}, {pipeline_mode = #tpu.pipeline_mode<synchronous>, transform_indices = @transform_4, window_bounds = array<i64: 1, 128>}, {transform_indices = @transform_5, window_bounds = array<i64: 16, 8, 128>}]} {
    %c0_i32 = arith.constant 0 : i32
    %0 = arith.cmpi eq, %arg1, %c0_i32 : i32
    %1 = arith.extui %0 : i1 to i32
    %c0_i32_0 = arith.constant 0 : i32
    %2 = arith.cmpi ne, %1, %c0_i32_0 : i32
    scf.if %2 {
      %cst_147 = arith.constant 0.000000e+00 : f32
      %578 = vector.broadcast %cst_147 : f32 to vector<8x128xf32>
      %c0_148 = arith.constant 0 : index
      %c0_149 = arith.constant 0 : index
      %579 = vector.load %arg8[%c0_148, %c0_149] : memref<8x128xf32, #tpu.memory_space<vmem>>, vector<8x128xf32>
      tpu.vector_store %arg8[%c0_148, %c0_149], %578 {strides = array<i32>} : memref<8x128xf32, #tpu.memory_space<vmem>>, vector<8x128xf32>,
    } else {
    }
    %c0 = arith.constant 0 : index
    %c0_1 = arith.constant 0 : index
    %c0_2 = arith.constant 0 : index
    %3 = vector.load %arg2[%c0, %c0_1, %c0_2] : memref<16x8x64xf32, #tpu.memory_space<vmem>>, vector<16x8x64xf32>
    %4 = vector.shape_cast %3 : vector<16x8x64xf32> to vector<128x64xf32>
    %c0_3 = arith.constant 0 : index
    %c0_4 = arith.constant 0 : index
    %5 = vector.load %arg3[%c0_3, %c0_4] : memref<64x384xf32, #tpu.memory_space<vmem>>, vector<64x384xf32>
    %cst = arith.constant dense<0.000000e+00> : vector<128x384xf32>
    %6 = tpu.matmul %4, %5, %cst {dimension_numbers = #tpu.dot_dimension_numbers<[1], [0], [0], [1], [0, 0, 1, 1], [], []>} : vector<128x64xf32>, vector<64x384xf32>, vector<128x384xf32> -> vector<128x384xf32>
    %c0_5 = arith.constant 0 : index
    %c0_6 = arith.constant 0 : index
    %7 = vector.load %arg5[%c0_5, %c0_6] : memref<1x384xf32, #tpu.memory_space<vmem>>, vector<1x384xf32>
    %8 = vector.broadcast %7 : vector<1x384xf32> to vector<128x384xf32>
    %9 = arith.addf %6, %8 : vector<128x384xf32>
    %10 = vector.shape_cast %9 : vector<128x384xf32> to vector<16x8x384xf32>
    %c0_7 = arith.constant 0 : index
    %c0_8 = arith.constant 0 : index
    %c0_9 = arith.constant 0 : index
    %11 = vector.load %arg9[%c0_7, %c0_8, %c0_9] : memref<16x8x384xf32, #tpu.memory_space<vmem>>, vector<16x8x384xf32>
    tpu.vector_store %arg9[%c0_7, %c0_8, %c0_9], %10 {strides = array<i32>} : memref<16x8x384xf32, #tpu.memory_space<vmem>>, vector<16x8x384xf32>,
    %c0_10 = arith.constant 0 : index
    %c0_11 = arith.constant 0 : index
    %12 = vector.load %arg4[%c0_10, %c0_11] : memref<128x384xf32, #tpu.memory_space<vmem>>, vector<128x384xf32>
    %c0_12 = arith.constant 0 : index
    %c0_13 = arith.constant 0 : index
    %13 = vector.load %arg6[%c0_12, %c0_13] : memref<1x128xf32, #tpu.memory_space<vmem>>, vector<1x128xf32>
    %14 = vector.shape_cast %13 : vector<1x128xf32> to vector<1x128xf32>
    %15 = vector.broadcast %14 : vector<1x128xf32> to vector<8x128xf32>
    %c0_14 = arith.constant 0 : index
    %c0_15 = arith.constant 0 : index
    %16 = vector.load %arg8[%c0_14, %c0_15] : memref<8x128xf32, #tpu.memory_space<vmem>>, vector<8x128xf32>
    %c0_i32_16 = arith.constant 0 : i32
    %cst_17 = arith.constant dense<0.000000e+00> : vector<8x384xf32>
    %17 = tpu.matmul %16, %12, %cst_17 {dimension_numbers = #tpu.dot_dimension_numbers<[1], [0], [0], [1], [0, 0, 1, 1], [], []>} : vector<8x128xf32>, vector<128x384xf32>, vector<8x384xf32> -> vector<8x384xf32>
    %18 = arith.index_cast %c0_i32_16 : i32 to index
    %c0_18 = arith.constant 0 : index
    %c0_19 = arith.constant 0 : index
    %19 = vector.load %arg9[%18, %c0_18, %c0_19] : memref<16x8x384xf32, #tpu.memory_space<vmem>>, vector<1x8x384xf32>
    %20 = vector.shape_cast %19 : vector<1x8x384xf32> to vector<8x384xf32>
    %21 = vector.extract_strided_slice %20 {offsets = [0, 0], sizes = [8, 128], strides = [1, 1]} : vector<8x384xf32> to vector<8x128xf32>
    %22 = vector.extract_strided_slice %17 {offsets = [0, 0], sizes = [8, 128], strides = [1, 1]} : vector<8x384xf32> to vector<8x128xf32>
    %23 = arith.addf %21, %22 : vector<8x128xf32>
    %24 = arith.negf %23 : vector<8x128xf32>
    %25 = math.exp %24 : vector<8x128xf32>
    %cst_20 = arith.constant 1.000000e+00 : f32
    %26 = vector.broadcast %cst_20 : f32 to vector<8x128xf32>
    %27 = arith.addf %26, %25 : vector<8x128xf32>
    %28 = arith.divf %26, %27 : vector<8x128xf32>
    %29 = vector.extract_strided_slice %20 {offsets = [0, 128], sizes = [8, 128], strides = [1, 1]} : vector<8x384xf32> to vector<8x128xf32>
    %30 = vector.extract_strided_slice %17 {offsets = [0, 128], sizes = [8, 128], strides = [1, 1]} : vector<8x384xf32> to vector<8x128xf32>
    %31 = arith.addf %29, %30 : vector<8x128xf32>
    %32 = arith.negf %31 : vector<8x128xf32>
    %33 = math.exp %32 : vector<8x128xf32>
    %cst_21 = arith.constant 1.000000e+00 : f32
    %34 = vector.broadcast %cst_21 : f32 to vector<8x128xf32>
    %35 = arith.addf %34, %33 : vector<8x128xf32>
    %36 = arith.divf %34, %35 : vector<8x128xf32>
    %37 = vector.extract_strided_slice %20 {offsets = [0, 256], sizes = [8, 128], strides = [1, 1]} : vector<8x384xf32> to vector<8x128xf32>
    %38 = vector.extract_strided_slice %17 {offsets = [0, 256], sizes = [8, 128], strides = [1, 1]} : vector<8x384xf32> to vector<8x128xf32>
    %39 = arith.addf %38, %15 : vector<8x128xf32>
    %40 = arith.mulf %28, %39 : vector<8x128xf32>
    %41 = arith.addf %37, %40 : vector<8x128xf32>
    %42 = math.tanh %41 : vector<8x128xf32>
    %cst_22 = arith.constant 1.000000e+00 : f32
    %43 = vector.broadcast %cst_22 : f32 to vector<8x128xf32>
    %44 = arith.subf %43, %36 : vector<8x128xf32>
    %45 = arith.mulf %44, %42 : vector<8x128xf32>
    %46 = arith.mulf %36, %16 : vector<8x128xf32>
    %47 = arith.addf %45, %46 : vector<8x128xf32>
    %48 = arith.index_cast %c0_i32_16 : i32 to index
    %c0_23 = arith.constant 0 : index
    %c0_24 = arith.constant 0 : index
    %49 = vector.load %arg7[%48, %c0_23, %c0_24] : memref<16x8x128xf32, #tpu.memory_space<vmem>>, vector<1x8x128xf32>
    %50 = vector.shape_cast %49 : vector<1x8x128xf32> to vector<8x128xf32>
    %51 = vector.shape_cast %47 : vector<8x128xf32> to vector<1x8x128xf32>
    tpu.vector_store %arg7[%48, %c0_23, %c0_24], %51 {strides = array<i32>} : memref<16x8x128xf32, #tpu.memory_space<vmem>>, vector<1x8x128xf32>,
    %c1_i32 = arith.constant 1 : i32
    %cst_25 = arith.constant dense<0.000000e+00> : vector<8x384xf32>
    %52 = tpu.matmul %47, %12, %cst_25 {dimension_numbers = #tpu.dot_dimension_numbers<[1], [0], [0], [1], [0, 0, 1, 1], [], []>} : vector<8x128xf32>, vector<128x384xf32>, vector<8x384xf32> -> vector<8x384xf32>
    %53 = arith.index_cast %c1_i32 : i32 to index
    %c0_26 = arith.constant 0 : index
    %c0_27 = arith.constant 0 : index
    %54 = vector.load %arg9[%53, %c0_26, %c0_27] : memref<16x8x384xf32, #tpu.memory_space<vmem>>, vector<1x8x384xf32>
    %55 = vector.shape_cast %54 : vector<1x8x384xf32> to vector<8x384xf32>
    %56 = vector.extract_strided_slice %55 {offsets = [0, 0], sizes = [8, 128], strides = [1, 1]} : vector<8x384xf32> to vector<8x128xf32>
    %57 = vector.extract_strided_slice %52 {offsets = [0, 0], sizes = [8, 128], strides = [1, 1]} : vector<8x384xf32> to vector<8x128xf32>
    %58 = arith.addf %56, %57 : vector<8x128xf32>
    %59 = arith.negf %58 : vector<8x128xf32>
    %60 = math.exp %59 : vector<8x128xf32>
    %cst_28 = arith.constant 1.000000e+00 : f32
    %61 = vector.broadcast %cst_28 : f32 to vector<8x128xf32>
    %62 = arith.addf %61, %60 : vector<8x128xf32>
    %63 = arith.divf %61, %62 : vector<8x128xf32>
    %64 = vector.extract_strided_slice %55 {offsets = [0, 128], sizes = [8, 128], strides = [1, 1]} : vector<8x384xf32> to vector<8x128xf32>
    %65 = vector.extract_strided_slice %52 {offsets = [0, 128], sizes = [8, 128], strides = [1, 1]} : vector<8x384xf32> to vector<8x128xf32>
    %66 = arith.addf %64, %65 : vector<8x128xf32>
    %67 = arith.negf %66 : vector<8x128xf32>
    %68 = math.exp %67 : vector<8x128xf32>
    %cst_29 = arith.constant 1.000000e+00 : f32
    %69 = vector.broadcast %cst_29 : f32 to vector<8x128xf32>
    %70 = arith.addf %69, %68 : vector<8x128xf32>
    %71 = arith.divf %69, %70 : vector<8x128xf32>
    %72 = vector.extract_strided_slice %55 {offsets = [0, 256], sizes = [8, 128], strides = [1, 1]} : vector<8x384xf32> to vector<8x128xf32>
    %73 = vector.extract_strided_slice %52 {offsets = [0, 256], sizes = [8, 128], strides = [1, 1]} : vector<8x384xf32> to vector<8x128xf32>
    %74 = arith.addf %73, %15 : vector<8x128xf32>
    %75 = arith.mulf %63, %74 : vector<8x128xf32>
    %76 = arith.addf %72, %75 : vector<8x128xf32>
    %77 = math.tanh %76 : vector<8x128xf32>
    %cst_30 = arith.constant 1.000000e+00 : f32
    %78 = vector.broadcast %cst_30 : f32 to vector<8x128xf32>
    %79 = arith.subf %78, %71 : vector<8x128xf32>
    %80 = arith.mulf %79, %77 : vector<8x128xf32>
    %81 = arith.mulf %71, %47 : vector<8x128xf32>
    %82 = arith.addf %80, %81 : vector<8x128xf32>
    %83 = arith.index_cast %c1_i32 : i32 to index
    %c0_31 = arith.constant 0 : index
    %c0_32 = arith.constant 0 : index
    %84 = vector.load %arg7[%83, %c0_31, %c0_32] : memref<16x8x128xf32, #tpu.memory_space<vmem>>, vector<1x8x128xf32>
    %85 = vector.shape_cast %84 : vector<1x8x128xf32> to vector<8x128xf32>
    %86 = vector.shape_cast %82 : vector<8x128xf32> to vector<1x8x128xf32>
    tpu.vector_store %arg7[%83, %c0_31, %c0_32], %86 {strides = array<i32>} : memref<16x8x128xf32, #tpu.memory_space<vmem>>, vector<1x8x128xf32>,
    %c2_i32 = arith.constant 2 : i32
    %cst_33 = arith.constant dense<0.000000e+00> : vector<8x384xf32>
    %87 = tpu.matmul %82, %12, %cst_33 {dimension_numbers = #tpu.dot_dimension_numbers<[1], [0], [0], [1], [0, 0, 1, 1], [], []>} : vector<8x128xf32>, vector<128x384xf32>, vector<8x384xf32> -> vector<8x384xf32>
    %88 = arith.index_cast %c2_i32 : i32 to index
    %c0_34 = arith.constant 0 : index
    %c0_35 = arith.constant 0 : index
    %89 = vector.load %arg9[%88, %c0_34, %c0_35] : memref<16x8x384xf32, #tpu.memory_space<vmem>>, vector<1x8x384xf32>
    %90 = vector.shape_cast %89 : vector<1x8x384xf32> to vector<8x384xf32>
    %91 = vector.extract_strided_slice %90 {offsets = [0, 0], sizes = [8, 128], strides = [1, 1]} : vector<8x384xf32> to vector<8x128xf32>
    %92 = vector.extract_strided_slice %87 {offsets = [0, 0], sizes = [8, 128], strides = [1, 1]} : vector<8x384xf32> to vector<8x128xf32>
    %93 = arith.addf %91, %92 : vector<8x128xf32>
    %94 = arith.negf %93 : vector<8x128xf32>
    %95 = math.exp %94 : vector<8x128xf32>
    %cst_36 = arith.constant 1.000000e+00 : f32
    %96 = vector.broadcast %cst_36 : f32 to vector<8x128xf32>
    %97 = arith.addf %96, %95 : vector<8x128xf32>
    %98 = arith.divf %96, %97 : vector<8x128xf32>
    %99 = vector.extract_strided_slice %90 {offsets = [0, 128], sizes = [8, 128], strides = [1, 1]} : vector<8x384xf32> to vector<8x128xf32>
    %100 = vector.extract_strided_slice %87 {offsets = [0, 128], sizes = [8, 128], strides = [1, 1]} : vector<8x384xf32> to vector<8x128xf32>
    %101 = arith.addf %99, %100 : vector<8x128xf32>
    %102 = arith.negf %101 : vector<8x128xf32>
    %103 = math.exp %102 : vector<8x128xf32>
    %cst_37 = arith.constant 1.000000e+00 : f32
    %104 = vector.broadcast %cst_37 : f32 to vector<8x128xf32>
    %105 = arith.addf %104, %103 : vector<8x128xf32>
    %106 = arith.divf %104, %105 : vector<8x128xf32>
    %107 = vector.extract_strided_slice %90 {offsets = [0, 256], sizes = [8, 128], strides = [1, 1]} : vector<8x384xf32> to vector<8x128xf32>
    %108 = vector.extract_strided_slice %87 {offsets = [0, 256], sizes = [8, 128], strides = [1, 1]} : vector<8x384xf32> to vector<8x128xf32>
    %109 = arith.addf %108, %15 : vector<8x128xf32>
    %110 = arith.mulf %98, %109 : vector<8x128xf32>
    %111 = arith.addf %107, %110 : vector<8x128xf32>
    %112 = math.tanh %111 : vector<8x128xf32>
    %cst_38 = arith.constant 1.000000e+00 : f32
    %113 = vector.broadcast %cst_38 : f32 to vector<8x128xf32>
    %114 = arith.subf %113, %106 : vector<8x128xf32>
    %115 = arith.mulf %114, %112 : vector<8x128xf32>
    %116 = arith.mulf %106, %82 : vector<8x128xf32>
    %117 = arith.addf %115, %116 : vector<8x128xf32>
    %118 = arith.index_cast %c2_i32 : i32 to index
    %c0_39 = arith.constant 0 : index
    %c0_40 = arith.constant 0 : index
    %119 = vector.load %arg7[%118, %c0_39, %c0_40] : memref<16x8x128xf32, #tpu.memory_space<vmem>>, vector<1x8x128xf32>
    %120 = vector.shape_cast %119 : vector<1x8x128xf32> to vector<8x128xf32>
    %121 = vector.shape_cast %117 : vector<8x128xf32> to vector<1x8x128xf32>
    tpu.vector_store %arg7[%118, %c0_39, %c0_40], %121 {strides = array<i32>} : memref<16x8x128xf32, #tpu.memory_space<vmem>>, vector<1x8x128xf32>,
    %c3_i32 = arith.constant 3 : i32
    %cst_41 = arith.constant dense<0.000000e+00> : vector<8x384xf32>
    %122 = tpu.matmul %117, %12, %cst_41 {dimension_numbers = #tpu.dot_dimension_numbers<[1], [0], [0], [1], [0, 0, 1, 1], [], []>} : vector<8x128xf32>, vector<128x384xf32>, vector<8x384xf32> -> vector<8x384xf32>
    %123 = arith.index_cast %c3_i32 : i32 to index
    %c0_42 = arith.constant 0 : index
    %c0_43 = arith.constant 0 : index
    %124 = vector.load %arg9[%123, %c0_42, %c0_43] : memref<16x8x384xf32, #tpu.memory_space<vmem>>, vector<1x8x384xf32>
    %125 = vector.shape_cast %124 : vector<1x8x384xf32> to vector<8x384xf32>
    %126 = vector.extract_strided_slice %125 {offsets = [0, 0], sizes = [8, 128], strides = [1, 1]} : vector<8x384xf32> to vector<8x128xf32>
    %127 = vector.extract_strided_slice %122 {offsets = [0, 0], sizes = [8, 128], strides = [1, 1]} : vector<8x384xf32> to vector<8x128xf32>
    %128 = arith.addf %126, %127 : vector<8x128xf32>
    %129 = arith.negf %128 : vector<8x128xf32>
    %130 = math.exp %129 : vector<8x128xf32>
    %cst_44 = arith.constant 1.000000e+00 : f32
    %131 = vector.broadcast %cst_44 : f32 to vector<8x128xf32>
    %132 = arith.addf %131, %130 : vector<8x128xf32>
    %133 = arith.divf %131, %132 : vector<8x128xf32>
    %134 = vector.extract_strided_slice %125 {offsets = [0, 128], sizes = [8, 128], strides = [1, 1]} : vector<8x384xf32> to vector<8x128xf32>
    %135 = vector.extract_strided_slice %122 {offsets = [0, 128], sizes = [8, 128], strides = [1, 1]} : vector<8x384xf32> to vector<8x128xf32>
    %136 = arith.addf %134, %135 : vector<8x128xf32>
    %137 = arith.negf %136 : vector<8x128xf32>
    %138 = math.exp %137 : vector<8x128xf32>
    %cst_45 = arith.constant 1.000000e+00 : f32
    %139 = vector.broadcast %cst_45 : f32 to vector<8x128xf32>
    %140 = arith.addf %139, %138 : vector<8x128xf32>
    %141 = arith.divf %139, %140 : vector<8x128xf32>
    %142 = vector.extract_strided_slice %125 {offsets = [0, 256], sizes = [8, 128], strides = [1, 1]} : vector<8x384xf32> to vector<8x128xf32>
    %143 = vector.extract_strided_slice %122 {offsets = [0, 256], sizes = [8, 128], strides = [1, 1]} : vector<8x384xf32> to vector<8x128xf32>
    %144 = arith.addf %143, %15 : vector<8x128xf32>
    %145 = arith.mulf %133, %144 : vector<8x128xf32>
    %146 = arith.addf %142, %145 : vector<8x128xf32>
    %147 = math.tanh %146 : vector<8x128xf32>
    %cst_46 = arith.constant 1.000000e+00 : f32
    %148 = vector.broadcast %cst_46 : f32 to vector<8x128xf32>
    %149 = arith.subf %148, %141 : vector<8x128xf32>
    %150 = arith.mulf %149, %147 : vector<8x128xf32>
    %151 = arith.mulf %141, %117 : vector<8x128xf32>
    %152 = arith.addf %150, %151 : vector<8x128xf32>
    %153 = arith.index_cast %c3_i32 : i32 to index
    %c0_47 = arith.constant 0 : index
    %c0_48 = arith.constant 0 : index
    %154 = vector.load %arg7[%153, %c0_47, %c0_48] : memref<16x8x128xf32, #tpu.memory_space<vmem>>, vector<1x8x128xf32>
    %155 = vector.shape_cast %154 : vector<1x8x128xf32> to vector<8x128xf32>
    %156 = vector.shape_cast %152 : vector<8x128xf32> to vector<1x8x128xf32>
    tpu.vector_store %arg7[%153, %c0_47, %c0_48], %156 {strides = array<i32>} : memref<16x8x128xf32, #tpu.memory_space<vmem>>, vector<1x8x128xf32>,
    %c4_i32 = arith.constant 4 : i32
    %cst_49 = arith.constant dense<0.000000e+00> : vector<8x384xf32>
    %157 = tpu.matmul %152, %12, %cst_49 {dimension_numbers = #tpu.dot_dimension_numbers<[1], [0], [0], [1], [0, 0, 1, 1], [], []>} : vector<8x128xf32>, vector<128x384xf32>, vector<8x384xf32> -> vector<8x384xf32>
    %158 = arith.index_cast %c4_i32 : i32 to index
    %c0_50 = arith.constant 0 : index
    %c0_51 = arith.constant 0 : index
    %159 = vector.load %arg9[%158, %c0_50, %c0_51] : memref<16x8x384xf32, #tpu.memory_space<vmem>>, vector<1x8x384xf32>
    %160 = vector.shape_cast %159 : vector<1x8x384xf32> to vector<8x384xf32>
    %161 = vector.extract_strided_slice %160 {offsets = [0, 0], sizes = [8, 128], strides = [1, 1]} : vector<8x384xf32> to vector<8x128xf32>
    %162 = vector.extract_strided_slice %157 {offsets = [0, 0], sizes = [8, 128], strides = [1, 1]} : vector<8x384xf32> to vector<8x128xf32>
    %163 = arith.addf %161, %162 : vector<8x128xf32>
    %164 = arith.negf %163 : vector<8x128xf32>
    %165 = math.exp %164 : vector<8x128xf32>
    %cst_52 = arith.constant 1.000000e+00 : f32
    %166 = vector.broadcast %cst_52 : f32 to vector<8x128xf32>
    %167 = arith.addf %166, %165 : vector<8x128xf32>
    %168 = arith.divf %166, %167 : vector<8x128xf32>
    %169 = vector.extract_strided_slice %160 {offsets = [0, 128], sizes = [8, 128], strides = [1, 1]} : vector<8x384xf32> to vector<8x128xf32>
    %170 = vector.extract_strided_slice %157 {offsets = [0, 128], sizes = [8, 128], strides = [1, 1]} : vector<8x384xf32> to vector<8x128xf32>
    %171 = arith.addf %169, %170 : vector<8x128xf32>
    %172 = arith.negf %171 : vector<8x128xf32>
    %173 = math.exp %172 : vector<8x128xf32>
    %cst_53 = arith.constant 1.000000e+00 : f32
    %174 = vector.broadcast %cst_53 : f32 to vector<8x128xf32>
    %175 = arith.addf %174, %173 : vector<8x128xf32>
    %176 = arith.divf %174, %175 : vector<8x128xf32>
    %177 = vector.extract_strided_slice %160 {offsets = [0, 256], sizes = [8, 128], strides = [1, 1]} : vector<8x384xf32> to vector<8x128xf32>
    %178 = vector.extract_strided_slice %157 {offsets = [0, 256], sizes = [8, 128], strides = [1, 1]} : vector<8x384xf32> to vector<8x128xf32>
    %179 = arith.addf %178, %15 : vector<8x128xf32>
    %180 = arith.mulf %168, %179 : vector<8x128xf32>
    %181 = arith.addf %177, %180 : vector<8x128xf32>
    %182 = math.tanh %181 : vector<8x128xf32>
    %cst_54 = arith.constant 1.000000e+00 : f32
    %183 = vector.broadcast %cst_54 : f32 to vector<8x128xf32>
    %184 = arith.subf %183, %176 : vector<8x128xf32>
    %185 = arith.mulf %184, %182 : vector<8x128xf32>
    %186 = arith.mulf %176, %152 : vector<8x128xf32>
    %187 = arith.addf %185, %186 : vector<8x128xf32>
    %188 = arith.index_cast %c4_i32 : i32 to index
    %c0_55 = arith.constant 0 : index
    %c0_56 = arith.constant 0 : index
    %189 = vector.load %arg7[%188, %c0_55, %c0_56] : memref<16x8x128xf32, #tpu.memory_space<vmem>>, vector<1x8x128xf32>
    %190 = vector.shape_cast %189 : vector<1x8x128xf32> to vector<8x128xf32>
    %191 = vector.shape_cast %187 : vector<8x128xf32> to vector<1x8x128xf32>
    tpu.vector_store %arg7[%188, %c0_55, %c0_56], %191 {strides = array<i32>} : memref<16x8x128xf32, #tpu.memory_space<vmem>>, vector<1x8x128xf32>,
    %c5_i32 = arith.constant 5 : i32
    %cst_57 = arith.constant dense<0.000000e+00> : vector<8x384xf32>
    %192 = tpu.matmul %187, %12, %cst_57 {dimension_numbers = #tpu.dot_dimension_numbers<[1], [0], [0], [1], [0, 0, 1, 1], [], []>} : vector<8x128xf32>, vector<128x384xf32>, vector<8x384xf32> -> vector<8x384xf32>
    %193 = arith.index_cast %c5_i32 : i32 to index
    %c0_58 = arith.constant 0 : index
    %c0_59 = arith.constant 0 : index
    %194 = vector.load %arg9[%193, %c0_58, %c0_59] : memref<16x8x384xf32, #tpu.memory_space<vmem>>, vector<1x8x384xf32>
    %195 = vector.shape_cast %194 : vector<1x8x384xf32> to vector<8x384xf32>
    %196 = vector.extract_strided_slice %195 {offsets = [0, 0], sizes = [8, 128], strides = [1, 1]} : vector<8x384xf32> to vector<8x128xf32>
    %197 = vector.extract_strided_slice %192 {offsets = [0, 0], sizes = [8, 128], strides = [1, 1]} : vector<8x384xf32> to vector<8x128xf32>
    %198 = arith.addf %196, %197 : vector<8x128xf32>
    %199 = arith.negf %198 : vector<8x128xf32>
    %200 = math.exp %199 : vector<8x128xf32>
    %cst_60 = arith.constant 1.000000e+00 : f32
    %201 = vector.broadcast %cst_60 : f32 to vector<8x128xf32>
    %202 = arith.addf %201, %200 : vector<8x128xf32>
    %203 = arith.divf %201, %202 : vector<8x128xf32>
    %204 = vector.extract_strided_slice %195 {offsets = [0, 128], sizes = [8, 128], strides = [1, 1]} : vector<8x384xf32> to vector<8x128xf32>
    %205 = vector.extract_strided_slice %192 {offsets = [0, 128], sizes = [8, 128], strides = [1, 1]} : vector<8x384xf32> to vector<8x128xf32>
    %206 = arith.addf %204, %205 : vector<8x128xf32>
    %207 = arith.negf %206 : vector<8x128xf32>
    %208 = math.exp %207 : vector<8x128xf32>
    %cst_61 = arith.constant 1.000000e+00 : f32
    %209 = vector.broadcast %cst_61 : f32 to vector<8x128xf32>
    %210 = arith.addf %209, %208 : vector<8x128xf32>
    %211 = arith.divf %209, %210 : vector<8x128xf32>
    %212 = vector.extract_strided_slice %195 {offsets = [0, 256], sizes = [8, 128], strides = [1, 1]} : vector<8x384xf32> to vector<8x128xf32>
    %213 = vector.extract_strided_slice %192 {offsets = [0, 256], sizes = [8, 128], strides = [1, 1]} : vector<8x384xf32> to vector<8x128xf32>
    %214 = arith.addf %213, %15 : vector<8x128xf32>
    %215 = arith.mulf %203, %214 : vector<8x128xf32>
    %216 = arith.addf %212, %215 : vector<8x128xf32>
    %217 = math.tanh %216 : vector<8x128xf32>
    %cst_62 = arith.constant 1.000000e+00 : f32
    %218 = vector.broadcast %cst_62 : f32 to vector<8x128xf32>
    %219 = arith.subf %218, %211 : vector<8x128xf32>
    %220 = arith.mulf %219, %217 : vector<8x128xf32>
    %221 = arith.mulf %211, %187 : vector<8x128xf32>
    %222 = arith.addf %220, %221 : vector<8x128xf32>
    %223 = arith.index_cast %c5_i32 : i32 to index
    %c0_63 = arith.constant 0 : index
    %c0_64 = arith.constant 0 : index
    %224 = vector.load %arg7[%223, %c0_63, %c0_64] : memref<16x8x128xf32, #tpu.memory_space<vmem>>, vector<1x8x128xf32>
    %225 = vector.shape_cast %224 : vector<1x8x128xf32> to vector<8x128xf32>
    %226 = vector.shape_cast %222 : vector<8x128xf32> to vector<1x8x128xf32>
    tpu.vector_store %arg7[%223, %c0_63, %c0_64], %226 {strides = array<i32>} : memref<16x8x128xf32, #tpu.memory_space<vmem>>, vector<1x8x128xf32>,
    %c6_i32 = arith.constant 6 : i32
    %cst_65 = arith.constant dense<0.000000e+00> : vector<8x384xf32>
    %227 = tpu.matmul %222, %12, %cst_65 {dimension_numbers = #tpu.dot_dimension_numbers<[1], [0], [0], [1], [0, 0, 1, 1], [], []>} : vector<8x128xf32>, vector<128x384xf32>, vector<8x384xf32> -> vector<8x384xf32>
    %228 = arith.index_cast %c6_i32 : i32 to index
    %c0_66 = arith.constant 0 : index
    %c0_67 = arith.constant 0 : index
    %229 = vector.load %arg9[%228, %c0_66, %c0_67] : memref<16x8x384xf32, #tpu.memory_space<vmem>>, vector<1x8x384xf32>
    %230 = vector.shape_cast %229 : vector<1x8x384xf32> to vector<8x384xf32>
    %231 = vector.extract_strided_slice %230 {offsets = [0, 0], sizes = [8, 128], strides = [1, 1]} : vector<8x384xf32> to vector<8x128xf32>
    %232 = vector.extract_strided_slice %227 {offsets = [0, 0], sizes = [8, 128], strides = [1, 1]} : vector<8x384xf32> to vector<8x128xf32>
    %233 = arith.addf %231, %232 : vector<8x128xf32>
    %234 = arith.negf %233 : vector<8x128xf32>
    %235 = math.exp %234 : vector<8x128xf32>
    %cst_68 = arith.constant 1.000000e+00 : f32
    %236 = vector.broadcast %cst_68 : f32 to vector<8x128xf32>
    %237 = arith.addf %236, %235 : vector<8x128xf32>
    %238 = arith.divf %236, %237 : vector<8x128xf32>
    %239 = vector.extract_strided_slice %230 {offsets = [0, 128], sizes = [8, 128], strides = [1, 1]} : vector<8x384xf32> to vector<8x128xf32>
    %240 = vector.extract_strided_slice %227 {offsets = [0, 128], sizes = [8, 128], strides = [1, 1]} : vector<8x384xf32> to vector<8x128xf32>
    %241 = arith.addf %239, %240 : vector<8x128xf32>
    %242 = arith.negf %241 : vector<8x128xf32>
    %243 = math.exp %242 : vector<8x128xf32>
    %cst_69 = arith.constant 1.000000e+00 : f32
    %244 = vector.broadcast %cst_69 : f32 to vector<8x128xf32>
    %245 = arith.addf %244, %243 : vector<8x128xf32>
    %246 = arith.divf %244, %245 : vector<8x128xf32>
    %247 = vector.extract_strided_slice %230 {offsets = [0, 256], sizes = [8, 128], strides = [1, 1]} : vector<8x384xf32> to vector<8x128xf32>
    %248 = vector.extract_strided_slice %227 {offsets = [0, 256], sizes = [8, 128], strides = [1, 1]} : vector<8x384xf32> to vector<8x128xf32>
    %249 = arith.addf %248, %15 : vector<8x128xf32>
    %250 = arith.mulf %238, %249 : vector<8x128xf32>
    %251 = arith.addf %247, %250 : vector<8x128xf32>
    %252 = math.tanh %251 : vector<8x128xf32>
    %cst_70 = arith.constant 1.000000e+00 : f32
    %253 = vector.broadcast %cst_70 : f32 to vector<8x128xf32>
    %254 = arith.subf %253, %246 : vector<8x128xf32>
    %255 = arith.mulf %254, %252 : vector<8x128xf32>
    %256 = arith.mulf %246, %222 : vector<8x128xf32>
    %257 = arith.addf %255, %256 : vector<8x128xf32>
    %258 = arith.index_cast %c6_i32 : i32 to index
    %c0_71 = arith.constant 0 : index
    %c0_72 = arith.constant 0 : index
    %259 = vector.load %arg7[%258, %c0_71, %c0_72] : memref<16x8x128xf32, #tpu.memory_space<vmem>>, vector<1x8x128xf32>
    %260 = vector.shape_cast %259 : vector<1x8x128xf32> to vector<8x128xf32>
    %261 = vector.shape_cast %257 : vector<8x128xf32> to vector<1x8x128xf32>
    tpu.vector_store %arg7[%258, %c0_71, %c0_72], %261 {strides = array<i32>} : memref<16x8x128xf32, #tpu.memory_space<vmem>>, vector<1x8x128xf32>,
    %c7_i32 = arith.constant 7 : i32
    %cst_73 = arith.constant dense<0.000000e+00> : vector<8x384xf32>
    %262 = tpu.matmul %257, %12, %cst_73 {dimension_numbers = #tpu.dot_dimension_numbers<[1], [0], [0], [1], [0, 0, 1, 1], [], []>} : vector<8x128xf32>, vector<128x384xf32>, vector<8x384xf32> -> vector<8x384xf32>
    %263 = arith.index_cast %c7_i32 : i32 to index
    %c0_74 = arith.constant 0 : index
    %c0_75 = arith.constant 0 : index
    %264 = vector.load %arg9[%263, %c0_74, %c0_75] : memref<16x8x384xf32, #tpu.memory_space<vmem>>, vector<1x8x384xf32>
    %265 = vector.shape_cast %264 : vector<1x8x384xf32> to vector<8x384xf32>
    %266 = vector.extract_strided_slice %265 {offsets = [0, 0], sizes = [8, 128], strides = [1, 1]} : vector<8x384xf32> to vector<8x128xf32>
    %267 = vector.extract_strided_slice %262 {offsets = [0, 0], sizes = [8, 128], strides = [1, 1]} : vector<8x384xf32> to vector<8x128xf32>
    %268 = arith.addf %266, %267 : vector<8x128xf32>
    %269 = arith.negf %268 : vector<8x128xf32>
    %270 = math.exp %269 : vector<8x128xf32>
    %cst_76 = arith.constant 1.000000e+00 : f32
    %271 = vector.broadcast %cst_76 : f32 to vector<8x128xf32>
    %272 = arith.addf %271, %270 : vector<8x128xf32>
    %273 = arith.divf %271, %272 : vector<8x128xf32>
    %274 = vector.extract_strided_slice %265 {offsets = [0, 128], sizes = [8, 128], strides = [1, 1]} : vector<8x384xf32> to vector<8x128xf32>
    %275 = vector.extract_strided_slice %262 {offsets = [0, 128], sizes = [8, 128], strides = [1, 1]} : vector<8x384xf32> to vector<8x128xf32>
    %276 = arith.addf %274, %275 : vector<8x128xf32>
    %277 = arith.negf %276 : vector<8x128xf32>
    %278 = math.exp %277 : vector<8x128xf32>
    %cst_77 = arith.constant 1.000000e+00 : f32
    %279 = vector.broadcast %cst_77 : f32 to vector<8x128xf32>
    %280 = arith.addf %279, %278 : vector<8x128xf32>
    %281 = arith.divf %279, %280 : vector<8x128xf32>
    %282 = vector.extract_strided_slice %265 {offsets = [0, 256], sizes = [8, 128], strides = [1, 1]} : vector<8x384xf32> to vector<8x128xf32>
    %283 = vector.extract_strided_slice %262 {offsets = [0, 256], sizes = [8, 128], strides = [1, 1]} : vector<8x384xf32> to vector<8x128xf32>
    %284 = arith.addf %283, %15 : vector<8x128xf32>
    %285 = arith.mulf %273, %284 : vector<8x128xf32>
    %286 = arith.addf %282, %285 : vector<8x128xf32>
    %287 = math.tanh %286 : vector<8x128xf32>
    %cst_78 = arith.constant 1.000000e+00 : f32
    %288 = vector.broadcast %cst_78 : f32 to vector<8x128xf32>
    %289 = arith.subf %288, %281 : vector<8x128xf32>
    %290 = arith.mulf %289, %287 : vector<8x128xf32>
    %291 = arith.mulf %281, %257 : vector<8x128xf32>
    %292 = arith.addf %290, %291 : vector<8x128xf32>
    %293 = arith.index_cast %c7_i32 : i32 to index
    %c0_79 = arith.constant 0 : index
    %c0_80 = arith.constant 0 : index
    %294 = vector.load %arg7[%293, %c0_79, %c0_80] : memref<16x8x128xf32, #tpu.memory_space<vmem>>, vector<1x8x128xf32>
    %295 = vector.shape_cast %294 : vector<1x8x128xf32> to vector<8x128xf32>
    %296 = vector.shape_cast %292 : vector<8x128xf32> to vector<1x8x128xf32>
    tpu.vector_store %arg7[%293, %c0_79, %c0_80], %296 {strides = array<i32>} : memref<16x8x128xf32, #tpu.memory_space<vmem>>, vector<1x8x128xf32>,
    %c8_i32 = arith.constant 8 : i32
    %cst_81 = arith.constant dense<0.000000e+00> : vector<8x384xf32>
    %297 = tpu.matmul %292, %12, %cst_81 {dimension_numbers = #tpu.dot_dimension_numbers<[1], [0], [0], [1], [0, 0, 1, 1], [], []>} : vector<8x128xf32>, vector<128x384xf32>, vector<8x384xf32> -> vector<8x384xf32>
    %298 = arith.index_cast %c8_i32 : i32 to index
    %c0_82 = arith.constant 0 : index
    %c0_83 = arith.constant 0 : index
    %299 = vector.load %arg9[%298, %c0_82, %c0_83] : memref<16x8x384xf32, #tpu.memory_space<vmem>>, vector<1x8x384xf32>
    %300 = vector.shape_cast %299 : vector<1x8x384xf32> to vector<8x384xf32>
    %301 = vector.extract_strided_slice %300 {offsets = [0, 0], sizes = [8, 128], strides = [1, 1]} : vector<8x384xf32> to vector<8x128xf32>
    %302 = vector.extract_strided_slice %297 {offsets = [0, 0], sizes = [8, 128], strides = [1, 1]} : vector<8x384xf32> to vector<8x128xf32>
    %303 = arith.addf %301, %302 : vector<8x128xf32>
    %304 = arith.negf %303 : vector<8x128xf32>
    %305 = math.exp %304 : vector<8x128xf32>
    %cst_84 = arith.constant 1.000000e+00 : f32
    %306 = vector.broadcast %cst_84 : f32 to vector<8x128xf32>
    %307 = arith.addf %306, %305 : vector<8x128xf32>
    %308 = arith.divf %306, %307 : vector<8x128xf32>
    %309 = vector.extract_strided_slice %300 {offsets = [0, 128], sizes = [8, 128], strides = [1, 1]} : vector<8x384xf32> to vector<8x128xf32>
    %310 = vector.extract_strided_slice %297 {offsets = [0, 128], sizes = [8, 128], strides = [1, 1]} : vector<8x384xf32> to vector<8x128xf32>
    %311 = arith.addf %309, %310 : vector<8x128xf32>
    %312 = arith.negf %311 : vector<8x128xf32>
    %313 = math.exp %312 : vector<8x128xf32>
    %cst_85 = arith.constant 1.000000e+00 : f32
    %314 = vector.broadcast %cst_85 : f32 to vector<8x128xf32>
    %315 = arith.addf %314, %313 : vector<8x128xf32>
    %316 = arith.divf %314, %315 : vector<8x128xf32>
    %317 = vector.extract_strided_slice %300 {offsets = [0, 256], sizes = [8, 128], strides = [1, 1]} : vector<8x384xf32> to vector<8x128xf32>
    %318 = vector.extract_strided_slice %297 {offsets = [0, 256], sizes = [8, 128], strides = [1, 1]} : vector<8x384xf32> to vector<8x128xf32>
    %319 = arith.addf %318, %15 : vector<8x128xf32>
    %320 = arith.mulf %308, %319 : vector<8x128xf32>
    %321 = arith.addf %317, %320 : vector<8x128xf32>
    %322 = math.tanh %321 : vector<8x128xf32>
    %cst_86 = arith.constant 1.000000e+00 : f32
    %323 = vector.broadcast %cst_86 : f32 to vector<8x128xf32>
    %324 = arith.subf %323, %316 : vector<8x128xf32>
    %325 = arith.mulf %324, %322 : vector<8x128xf32>
    %326 = arith.mulf %316, %292 : vector<8x128xf32>
    %327 = arith.addf %325, %326 : vector<8x128xf32>
    %328 = arith.index_cast %c8_i32 : i32 to index
    %c0_87 = arith.constant 0 : index
    %c0_88 = arith.constant 0 : index
    %329 = vector.load %arg7[%328, %c0_87, %c0_88] : memref<16x8x128xf32, #tpu.memory_space<vmem>>, vector<1x8x128xf32>
    %330 = vector.shape_cast %329 : vector<1x8x128xf32> to vector<8x128xf32>
    %331 = vector.shape_cast %327 : vector<8x128xf32> to vector<1x8x128xf32>
    tpu.vector_store %arg7[%328, %c0_87, %c0_88], %331 {strides = array<i32>} : memref<16x8x128xf32, #tpu.memory_space<vmem>>, vector<1x8x128xf32>,
    %c9_i32 = arith.constant 9 : i32
    %cst_89 = arith.constant dense<0.000000e+00> : vector<8x384xf32>
    %332 = tpu.matmul %327, %12, %cst_89 {dimension_numbers = #tpu.dot_dimension_numbers<[1], [0], [0], [1], [0, 0, 1, 1], [], []>} : vector<8x128xf32>, vector<128x384xf32>, vector<8x384xf32> -> vector<8x384xf32>
    %333 = arith.index_cast %c9_i32 : i32 to index
    %c0_90 = arith.constant 0 : index
    %c0_91 = arith.constant 0 : index
    %334 = vector.load %arg9[%333, %c0_90, %c0_91] : memref<16x8x384xf32, #tpu.memory_space<vmem>>, vector<1x8x384xf32>
    %335 = vector.shape_cast %334 : vector<1x8x384xf32> to vector<8x384xf32>
    %336 = vector.extract_strided_slice %335 {offsets = [0, 0], sizes = [8, 128], strides = [1, 1]} : vector<8x384xf32> to vector<8x128xf32>
    %337 = vector.extract_strided_slice %332 {offsets = [0, 0], sizes = [8, 128], strides = [1, 1]} : vector<8x384xf32> to vector<8x128xf32>
    %338 = arith.addf %336, %337 : vector<8x128xf32>
    %339 = arith.negf %338 : vector<8x128xf32>
    %340 = math.exp %339 : vector<8x128xf32>
    %cst_92 = arith.constant 1.000000e+00 : f32
    %341 = vector.broadcast %cst_92 : f32 to vector<8x128xf32>
    %342 = arith.addf %341, %340 : vector<8x128xf32>
    %343 = arith.divf %341, %342 : vector<8x128xf32>
    %344 = vector.extract_strided_slice %335 {offsets = [0, 128], sizes = [8, 128], strides = [1, 1]} : vector<8x384xf32> to vector<8x128xf32>
    %345 = vector.extract_strided_slice %332 {offsets = [0, 128], sizes = [8, 128], strides = [1, 1]} : vector<8x384xf32> to vector<8x128xf32>
    %346 = arith.addf %344, %345 : vector<8x128xf32>
    %347 = arith.negf %346 : vector<8x128xf32>
    %348 = math.exp %347 : vector<8x128xf32>
    %cst_93 = arith.constant 1.000000e+00 : f32
    %349 = vector.broadcast %cst_93 : f32 to vector<8x128xf32>
    %350 = arith.addf %349, %348 : vector<8x128xf32>
    %351 = arith.divf %349, %350 : vector<8x128xf32>
    %352 = vector.extract_strided_slice %335 {offsets = [0, 256], sizes = [8, 128], strides = [1, 1]} : vector<8x384xf32> to vector<8x128xf32>
    %353 = vector.extract_strided_slice %332 {offsets = [0, 256], sizes = [8, 128], strides = [1, 1]} : vector<8x384xf32> to vector<8x128xf32>
    %354 = arith.addf %353, %15 : vector<8x128xf32>
    %355 = arith.mulf %343, %354 : vector<8x128xf32>
    %356 = arith.addf %352, %355 : vector<8x128xf32>
    %357 = math.tanh %356 : vector<8x128xf32>
    %cst_94 = arith.constant 1.000000e+00 : f32
    %358 = vector.broadcast %cst_94 : f32 to vector<8x128xf32>
    %359 = arith.subf %358, %351 : vector<8x128xf32>
    %360 = arith.mulf %359, %357 : vector<8x128xf32>
    %361 = arith.mulf %351, %327 : vector<8x128xf32>
    %362 = arith.addf %360, %361 : vector<8x128xf32>
    %363 = arith.index_cast %c9_i32 : i32 to index
    %c0_95 = arith.constant 0 : index
    %c0_96 = arith.constant 0 : index
    %364 = vector.load %arg7[%363, %c0_95, %c0_96] : memref<16x8x128xf32, #tpu.memory_space<vmem>>, vector<1x8x128xf32>
    %365 = vector.shape_cast %364 : vector<1x8x128xf32> to vector<8x128xf32>
    %366 = vector.shape_cast %362 : vector<8x128xf32> to vector<1x8x128xf32>
    tpu.vector_store %arg7[%363, %c0_95, %c0_96], %366 {strides = array<i32>} : memref<16x8x128xf32, #tpu.memory_space<vmem>>, vector<1x8x128xf32>,
    %c10_i32 = arith.constant 10 : i32
    %cst_97 = arith.constant dense<0.000000e+00> : vector<8x384xf32>
    %367 = tpu.matmul %362, %12, %cst_97 {dimension_numbers = #tpu.dot_dimension_numbers<[1], [0], [0], [1], [0, 0, 1, 1], [], []>} : vector<8x128xf32>, vector<128x384xf32>, vector<8x384xf32> -> vector<8x384xf32>
    %368 = arith.index_cast %c10_i32 : i32 to index
    %c0_98 = arith.constant 0 : index
    %c0_99 = arith.constant 0 : index
    %369 = vector.load %arg9[%368, %c0_98, %c0_99] : memref<16x8x384xf32, #tpu.memory_space<vmem>>, vector<1x8x384xf32>
    %370 = vector.shape_cast %369 : vector<1x8x384xf32> to vector<8x384xf32>
    %371 = vector.extract_strided_slice %370 {offsets = [0, 0], sizes = [8, 128], strides = [1, 1]} : vector<8x384xf32> to vector<8x128xf32>
    %372 = vector.extract_strided_slice %367 {offsets = [0, 0], sizes = [8, 128], strides = [1, 1]} : vector<8x384xf32> to vector<8x128xf32>
    %373 = arith.addf %371, %372 : vector<8x128xf32>
    %374 = arith.negf %373 : vector<8x128xf32>
    %375 = math.exp %374 : vector<8x128xf32>
    %cst_100 = arith.constant 1.000000e+00 : f32
    %376 = vector.broadcast %cst_100 : f32 to vector<8x128xf32>
    %377 = arith.addf %376, %375 : vector<8x128xf32>
    %378 = arith.divf %376, %377 : vector<8x128xf32>
    %379 = vector.extract_strided_slice %370 {offsets = [0, 128], sizes = [8, 128], strides = [1, 1]} : vector<8x384xf32> to vector<8x128xf32>
    %380 = vector.extract_strided_slice %367 {offsets = [0, 128], sizes = [8, 128], strides = [1, 1]} : vector<8x384xf32> to vector<8x128xf32>
    %381 = arith.addf %379, %380 : vector<8x128xf32>
    %382 = arith.negf %381 : vector<8x128xf32>
    %383 = math.exp %382 : vector<8x128xf32>
    %cst_101 = arith.constant 1.000000e+00 : f32
    %384 = vector.broadcast %cst_101 : f32 to vector<8x128xf32>
    %385 = arith.addf %384, %383 : vector<8x128xf32>
    %386 = arith.divf %384, %385 : vector<8x128xf32>
    %387 = vector.extract_strided_slice %370 {offsets = [0, 256], sizes = [8, 128], strides = [1, 1]} : vector<8x384xf32> to vector<8x128xf32>
    %388 = vector.extract_strided_slice %367 {offsets = [0, 256], sizes = [8, 128], strides = [1, 1]} : vector<8x384xf32> to vector<8x128xf32>
    %389 = arith.addf %388, %15 : vector<8x128xf32>
    %390 = arith.mulf %378, %389 : vector<8x128xf32>
    %391 = arith.addf %387, %390 : vector<8x128xf32>
    %392 = math.tanh %391 : vector<8x128xf32>
    %cst_102 = arith.constant 1.000000e+00 : f32
    %393 = vector.broadcast %cst_102 : f32 to vector<8x128xf32>
    %394 = arith.subf %393, %386 : vector<8x128xf32>
    %395 = arith.mulf %394, %392 : vector<8x128xf32>
    %396 = arith.mulf %386, %362 : vector<8x128xf32>
    %397 = arith.addf %395, %396 : vector<8x128xf32>
    %398 = arith.index_cast %c10_i32 : i32 to index
    %c0_103 = arith.constant 0 : index
    %c0_104 = arith.constant 0 : index
    %399 = vector.load %arg7[%398, %c0_103, %c0_104] : memref<16x8x128xf32, #tpu.memory_space<vmem>>, vector<1x8x128xf32>
    %400 = vector.shape_cast %399 : vector<1x8x128xf32> to vector<8x128xf32>
    %401 = vector.shape_cast %397 : vector<8x128xf32> to vector<1x8x128xf32>
    tpu.vector_store %arg7[%398, %c0_103, %c0_104], %401 {strides = array<i32>} : memref<16x8x128xf32, #tpu.memory_space<vmem>>, vector<1x8x128xf32>,
    %c11_i32 = arith.constant 11 : i32
    %cst_105 = arith.constant dense<0.000000e+00> : vector<8x384xf32>
    %402 = tpu.matmul %397, %12, %cst_105 {dimension_numbers = #tpu.dot_dimension_numbers<[1], [0], [0], [1], [0, 0, 1, 1], [], []>} : vector<8x128xf32>, vector<128x384xf32>, vector<8x384xf32> -> vector<8x384xf32>
    %403 = arith.index_cast %c11_i32 : i32 to index
    %c0_106 = arith.constant 0 : index
    %c0_107 = arith.constant 0 : index
    %404 = vector.load %arg9[%403, %c0_106, %c0_107] : memref<16x8x384xf32, #tpu.memory_space<vmem>>, vector<1x8x384xf32>
    %405 = vector.shape_cast %404 : vector<1x8x384xf32> to vector<8x384xf32>
    %406 = vector.extract_strided_slice %405 {offsets = [0, 0], sizes = [8, 128], strides = [1, 1]} : vector<8x384xf32> to vector<8x128xf32>
    %407 = vector.extract_strided_slice %402 {offsets = [0, 0], sizes = [8, 128], strides = [1, 1]} : vector<8x384xf32> to vector<8x128xf32>
    %408 = arith.addf %406, %407 : vector<8x128xf32>
    %409 = arith.negf %408 : vector<8x128xf32>
    %410 = math.exp %409 : vector<8x128xf32>
    %cst_108 = arith.constant 1.000000e+00 : f32
    %411 = vector.broadcast %cst_108 : f32 to vector<8x128xf32>
    %412 = arith.addf %411, %410 : vector<8x128xf32>
    %413 = arith.divf %411, %412 : vector<8x128xf32>
    %414 = vector.extract_strided_slice %405 {offsets = [0, 128], sizes = [8, 128], strides = [1, 1]} : vector<8x384xf32> to vector<8x128xf32>
    %415 = vector.extract_strided_slice %402 {offsets = [0, 128], sizes = [8, 128], strides = [1, 1]} : vector<8x384xf32> to vector<8x128xf32>
    %416 = arith.addf %414, %415 : vector<8x128xf32>
    %417 = arith.negf %416 : vector<8x128xf32>
    %418 = math.exp %417 : vector<8x128xf32>
    %cst_109 = arith.constant 1.000000e+00 : f32
    %419 = vector.broadcast %cst_109 : f32 to vector<8x128xf32>
    %420 = arith.addf %419, %418 : vector<8x128xf32>
    %421 = arith.divf %419, %420 : vector<8x128xf32>
    %422 = vector.extract_strided_slice %405 {offsets = [0, 256], sizes = [8, 128], strides = [1, 1]} : vector<8x384xf32> to vector<8x128xf32>
    %423 = vector.extract_strided_slice %402 {offsets = [0, 256], sizes = [8, 128], strides = [1, 1]} : vector<8x384xf32> to vector<8x128xf32>
    %424 = arith.addf %423, %15 : vector<8x128xf32>
    %425 = arith.mulf %413, %424 : vector<8x128xf32>
    %426 = arith.addf %422, %425 : vector<8x128xf32>
    %427 = math.tanh %426 : vector<8x128xf32>
    %cst_110 = arith.constant 1.000000e+00 : f32
    %428 = vector.broadcast %cst_110 : f32 to vector<8x128xf32>
    %429 = arith.subf %428, %421 : vector<8x128xf32>
    %430 = arith.mulf %429, %427 : vector<8x128xf32>
    %431 = arith.mulf %421, %397 : vector<8x128xf32>
    %432 = arith.addf %430, %431 : vector<8x128xf32>
    %433 = arith.index_cast %c11_i32 : i32 to index
    %c0_111 = arith.constant 0 : index
    %c0_112 = arith.constant 0 : index
    %434 = vector.load %arg7[%433, %c0_111, %c0_112] : memref<16x8x128xf32, #tpu.memory_space<vmem>>, vector<1x8x128xf32>
    %435 = vector.shape_cast %434 : vector<1x8x128xf32> to vector<8x128xf32>
    %436 = vector.shape_cast %432 : vector<8x128xf32> to vector<1x8x128xf32>
    tpu.vector_store %arg7[%433, %c0_111, %c0_112], %436 {strides = array<i32>} : memref<16x8x128xf32, #tpu.memory_space<vmem>>, vector<1x8x128xf32>,
    %c12_i32 = arith.constant 12 : i32
    %cst_113 = arith.constant dense<0.000000e+00> : vector<8x384xf32>
    %437 = tpu.matmul %432, %12, %cst_113 {dimension_numbers = #tpu.dot_dimension_numbers<[1], [0], [0], [1], [0, 0, 1, 1], [], []>} : vector<8x128xf32>, vector<128x384xf32>, vector<8x384xf32> -> vector<8x384xf32>
    %438 = arith.index_cast %c12_i32 : i32 to index
    %c0_114 = arith.constant 0 : index
    %c0_115 = arith.constant 0 : index
    %439 = vector.load %arg9[%438, %c0_114, %c0_115] : memref<16x8x384xf32, #tpu.memory_space<vmem>>, vector<1x8x384xf32>
    %440 = vector.shape_cast %439 : vector<1x8x384xf32> to vector<8x384xf32>
    %441 = vector.extract_strided_slice %440 {offsets = [0, 0], sizes = [8, 128], strides = [1, 1]} : vector<8x384xf32> to vector<8x128xf32>
    %442 = vector.extract_strided_slice %437 {offsets = [0, 0], sizes = [8, 128], strides = [1, 1]} : vector<8x384xf32> to vector<8x128xf32>
    %443 = arith.addf %441, %442 : vector<8x128xf32>
    %444 = arith.negf %443 : vector<8x128xf32>
    %445 = math.exp %444 : vector<8x128xf32>
    %cst_116 = arith.constant 1.000000e+00 : f32
    %446 = vector.broadcast %cst_116 : f32 to vector<8x128xf32>
    %447 = arith.addf %446, %445 : vector<8x128xf32>
    %448 = arith.divf %446, %447 : vector<8x128xf32>
    %449 = vector.extract_strided_slice %440 {offsets = [0, 128], sizes = [8, 128], strides = [1, 1]} : vector<8x384xf32> to vector<8x128xf32>
    %450 = vector.extract_strided_slice %437 {offsets = [0, 128], sizes = [8, 128], strides = [1, 1]} : vector<8x384xf32> to vector<8x128xf32>
    %451 = arith.addf %449, %450 : vector<8x128xf32>
    %452 = arith.negf %451 : vector<8x128xf32>
    %453 = math.exp %452 : vector<8x128xf32>
    %cst_117 = arith.constant 1.000000e+00 : f32
    %454 = vector.broadcast %cst_117 : f32 to vector<8x128xf32>
    %455 = arith.addf %454, %453 : vector<8x128xf32>
    %456 = arith.divf %454, %455 : vector<8x128xf32>
    %457 = vector.extract_strided_slice %440 {offsets = [0, 256], sizes = [8, 128], strides = [1, 1]} : vector<8x384xf32> to vector<8x128xf32>
    %458 = vector.extract_strided_slice %437 {offsets = [0, 256], sizes = [8, 128], strides = [1, 1]} : vector<8x384xf32> to vector<8x128xf32>
    %459 = arith.addf %458, %15 : vector<8x128xf32>
    %460 = arith.mulf %448, %459 : vector<8x128xf32>
    %461 = arith.addf %457, %460 : vector<8x128xf32>
    %462 = math.tanh %461 : vector<8x128xf32>
    %cst_118 = arith.constant 1.000000e+00 : f32
    %463 = vector.broadcast %cst_118 : f32 to vector<8x128xf32>
    %464 = arith.subf %463, %456 : vector<8x128xf32>
    %465 = arith.mulf %464, %462 : vector<8x128xf32>
    %466 = arith.mulf %456, %432 : vector<8x128xf32>
    %467 = arith.addf %465, %466 : vector<8x128xf32>
    %468 = arith.index_cast %c12_i32 : i32 to index
    %c0_119 = arith.constant 0 : index
    %c0_120 = arith.constant 0 : index
    %469 = vector.load %arg7[%468, %c0_119, %c0_120] : memref<16x8x128xf32, #tpu.memory_space<vmem>>, vector<1x8x128xf32>
    %470 = vector.shape_cast %469 : vector<1x8x128xf32> to vector<8x128xf32>
    %471 = vector.shape_cast %467 : vector<8x128xf32> to vector<1x8x128xf32>
    tpu.vector_store %arg7[%468, %c0_119, %c0_120], %471 {strides = array<i32>} : memref<16x8x128xf32, #tpu.memory_space<vmem>>, vector<1x8x128xf32>,
    %c13_i32 = arith.constant 13 : i32
    %cst_121 = arith.constant dense<0.000000e+00> : vector<8x384xf32>
    %472 = tpu.matmul %467, %12, %cst_121 {dimension_numbers = #tpu.dot_dimension_numbers<[1], [0], [0], [1], [0, 0, 1, 1], [], []>} : vector<8x128xf32>, vector<128x384xf32>, vector<8x384xf32> -> vector<8x384xf32>
    %473 = arith.index_cast %c13_i32 : i32 to index
    %c0_122 = arith.constant 0 : index
    %c0_123 = arith.constant 0 : index
    %474 = vector.load %arg9[%473, %c0_122, %c0_123] : memref<16x8x384xf32, #tpu.memory_space<vmem>>, vector<1x8x384xf32>
    %475 = vector.shape_cast %474 : vector<1x8x384xf32> to vector<8x384xf32>
    %476 = vector.extract_strided_slice %475 {offsets = [0, 0], sizes = [8, 128], strides = [1, 1]} : vector<8x384xf32> to vector<8x128xf32>
    %477 = vector.extract_strided_slice %472 {offsets = [0, 0], sizes = [8, 128], strides = [1, 1]} : vector<8x384xf32> to vector<8x128xf32>
    %478 = arith.addf %476, %477 : vector<8x128xf32>
    %479 = arith.negf %478 : vector<8x128xf32>
    %480 = math.exp %479 : vector<8x128xf32>
    %cst_124 = arith.constant 1.000000e+00 : f32
    %481 = vector.broadcast %cst_124 : f32 to vector<8x128xf32>
    %482 = arith.addf %481, %480 : vector<8x128xf32>
    %483 = arith.divf %481, %482 : vector<8x128xf32>
    %484 = vector.extract_strided_slice %475 {offsets = [0, 128], sizes = [8, 128], strides = [1, 1]} : vector<8x384xf32> to vector<8x128xf32>
    %485 = vector.extract_strided_slice %472 {offsets = [0, 128], sizes = [8, 128], strides = [1, 1]} : vector<8x384xf32> to vector<8x128xf32>
    %486 = arith.addf %484, %485 : vector<8x128xf32>
    %487 = arith.negf %486 : vector<8x128xf32>
    %488 = math.exp %487 : vector<8x128xf32>
    %cst_125 = arith.constant 1.000000e+00 : f32
    %489 = vector.broadcast %cst_125 : f32 to vector<8x128xf32>
    %490 = arith.addf %489, %488 : vector<8x128xf32>
    %491 = arith.divf %489, %490 : vector<8x128xf32>
    %492 = vector.extract_strided_slice %475 {offsets = [0, 256], sizes = [8, 128], strides = [1, 1]} : vector<8x384xf32> to vector<8x128xf32>
    %493 = vector.extract_strided_slice %472 {offsets = [0, 256], sizes = [8, 128], strides = [1, 1]} : vector<8x384xf32> to vector<8x128xf32>
    %494 = arith.addf %493, %15 : vector<8x128xf32>
    %495 = arith.mulf %483, %494 : vector<8x128xf32>
    %496 = arith.addf %492, %495 : vector<8x128xf32>
    %497 = math.tanh %496 : vector<8x128xf32>
    %cst_126 = arith.constant 1.000000e+00 : f32
    %498 = vector.broadcast %cst_126 : f32 to vector<8x128xf32>
    %499 = arith.subf %498, %491 : vector<8x128xf32>
    %500 = arith.mulf %499, %497 : vector<8x128xf32>
    %501 = arith.mulf %491, %467 : vector<8x128xf32>
    %502 = arith.addf %500, %501 : vector<8x128xf32>
    %503 = arith.index_cast %c13_i32 : i32 to index
    %c0_127 = arith.constant 0 : index
    %c0_128 = arith.constant 0 : index
    %504 = vector.load %arg7[%503, %c0_127, %c0_128] : memref<16x8x128xf32, #tpu.memory_space<vmem>>, vector<1x8x128xf32>
    %505 = vector.shape_cast %504 : vector<1x8x128xf32> to vector<8x128xf32>
    %506 = vector.shape_cast %502 : vector<8x128xf32> to vector<1x8x128xf32>
    tpu.vector_store %arg7[%503, %c0_127, %c0_128], %506 {strides = array<i32>} : memref<16x8x128xf32, #tpu.memory_space<vmem>>, vector<1x8x128xf32>,
    %c14_i32 = arith.constant 14 : i32
    %cst_129 = arith.constant dense<0.000000e+00> : vector<8x384xf32>
    %507 = tpu.matmul %502, %12, %cst_129 {dimension_numbers = #tpu.dot_dimension_numbers<[1], [0], [0], [1], [0, 0, 1, 1], [], []>} : vector<8x128xf32>, vector<128x384xf32>, vector<8x384xf32> -> vector<8x384xf32>
    %508 = arith.index_cast %c14_i32 : i32 to index
    %c0_130 = arith.constant 0 : index
    %c0_131 = arith.constant 0 : index
    %509 = vector.load %arg9[%508, %c0_130, %c0_131] : memref<16x8x384xf32, #tpu.memory_space<vmem>>, vector<1x8x384xf32>
    %510 = vector.shape_cast %509 : vector<1x8x384xf32> to vector<8x384xf32>
    %511 = vector.extract_strided_slice %510 {offsets = [0, 0], sizes = [8, 128], strides = [1, 1]} : vector<8x384xf32> to vector<8x128xf32>
    %512 = vector.extract_strided_slice %507 {offsets = [0, 0], sizes = [8, 128], strides = [1, 1]} : vector<8x384xf32> to vector<8x128xf32>
    %513 = arith.addf %511, %512 : vector<8x128xf32>
    %514 = arith.negf %513 : vector<8x128xf32>
    %515 = math.exp %514 : vector<8x128xf32>
    %cst_132 = arith.constant 1.000000e+00 : f32
    %516 = vector.broadcast %cst_132 : f32 to vector<8x128xf32>
    %517 = arith.addf %516, %515 : vector<8x128xf32>
    %518 = arith.divf %516, %517 : vector<8x128xf32>
    %519 = vector.extract_strided_slice %510 {offsets = [0, 128], sizes = [8, 128], strides = [1, 1]} : vector<8x384xf32> to vector<8x128xf32>
    %520 = vector.extract_strided_slice %507 {offsets = [0, 128], sizes = [8, 128], strides = [1, 1]} : vector<8x384xf32> to vector<8x128xf32>
    %521 = arith.addf %519, %520 : vector<8x128xf32>
    %522 = arith.negf %521 : vector<8x128xf32>
    %523 = math.exp %522 : vector<8x128xf32>
    %cst_133 = arith.constant 1.000000e+00 : f32
    %524 = vector.broadcast %cst_133 : f32 to vector<8x128xf32>
    %525 = arith.addf %524, %523 : vector<8x128xf32>
    %526 = arith.divf %524, %525 : vector<8x128xf32>
    %527 = vector.extract_strided_slice %510 {offsets = [0, 256], sizes = [8, 128], strides = [1, 1]} : vector<8x384xf32> to vector<8x128xf32>
    %528 = vector.extract_strided_slice %507 {offsets = [0, 256], sizes = [8, 128], strides = [1, 1]} : vector<8x384xf32> to vector<8x128xf32>
    %529 = arith.addf %528, %15 : vector<8x128xf32>
    %530 = arith.mulf %518, %529 : vector<8x128xf32>
    %531 = arith.addf %527, %530 : vector<8x128xf32>
    %532 = math.tanh %531 : vector<8x128xf32>
    %cst_134 = arith.constant 1.000000e+00 : f32
    %533 = vector.broadcast %cst_134 : f32 to vector<8x128xf32>
    %534 = arith.subf %533, %526 : vector<8x128xf32>
    %535 = arith.mulf %534, %532 : vector<8x128xf32>
    %536 = arith.mulf %526, %502 : vector<8x128xf32>
    %537 = arith.addf %535, %536 : vector<8x128xf32>
    %538 = arith.index_cast %c14_i32 : i32 to index
    %c0_135 = arith.constant 0 : index
    %c0_136 = arith.constant 0 : index
    %539 = vector.load %arg7[%538, %c0_135, %c0_136] : memref<16x8x128xf32, #tpu.memory_space<vmem>>, vector<1x8x128xf32>
    %540 = vector.shape_cast %539 : vector<1x8x128xf32> to vector<8x128xf32>
    %541 = vector.shape_cast %537 : vector<8x128xf32> to vector<1x8x128xf32>
    tpu.vector_store %arg7[%538, %c0_135, %c0_136], %541 {strides = array<i32>} : memref<16x8x128xf32, #tpu.memory_space<vmem>>, vector<1x8x128xf32>,
    %c15_i32 = arith.constant 15 : i32
    %cst_137 = arith.constant dense<0.000000e+00> : vector<8x384xf32>
    %542 = tpu.matmul %537, %12, %cst_137 {dimension_numbers = #tpu.dot_dimension_numbers<[1], [0], [0], [1], [0, 0, 1, 1], [], []>} : vector<8x128xf32>, vector<128x384xf32>, vector<8x384xf32> -> vector<8x384xf32>
    %543 = arith.index_cast %c15_i32 : i32 to index
    %c0_138 = arith.constant 0 : index
    %c0_139 = arith.constant 0 : index
    %544 = vector.load %arg9[%543, %c0_138, %c0_139] : memref<16x8x384xf32, #tpu.memory_space<vmem>>, vector<1x8x384xf32>
    %545 = vector.shape_cast %544 : vector<1x8x384xf32> to vector<8x384xf32>
    %546 = vector.extract_strided_slice %545 {offsets = [0, 0], sizes = [8, 128], strides = [1, 1]} : vector<8x384xf32> to vector<8x128xf32>
    %547 = vector.extract_strided_slice %542 {offsets = [0, 0], sizes = [8, 128], strides = [1, 1]} : vector<8x384xf32> to vector<8x128xf32>
    %548 = arith.addf %546, %547 : vector<8x128xf32>
    %549 = arith.negf %548 : vector<8x128xf32>
    %550 = math.exp %549 : vector<8x128xf32>
    %cst_140 = arith.constant 1.000000e+00 : f32
    %551 = vector.broadcast %cst_140 : f32 to vector<8x128xf32>
    %552 = arith.addf %551, %550 : vector<8x128xf32>
    %553 = arith.divf %551, %552 : vector<8x128xf32>
    %554 = vector.extract_strided_slice %545 {offsets = [0, 128], sizes = [8, 128], strides = [1, 1]} : vector<8x384xf32> to vector<8x128xf32>
    %555 = vector.extract_strided_slice %542 {offsets = [0, 128], sizes = [8, 128], strides = [1, 1]} : vector<8x384xf32> to vector<8x128xf32>
    %556 = arith.addf %554, %555 : vector<8x128xf32>
    %557 = arith.negf %556 : vector<8x128xf32>
    %558 = math.exp %557 : vector<8x128xf32>
    %cst_141 = arith.constant 1.000000e+00 : f32
    %559 = vector.broadcast %cst_141 : f32 to vector<8x128xf32>
    %560 = arith.addf %559, %558 : vector<8x128xf32>
    %561 = arith.divf %559, %560 : vector<8x128xf32>
    %562 = vector.extract_strided_slice %545 {offsets = [0, 256], sizes = [8, 128], strides = [1, 1]} : vector<8x384xf32> to vector<8x128xf32>
    %563 = vector.extract_strided_slice %542 {offsets = [0, 256], sizes = [8, 128], strides = [1, 1]} : vector<8x384xf32> to vector<8x128xf32>
    %564 = arith.addf %563, %15 : vector<8x128xf32>
    %565 = arith.mulf %553, %564 : vector<8x128xf32>
    %566 = arith.addf %562, %565 : vector<8x128xf32>
    %567 = math.tanh %566 : vector<8x128xf32>
    %cst_142 = arith.constant 1.000000e+00 : f32
    %568 = vector.broadcast %cst_142 : f32 to vector<8x128xf32>
    %569 = arith.subf %568, %561 : vector<8x128xf32>
    %570 = arith.mulf %569, %567 : vector<8x128xf32>
    %571 = arith.mulf %561, %537 : vector<8x128xf32>
    %572 = arith.addf %570, %571 : vector<8x128xf32>
    %573 = arith.index_cast %c15_i32 : i32 to index
    %c0_143 = arith.constant 0 : index
    %c0_144 = arith.constant 0 : index
    %574 = vector.load %arg7[%573, %c0_143, %c0_144] : memref<16x8x128xf32, #tpu.memory_space<vmem>>, vector<1x8x128xf32>
    %575 = vector.shape_cast %574 : vector<1x8x128xf32> to vector<8x128xf32>
    %576 = vector.shape_cast %572 : vector<8x128xf32> to vector<1x8x128xf32>
    tpu.vector_store %arg7[%573, %c0_143, %c0_144], %576 {strides = array<i32>} : memref<16x8x128xf32, #tpu.memory_space<vmem>>, vector<1x8x128xf32>,
    %c16_i32 = arith.constant 16 : i32
    %c0_145 = arith.constant 0 : index
    %c0_146 = arith.constant 0 : index
    %577 = vector.load %arg8[%c0_145, %c0_146] : memref<8x128xf32, #tpu.memory_space<vmem>>, vector<8x128xf32>
    tpu.vector_store %arg8[%c0_145, %c0_146], %572 {strides = array<i32>} : memref<8x128xf32, #tpu.memory_space<vmem>>, vector<8x128xf32>,
    return
  }
  func.func @transform_0(%arg0: i32, %arg1: i32) -> (i32, i32, i32) {
    %c0_i32 = arith.constant 0 : i32
    %c0_i32_0 = arith.constant 0 : i32
    return %arg1, %arg0, %c0_i32 : i32, i32, i32
  }
  func.func @transform_1(%arg0: i32, %arg1: i32) -> (i32, i32) {
    %c0_i32 = arith.constant 0 : i32
    %c0_i32_0 = arith.constant 0 : i32
    %c0_i32_1 = arith.constant 0 : i32
    return %c0_i32, %c0_i32_0 : i32, i32
  }
  func.func @transform_2(%arg0: i32, %arg1: i32) -> (i32, i32) {
    %c0_i32 = arith.constant 0 : i32
    %c0_i32_0 = arith.constant 0 : i32
    %c0_i32_1 = arith.constant 0 : i32
    return %c0_i32, %c0_i32_0 : i32, i32
  }
  func.func @transform_3(%arg0: i32, %arg1: i32) -> (i32, i32) {
    %c0_i32 = arith.constant 0 : i32
    %c0_i32_0 = arith.constant 0 : i32
    %c0_i32_1 = arith.constant 0 : i32
    return %c0_i32, %c0_i32_0 : i32, i32
  }
  func.func @transform_4(%arg0: i32, %arg1: i32) -> (i32, i32) {
    %c0_i32 = arith.constant 0 : i32
    %c0_i32_0 = arith.constant 0 : i32
    %c0_i32_1 = arith.constant 0 : i32
    return %c0_i32, %c0_i32_0 : i32, i32
  }
  func.func @transform_5(%arg0: i32, %arg1: i32) -> (i32, i32, i32) {
    %c0_i32 = arith.constant 0 : i32
    %c0_i32_0 = arith.constant 0 : i32
    return %arg1, %arg0, %c0_i32 : i32, i32, i32
  }
}

</mosaic_0001>

<bundles_post_ra>
// kernel: tpu_custom_call.1
= control target key start
LH: loop header
LB: loop body
LE: loop exit
PB: predicated region body
PF: predicated region fallthrough
CT: control target
= control target key end

     0   :  { %10 = vsyncpa [#allocation5], 0  ;;  %s6536_s0 = inlined_call_operand.hbm [shape: f32[16,8,64], index: 0, kind: input, shape index: {}]   ;;  %s6537_s1 = inlined_call_operand.hbm [shape: f32[64,384], index: 1, kind: input, shape index: {}]   ;;  %s6538_s2 = inlined_call_operand.hbm [shape: f32[128,384], index: 2, kind: input, shape index: {}]   ;;  %s6539_s3 = inlined_call_operand.vmem [shape: f32[1,384], index: 3, kind: input, shape index: {}]   ;;  %s6540_s4 = inlined_call_operand.vmem [shape: f32[1,128], index: 4, kind: input, shape index: {}]   ;;  %s6541_s5 = inlined_call_operand.hbm [shape: f32[16,8,128], index: 5, kind: output, shape index: {}]  }
   0x1   :  { %11 = vsyncpa [#allocation8], 0 }
   0x2   :  { %12 = vsyncpa [#allocation6], 0  ;;  %s5531_s18 = smov [#allocation7]   ;;  %s5437_s22 = scalar_lea.hbm %s6537_s1, 3072 }
   0x3   :  { %s30_s19 = sshll.u32 %s5531_s18, 4  ;;  %p5438_p0 = scmp.ne.s32.totalorder %s6537_s1, %s5437_s22  ;;  %s31_s19 = int_to_ptr.vmem [resolvable:$true] %s30_s19 }
   0x4   :  { %p5441_p1 = scmp.lt.u32.totalorder %s5437_s22, %s6537_s1 }
   0x6   :  { %p5443_p2 = pnand %p5441_p1, %p5438_p0 }
   0x8   :  { %5446 = shalt.err (!%p5443_p2)
}
   0x9   :  { %s5447_s27 = scalar_lea.vmem %s31_s19, 3072  ;;  %p5452_p4 = scmp.lt.s32.totalorder %s31_s19, %s31_s19 }
   0xa   :  { %p5448_p3 = scmp.ne.s32.totalorder %s31_s19, %s5447_s27  ;;  %p5453_p5 = scmp.lt.s32.totalorder %s5447_s27, %s5447_s27 }
   0xc   :  { %p5454_p6 = por %p5453_p5, %p5452_p4 }
   0xe   :  { %p5455_p7 = pnand %p5454_p6, %p5448_p3 }
  0x10   :  { %5458 = shalt.err (!%p5455_p7)
}
  0x11   :  { %s5532_s28 = smov 384   ;;  %s5533_s29 = smov 24  }
  0x12   :  { %36 = dma.hbm_to_vmem [thread:$0]  %s6537_s1, 3072, %s31_s19, [#allocation8], %s5532_s28, %s5532_s28, %s5533_s29  }
  0x13   :  { %s5534_s7 = smov [#allocation4]   ;;  %s5459_s11 = scalar_lea.hbm %s6536_s0, 2048 }
  0x14   :  { %s18_s8 = sshll.u32 %s5534_s7, 4  ;;  %p5460_p8 = scmp.ne.s32.totalorder %s6536_s0, %s5459_s11  ;;  %s19_s8 = int_to_ptr.vmem [resolvable:$true] %s18_s8 }
  0x15   :  { %p5463_p9 = scmp.lt.u32.totalorder %s5459_s11, %s6536_s0 }
  0x17   :  { %p5465_p10 = pnand %p5463_p9, %p5460_p8 }
  0x19   :  { %5468 = shalt.err (!%p5465_p10)
}
  0x1a   :  { %s5469_s16 = scalar_lea.vmem %s19_s8, 2048  ;;  %p5474_p12 = scmp.lt.s32.totalorder %s19_s8, %s19_s8 }
  0x1b   :  { %p5470_p11 = scmp.ne.s32.totalorder %s19_s8, %s5469_s16  ;;  %p5475_p13 = scmp.lt.s32.totalorder %s5469_s16, %s5469_s16 }
  0x1d   :  { %p5476_p0 = por %p5475_p13, %p5474_p12 }
  0x1f   :  { %p5477_p1 = pnand %p5476_p0, %p5470_p11 }
  0x21   :  { %5480 = shalt.err (!%p5477_p1)
}
  0x22   :  { %s5535_s1 = smov 128   ;;  %s5536_s17 = smov 8  }
  0x23   :  { %24 = dma.hbm_to_vmem [thread:$0]  %s6536_s0, 2048, %s19_s8, [#allocation5], %s5535_s1, %s5535_s1, %s5536_s17  }
  0x24   :  { %s5537_s20 = smov [#allocation9]   ;;  %s5481_s24 = scalar_lea.hbm %s6538_s2, 6144 }
  0x25   :  { %s42_s21 = sshll.u32 %s5537_s20, 4  ;;  %p5482_p2 = scmp.ne.s32.totalorder %s6538_s2, %s5481_s24  ;;  %s43_s21 = int_to_ptr.vmem [resolvable:$true] %s42_s21 }
  0x26   :  { %p5485_p3 = scmp.lt.u32.totalorder %s5481_s24, %s6538_s2 }
  0x28   :  { %p5487_p4 = pnand %p5485_p3, %p5482_p2 }
  0x2a   :  { %5490 = shalt.err (!%p5487_p4)
}
  0x2b   :  { %s5491_s6 = scalar_lea.vmem %s43_s21, 6144  ;;  %p5496_p6 = scmp.lt.s32.totalorder %s43_s21, %s43_s21 }
  0x2c   :  { %p5492_p5 = scmp.ne.s32.totalorder %s43_s21, %s5491_s6  ;;  %p5497_p7 = scmp.lt.s32.totalorder %s5491_s6, %s5491_s6 }
  0x2e   :  { %p5498_p8 = por %p5497_p7, %p5496_p6 }
  0x30   :  { %p5499_p9 = pnand %p5498_p8, %p5492_p5 }
  0x32   :  { %5502 = shalt.err (!%p5499_p9)
}
  0x33   :  { %48 = dma.hbm_to_vmem [thread:$0]  %s6538_s2, 6144, %s43_s21, [#allocation8], %s5532_s28, %s5532_s28, %s5533_s29  }
  0x34   :  { %5525 = dma.done.wait [#allocation5], 2048  }
  0x35   :  { %5526 = vsyncadd [#allocation5], 4294965248 }
  0x36   :  { %5527 = dma.done.wait [#allocation8], 9216  }
  0x37   :  { %5528 = vsyncadd [#allocation8], 4294958080  ;;  %v6542_v0 = vmov 0.0   ;;  %v84_v1 = vld [vmem:[#allocation7 + $0x8] sm:$0xff]  ;;  %v87_v2 = vld [vmem:[#allocation7 + $0x20] sm:$0xff]  ;;  %vm124_vm0 = vcmask 523264  }
  0x38   :  { %237 = vmatprep.mubr.f32.mxu0 %v6542_v0  ;;  %309 = vmatprep.mubr.f32.mxu1 %v6542_v0  ;;  %v83_v3 = vld [vmem:[#allocation7] sm:$0xff]  ;;  %v4265_v4 = vpack.c.bf16 %v87_v2, %v84_v1  ;;  %v86_v5 = vld [vmem:[#allocation7 + $0x18] sm:$0xff]  ;;  %v93_v7 = vld [vmem:[#allocation7 + $0x50] sm:$0xff]  ;;  %vm5540_vm1 = vmmov 0  }
  0x39   :  { %v90_v6 = vld [vmem:[#allocation7 + $0x38] sm:$0xff]  ;;  %v4267_v8 = vpack.c.bf16 %v86_v5, %v83_v3  ;;  %v89_v10 = vld [vmem:[#allocation7 + $0x30] sm:$0xff]  ;;  %v92_v11 = vld [vmem:[#allocation7 + $0x48] sm:$0xff] }
  0x3a   :  { %v4269_v9 = vpack.c.bf16 %v93_v7, %v90_v6  ;;  %v96_v12 = vld [vmem:[#allocation7 + $0x68] sm:$0xff]  ;;  %4266 = vmatprep.subr.bf16.mxu0 %v4265_v4  ;;  %v99_v13 = vld [vmem:[#allocation7 + $0x80] sm:$0xff]  ;;  %5193 = vmatprep.subr.bf16.mxu1 %v4265_v4  ;;  %v4271_v14 = vpack.c.bf16 %v92_v11, %v89_v10  ;;  %v98_v17 = vld [vmem:[#allocation7 + $0x78] sm:$0xff] }
  0x3b   :  { %4268 = vmatpush1.bf16.msra.mxu0 %v4267_v8  ;;  %5197 = vmatpush1.bf16.msra.mxu1 %v4267_v8  ;;  %v4273_v15 = vpack.c.bf16 %v99_v13, %v96_v12  ;;  %v95_v16 = vld [vmem:[#allocation7 + $0x60] sm:$0xff]  ;;  %v102_v18 = vld [vmem:[#allocation7 + $0x98] sm:$0xff]  ;;  %v105_v19 = vld [vmem:[#allocation7 + $0xb0] sm:$0xff] }
  0x3c   :  { %4270 = vmatprep.subr.bf16.mxu0 %v4269_v9  ;;  %5194 = vmatprep.subr.bf16.mxu1 %v4269_v9  ;;  %v4275_v20 = vpack.c.bf16 %v98_v17, %v95_v16  ;;  %v4277_v21 = vpack.c.bf16 %v105_v19, %v102_v18  ;;  %v101_v22 = vld [vmem:[#allocation7 + $0x90] sm:$0xff]  ;;  %v104_v23 = vld [vmem:[#allocation7 + $0xa8] sm:$0xff]  ;;  %v531_v25 = vld [vmem:[#allocation9 + $0x20] sm:$0xff] }
  0x3d   :  { %v528_v24 = vld [vmem:[#allocation9 + $0x8] sm:$0xff]  ;;  %v4279_v26 = vpack.c.bf16 %v104_v23, %v101_v22  ;;  %v527_v28 = vld [vmem:[#allocation9] sm:$0xff]  ;;  %v530_v29 = vld [vmem:[#allocation9 + $0x18] sm:$0xff]  ;;  %v6544_v22 = vmov 0.0|0.0  }
  0x3e   :  { %v5619_v27 = vpack.c.bf16 %v531_v25, %v528_v24  ;;  %v534_v30 = vld [vmem:[#allocation9 + $0x38] sm:$0xff]  ;;  %v537_v31 = vld [vmem:[#allocation9 + $0x50] sm:$0xff]  ;;  %v5621_v33 = vld [vmem:[#allocation4] sm:$0xff]  ;;  %v5623_v35 = vpack.c.bf16 %v530_v29, %v527_v28 }
  0x3f   :  { %4272 = vmatpush1.bf16.msra.mxu0 %v4271_v14  ;;  %5198 = vmatpush1.bf16.msra.mxu1 %v4271_v14  ;;  %v85_v32 = vld [vmem:[#allocation7 + $0x10] sm:$0xff]  ;;  %v88_v34 = vld [vmem:[#allocation7 + $0x28] sm:$0xff]  ;;  %v5625_v36 = vld [vmem:[#allocation4 + $0x60] sm:$0xff]  ;;  %v5628_v40 = vpack.c.bf16 %v537_v31, %v534_v30 }
  0x40   :  { %4274 = vmatprep.subr.bf16.mxu0 %v4273_v15  ;;  %5195 = vmatprep.subr.bf16.mxu1 %v4273_v15  ;;  %v4281_v37 = vpack.c.bf16 %v88_v34, %v85_v32  ;;  %v91_v38 = vld [vmem:[#allocation7 + $0x40] sm:$0xff]  ;;  %v94_v39 = vld [vmem:[#allocation7 + $0x58] sm:$0xff]  ;;  %v533_v41 = vld [vmem:[#allocation9 + $0x30] sm:$0xff] }
  0x41   :  { %v536_v42 = vld [vmem:[#allocation9 + $0x48] sm:$0xff]  ;;  %v543_v44 = vld [vmem:[#allocation9 + $0x80] sm:$0xff]  ;;  %v4285_v45 = vpack.c.bf16 %v94_v39, %v91_v38  ;;  %v97_v46 = vld [vmem:[#allocation7 + $0x70] sm:$0xff] }
  0x42   :  { %v540_v43 = vld [vmem:[#allocation9 + $0x68] sm:$0xff]  ;;  %v5638_v49 = vpack.c.bf16 %v536_v42, %v533_v41  ;;  %v539_v52 = vld [vmem:[#allocation9 + $0x60] sm:$0xff]  ;;  %v542_v53 = vld [vmem:[#allocation9 + $0x78] sm:$0xff] }
  0x43   :  { %4276 = vmatpush1.bf16.msra.mxu0 %v4275_v20  ;;  %5199 = vmatpush1.bf16.msra.mxu1 %v4275_v20  ;;  %v100_v47 = vld [vmem:[#allocation7 + $0x88] sm:$0xff]  ;;  %v5643_v51 = vpack.c.bf16 %v543_v44, %v540_v43  ;;  %v546_v54 = vld [vmem:[#allocation9 + $0x98] sm:$0xff]  ;;  %v549_v55 = vld [vmem:[#allocation9 + $0xb0] sm:$0xff]  ;;  %v5654_v60 = vpack.c.bf16 %v542_v53, %v539_v52 }
  0x44   :  { %4278 = vmatprep.subr.bf16.mxu0 %v4277_v21  ;;  %5196 = vmatprep.subr.bf16.mxu1 %v4277_v21  ;;  %v5636_v48 = vld [vmem:[#allocation4 + $0x8] sm:$0xff]  ;;  %v4289_v56 = vpack.c.bf16 %v100_v47, %v97_v46  ;;  %v103_v57 = vld [vmem:[#allocation7 + $0xa0] sm:$0xff]  ;;  %v106_v58 = vld [vmem:[#allocation7 + $0xb8] sm:$0xff]  ;;  %v5659_v62 = vpack.c.bf16 %v549_v55, %v546_v54 }
  0x45   :  { %v5640_v50 = vld [vmem:[#allocation4 + $0x68] sm:$0xff]  ;;  %v5652_v59 = vld [vmem:[#allocation4 + $0x10] sm:$0xff]  ;;  %v555_v3 = vld [vmem:[#allocation9 + $0xe0] sm:$0xff]  ;;  %v4293_v4 = vpack.c.bf16 %v106_v58, %v103_v57 }
  0x46   :  { %v5656_v61 = vld [vmem:[#allocation4 + $0x70] sm:$0xff]  ;;  %v548_v1 = vld [vmem:[#allocation9 + $0xa8] sm:$0xff]  ;;  %v70_v5 = vld [vmem:[#allocation4 + $0x18] sm:$0xff] }
  0x47   :  { %4280 = vmatpush1.bf16.msra.mxu0 %v4279_v26  ;;  %5200 = vmatpush1.bf16.msra.mxu1 %v4279_v26  ;;  %v545_v63 = vld [vmem:[#allocation9 + $0x90] sm:$0xff]  ;;  %v552_v2 = vld [vmem:[#allocation9 + $0xc8] sm:$0xff]  ;;  %v5670_v7 = vld [vmem:[#allocation4 + $0x78] sm:$0xff] }
  0x48   :  { %4298 = vmatprep.subr.bf16.mxu0 %v5619_v27  ;;  %4282 = vmatprep.subr.bf16.mxu1 %v4281_v37  ;;  %v5668_v6 = vpack.c.bf16 %v548_v1, %v545_v63  ;;  %v5673_v8 = vpack.c.bf16 %v555_v3, %v552_v2  ;;  %v551_v9 = vld [vmem:[#allocation9 + $0xc0] sm:$0xff]  ;;  %v554_v10 = vld [vmem:[#allocation9 + $0xd8] sm:$0xff]  ;;  %v561_v12 = vld [vmem:[#allocation9 + $0x110] sm:$0xff] }
  0x49   :  { %v558_v11 = vld [vmem:[#allocation9 + $0xf8] sm:$0xff]  ;;  %v529_v13 = vld [vmem:[#allocation9 + $0x10] sm:$0xff]  ;;  %v532_v14 = vld [vmem:[#allocation9 + $0x28] sm:$0xff]  ;;  %v5681_v16 = vpack.c.bf16 %v554_v10, %v551_v9 }
  0x4a   :  { %3304 = vmatmul.mubr.msk.f32.vlgmr.msra.gmra.mrb[0].mxu0 %vm124_vm0, %v5621_v33  ;;  %3316 = vmatmul.mubr.msk.f32.vlgmr.msra.gmra.mrb[0].mxu1 %vm124_vm0, %v5625_v36  ;;  %v71_v15 = vld [vmem:[#allocation4 + $0x20] sm:$0xff]  ;;  %v5684_v17 = vpack.c.bf16 %v561_v12, %v558_v11  ;;  %v557_v18 = vld [vmem:[#allocation9 + $0xf0] sm:$0xff]  ;;  %v560_v19 = vld [vmem:[#allocation9 + $0x108] sm:$0xff]  ;;  %v5689_v23 = vpack.c.bf16 %v532_v14, %v529_v13 }
  0x4b   :  { %4300 = vmatpush1.bf16.msra.mxu0 %v5623_v35  ;;  %243 = vmatprep.mubr.f32.mxu0 %v6542_v0  ;;  %v564_v20 = vld [vmem:[#allocation9 + $0x128] sm:$0xff]  ;;  %v567_v21 = vld [vmem:[#allocation9 + $0x140] sm:$0xff]  ;;  %v538_v25 = vld [vmem:[#allocation9 + $0x58] sm:$0xff]  ;;  %v5694_v28 = vpack.c.bf16 %v560_v19, %v557_v18 }
  0x4c   :  { %4302 = vmatprep.subr.bf16.mxu0 %v5628_v40  ;;  %4284 = vmatpush3.bf16.msra.mxu1 %v4281_v37  ;;  %v535_v24 = vld [vmem:[#allocation9 + $0x40] sm:$0xff]  ;;  %v72_v26 = vld [vmem:[#allocation4 + $0x28] sm:$0xff]  ;;  %v5697_v29 = vpack.c.bf16 %v567_v21, %v564_v20  ;;  %v566_v31 = vld [vmem:[#allocation9 + $0x138] sm:$0xff] }
  0x4d   :  { %315 = vmatprep.mubr.f32.mxu1 %v6542_v0  ;;  %4286 = vmatprep.subr.bf16.mxu1 %v4285_v45  ;;  %v563_v30 = vld [vmem:[#allocation9 + $0x120] sm:$0xff]  ;;  %v570_v32 = vld [vmem:[#allocation9 + $0x158] sm:$0xff]  ;;  %v5704_v34 = vpack.c.bf16 %v538_v25, %v535_v24  ;;  %v541_v37 = vld [vmem:[#allocation9 + $0x70] sm:$0xff] }
  0x4e   :  { %3305 = vmatmul.mubr.msk.f32.gmra.mrb[2].mxu0 %vm124_vm0, %v5636_v48  ;;  %3317 = vmatmul.mubr.msk.f32.gmra.mrb[2].mxu1 %vm124_vm0, %v5640_v50  ;;  %v544_v38 = vld [vmem:[#allocation9 + $0x88] sm:$0xff]  ;;  %v73_v39 = vld [vmem:[#allocation4 + $0x30] sm:$0xff]  ;;  %v5710_v41 = vpack.c.bf16 %v566_v31, %v563_v30  ;;  %v547_v46 = vld [vmem:[#allocation9 + $0xa0] sm:$0xff] }
  0x4f   :  { %249 = vmatprep.mubr.f32.mxu0 %v6542_v0  ;;  %4304 = vmatpush1.bf16.msra.mxu0 %v5638_v49  ;;  %v569_v43 = vld [vmem:[#allocation9 + $0x150] sm:$0xff]  ;;  %v572_v44 = vld [vmem:[#allocation9 + $0x168] sm:$0xff]  ;;  %v550_v47 = vld [vmem:[#allocation9 + $0xb8] sm:$0xff] }
  0x50   :  { %4306 = vmatprep.subr.bf16.mxu0 %v5643_v51  ;;  %4288 = vmatpush3.bf16.msra.mxu1 %v4285_v45  ;;  %v5718_v45 = vpack.c.bf16 %v544_v38, %v541_v37  ;;  %v5724_v52 = vpack.c.bf16 %v572_v44, %v569_v43  ;;  %v5730_v53 = vpack.c.bf16 %v550_v47, %v547_v46  ;;  %v553_v54 = vld [vmem:[#allocation9 + $0xd0] sm:$0xff]  ;;  %v556_v55 = vld [vmem:[#allocation9 + $0xe8] sm:$0xff]  ;;  %v559_v58 = vld [vmem:[#allocation9 + $0x100] sm:$0xff] }
  0x51   :  { %321 = vmatprep.mubr.f32.mxu1 %v6542_v0  ;;  %4290 = vmatprep.subr.bf16.mxu1 %v4289_v56  ;;  %v5740_v57 = vpack.c.bf16 %v556_v55, %v553_v54  ;;  %v76_v63 = vld [vmem:[#allocation4 + $0x48] sm:$0xff]  ;;  %v77_v1 = vld [vmem:[#allocation4 + $0x50] sm:$0xff]  ;;  %v571_v10 = vld [vmem:[#allocation9 + $0x160] sm:$0xff] }
  0x52   :  { %3306 = vmatmul.mubr.msk.f32.gmra.mrb[4].mxu0 %vm124_vm0, %v5652_v59  ;;  %3318 = vmatmul.mubr.msk.f32.gmra.mrb[4].mxu1 %vm124_vm0, %v5656_v61  ;;  %v565_v3 = vld [vmem:[#allocation9 + $0x130] sm:$0xff]  ;;  %v574_v11 = vld [vmem:[#allocation9 + $0x178] sm:$0xff]  ;;  %v107_v24 = vld [vmem:[%s6539_s3] sm:$0x7] }
  0x53   :  { %255 = vmatprep.mubr.f32.mxu0 %v6542_v0  ;;  %4308 = vmatpush1.bf16.msra.mxu0 %v5654_v60  ;;  %v5767_v12 = vpack.c.bf16 %v574_v11, %v571_v10 }
  0x54   :  { %4310 = vmatprep.subr.bf16.mxu0 %v5659_v62  ;;  %4292 = vmatpush3.bf16.msra.mxu1 %v4289_v56  ;;  %v75_v56 = vld [vmem:[#allocation4 + $0x40] sm:$0xff] }
  0x55   :  { %327 = vmatprep.mubr.f32.mxu1 %v6542_v0  ;;  %4294 = vmatprep.subr.bf16.mxu1 %v4293_v4 }
  0x56   :  { %3307 = vmatmul.mubr.msk.f32.gmra.mrb[6].mxu0 %vm124_vm0, %v70_v5  ;;  %3319 = vmatmul.mubr.msk.f32.gmra.mrb[6].mxu1 %vm124_vm0, %v5670_v7 }
  0x57   :  { %261 = vmatprep.mubr.f32.mxu0 %v6542_v0  ;;  %4312 = vmatpush1.bf16.msra.mxu0 %v5668_v6 }
  0x58   :  { %4314 = vmatprep.subr.bf16.mxu0 %v5673_v8  ;;  %4296 = vmatpush3.bf16.msra.mxu1 %v4293_v4  ;;  %v568_v4 = vld [vmem:[#allocation9 + $0x148] sm:$0xff] }
  0x59   :  { %3681 = vmatprep.mubr.msk.f32.mxu1 %vm124_vm0, %v5621_v33  ;;  %4329 = vmatprep.subr.bf16.mxu1 %v6544_v22  ;;  %v573_v33 = vld [vmem:[#allocation9 + $0x170] sm:$0xff]  ;;  %v5757_v9 = vpack.c.bf16 %v568_v4, %v565_v3 }
  0x5a   :  { %3308 = vmatmul.mubr.msk.f32.gmra.mrb[8].mxu0 %vm124_vm0, %v71_v15  ;;  %v5713_v42 = vpack.c.bf16 %v573_v33, %v570_v32 }
  0x5b   :  { %267 = vmatprep.mubr.f32.mxu0 %v6542_v0  ;;  %4316 = vmatpush1.bf16.msra.mxu0 %v5681_v16 }
  0x5c   :  { %4318 = vmatprep.subr.bf16.mxu0 %v5684_v17  ;;  %3682 = vmatmul.mubr.msk.f32.vlgmr.msra.gmra.mrb[8].mxu1 %vm124_vm0, %v5636_v48  ;;  %v74_v48 = vld [vmem:[#allocation4 + $0x38] sm:$0xff] }
  0x5d   :  { %4331 = vmatpush3.bf16.msra.mxu1 %v5689_v23  ;;  %3684 = vmatprep.mubr.msk.f32.mxu1 %vm124_vm0, %v5652_v59  ;;  %v562_v59 = vld [vmem:[#allocation9 + $0x118] sm:$0xff] }
  0x5e   :  { %3309 = vmatmul.mubr.msk.f32.gmra.mrb[10].mxu0 %vm124_vm0, %v72_v26  ;;  %4332 = vmatprep.subr.bf16.mxu1 %v6544_v22  ;;  %v5748_v2 = vpack.c.bf16 %v562_v59, %v559_v58 }
  0x5f   :  { %273 = vmatprep.mubr.f32.mxu0 %v6542_v0  ;;  %4320 = vmatpush1.bf16.msra.mxu0 %v5694_v28 }
  0x60   :  { %4322 = vmatprep.subr.bf16.mxu0 %v5697_v29  ;;  %3685 = vmatmul.mubr.msk.f32.gmra.mrb[10].mxu1 %vm124_vm0, %v70_v5  ;;  %v78_v5 = vld [vmem:[#allocation4 + $0x58] sm:$0xff] }
  0x61   :  { %4334 = vmatpush3.bf16.msra.mxu1 %v5704_v34  ;;  %3687 = vmatprep.mubr.msk.f32.mxu1 %vm124_vm0, %v71_v15 }
  0x62   :  { %3310 = vmatmul.mubr.msk.f32.gmra.mrb[12].mxu0 %vm124_vm0, %v73_v39  ;;  %4335 = vmatprep.subr.bf16.mxu1 %v6544_v22 }
  0x63   :  { %279 = vmatprep.mubr.f32.mxu0 %v6542_v0  ;;  %4324 = vmatpush1.bf16.msra.mxu0 %v5710_v41 }
  0x64   :  { %4326 = vmatprep.subr.bf16.mxu0 %v5713_v42  ;;  %3688 = vmatmul.mubr.msk.f32.gmra.mrb[12].mxu1 %vm124_vm0, %v72_v26 }
  0x65   :  { %4337 = vmatpush3.bf16.msra.mxu1 %v5718_v45  ;;  %3690 = vmatprep.mubr.msk.f32.mxu1 %vm124_vm0, %v73_v39 }
  0x66   :  { %3311 = vmatmul.mubr.msk.f32.gmra.mrb[14].mxu0 %vm124_vm0, %v74_v48  ;;  %4338 = vmatprep.subr.bf16.mxu1 %v6544_v22 }
  0x67   :  { %285 = vmatprep.mubr.f32.mxu0 %v6542_v0  ;;  %4328 = vmatpush1.bf16.msra.mxu0 %v5724_v52 }
  0x68   :  { %3691 = vmatmul.mubr.msk.f32.gmra.mrb[14].mxu1 %vm124_vm0, %v74_v48  ;;  %4354 = vmatprep.subr.bf16.mxu0 %v5619_v27 }
  0x69   :  { %4340 = vmatpush3.bf16.msra.mxu1 %v5730_v53  ;;  %3693 = vmatprep.mubr.msk.f32.mxu1 %vm124_vm0, %v75_v56 }
  0x6a   :  { %3312 = vmatmul.mubr.msk.f32.gmra.mrb[16].mxu0 %vm124_vm0, %v75_v56  ;;  %4341 = vmatprep.subr.bf16.mxu1 %v6544_v22 }
  0x6b   :  { %291 = vmatprep.mubr.f32.mxu0 %v6542_v0 }
  0x6c   :  { %3694 = vmatmul.mubr.msk.f32.gmra.mrb[16].mxu1 %vm124_vm0, %v76_v63 }
  0x6d   :  { %4343 = vmatpush3.bf16.msra.mxu1 %v5740_v57  ;;  %3696 = vmatprep.mubr.msk.f32.mxu1 %vm124_vm0, %v77_v1 }
  0x6e   :  { %3313 = vmatmul.mubr.msk.f32.gmra.mrb[18].mxu0 %vm124_vm0, %v76_v63  ;;  %4344 = vmatprep.subr.bf16.mxu1 %v6544_v22 }
  0x6f   :  { %297 = vmatprep.mubr.f32.mxu0 %v6542_v0 }
  0x70   :  { %3697 = vmatmul.mubr.msk.f32.gmra.mrb[18].mxu1 %vm124_vm0, %v78_v5 }
  0x71   :  { %4346 = vmatpush3.bf16.msra.mxu1 %v5748_v2  ;;  %3699 = vmatprep.mubr.msk.f32.mxu1 %vm124_vm0, %v5625_v36 }
  0x72   :  { %3314 = vmatmul.mubr.msk.f32.gmra.mrb[20].mxu0 %vm124_vm0, %v77_v1  ;;  %4347 = vmatprep.subr.bf16.mxu1 %v6544_v22 }
  0x73   :  { %303 = vmatprep.mubr.f32.mxu0 %v6542_v0 }
  0x74   :  { %3700 = vmatmul.mubr.msk.f32.gmra.mrb[20].mxu1 %vm124_vm0, %v5640_v50 }
  0x75   :  { %4349 = vmatpush3.bf16.msra.mxu1 %v5757_v9  ;;  %3702 = vmatprep.mubr.msk.f32.mxu1 %vm124_vm0, %v5656_v61 }
  0x76   :  { %3315 = vmatmul.mubr.msk.f32.gmra.mrb[22].mxu0 %vm124_vm0, %v78_v5  ;;  %4350 = vmatprep.subr.bf16.mxu1 %v6544_v22 }
  0x77   :  { %647 = vmatprep.mubr.f32.mxu0 %v6542_v0 }
  0x78   :  { %3703 = vmatmul.mubr.msk.f32.gmra.mrb[22].mxu1 %vm124_vm0, %v5670_v7  ;;  %v109_v7 = vlaneseq }
  0x79   :  { %4352 = vmatpush3.bf16.msra.mxu1 %v5767_v12  ;;  %3737 = vmatprep.mubr.msk.f32.mxu1 %vm5540_vm1, %v6542_v0 }
  0x7a   :  { %648 = vmatmul.mubr.f32.vlgmr.msra.gmra.mrb[0].mxu0 %v6542_v0  ;;  %4385 = vmatprep.subr.bf16.mxu1 %v6544_v22  ;;  %v110_v15 = vshrl.u32 %v109_v7, 7 }
  0x7b   :  { %4356 = vmatpush1.bf16.msra.mxu0 %v5623_v35  ;;  %814 = vmatprep.mubr.f32.mxu0 %v6542_v0 }
  0x7c   :  { %3738 = vmatmul.mubr.f32.vlgmr.msra.gmra.mrb[24].mxu1 %v6542_v0  ;;  %4358 = vmatprep.subr.bf16.mxu0 %v5628_v40  ;;  %v119_v19 = vsub.s32 2, %v110_v15  ;;  %v111_v11 = vsub.s32 0, %v110_v15 }
  0x7d   :  { %4387 = vmatpush3.bf16.msra.mxu1 %v5689_v23  ;;  %3772 = vmatprep.mubr.msk.f32.mxu1 %vm5540_vm1, %v6542_v0 }
  0x7e   :  { %4388 = vmatprep.subr.bf16.mxu1 %v6544_v22  ;;  %v120_v25 = vrot.slane %v107_v24, %v119_v19 }
  0x7f   :  { %4360 = vmatpush1.bf16.msra.mxu0 %v5638_v49 }
  0x80   :  { %4362 = vmatprep.subr.bf16.mxu0 %v5643_v51 }
  0x81   :  { %4390 = vmatpush3.bf16.msra.mxu1 %v5704_v34 }
  0x82   :  { %4391 = vmatprep.subr.bf16.mxu1 %v6544_v22 }
  0x83   :  { %4364 = vmatpush1.bf16.msra.mxu0 %v5654_v60 }
  0x84   :  { %4366 = vmatprep.subr.bf16.mxu0 %v5659_v62 }
  0x85   :  { %4393 = vmatpush3.bf16.msra.mxu1 %v5718_v45 }
  0x86   :  { %4394 = vmatprep.subr.bf16.mxu1 %v6544_v22 }
  0x87   :  { %4368 = vmatpush1.bf16.msra.mxu0 %v5668_v6 }
  0x88   :  { %4370 = vmatprep.subr.bf16.mxu0 %v5673_v8 }
  0x89   :  { %4396 = vmatpush3.bf16.msra.mxu1 %v5730_v53 }
  0x8a   :  { %4397 = vmatprep.subr.bf16.mxu1 %v6544_v22 }
  0x8b   :  { %4372 = vmatpush1.bf16.msra.mxu0 %v5681_v16 }
  0x8c   :  { %4374 = vmatprep.subr.bf16.mxu0 %v5684_v17 }
  0x8d   :  { %4399 = vmatpush3.bf16.msra.mxu1 %v5740_v57 }
  0x8e   :  { %4400 = vmatprep.subr.bf16.mxu1 %v6544_v22 }
  0x8f   :  { %4376 = vmatpush1.bf16.msra.mxu0 %v5694_v28 }
  0x90   :  { %4378 = vmatprep.subr.bf16.mxu0 %v5697_v29 }
  0x91   :  { %4402 = vmatpush3.bf16.msra.mxu1 %v5748_v2 }
  0x92   :  { %4403 = vmatprep.subr.bf16.mxu1 %v6544_v22 }
  0x93   :  { %4380 = vmatpush1.bf16.msra.mxu0 %v5710_v41 }
  0x94   :  { %4382 = vmatprep.subr.bf16.mxu0 %v5713_v42 }
  0x95   :  { %4405 = vmatpush3.bf16.msra.mxu1 %v5757_v9 }
  0x96   :  { %4406 = vmatprep.subr.bf16.mxu1 %v6544_v22 }
  0x97   :  { %4384 = vmatpush1.bf16.msra.mxu0 %v5724_v52 }
  0x98   :  { %4410 = vmatprep.subr.bf16.mxu0 %v5619_v27 }
  0x99   :  { %4408 = vmatpush3.bf16.msra.mxu1 %v5767_v12 }
  0x9a   :  { %4441 = vmatprep.subr.bf16.mxu1 %v6544_v22 }
 0x11d   :  { %v5815_v36 = vpop.f32.mrb[0].mxu1 }
 0x11e   :  { %v5817_v50 = vpop.f32.mrb[1].mxu1 }
 0x121   :  { %v5819_v61 = vpop.f32.mrb[2].mxu1 }
 0x122   :  { %v5821_v13 = vpop.f32.mrb[3].mxu1 }
 0x125   :  { %v5823_v14 = vpop.f32.mrb[4].mxu1 }
 0x126   :  { %v5825_v18 = vpop.f32.mrb[5].mxu1 }
 0x127   :  { %6546 = vst [vmem:[#allocation14_spill] sm:$0xff] %v5825_v18 }
 0x129   :  { %v5827_v20 = vpop.f32.mrb[6].mxu1 }
 0x12a   :  { %6547 = vst [vmem:[#allocation15_spill] sm:$0xff] %v5827_v20  ;;  %v5829_v21 = vpop.f32.mrb[7].mxu1 }
 0x12b   :  { %6548 = vst [vmem:[#allocation16_spill] sm:$0xff] %v5829_v21 }
 0x12f   :  { %v3683_v26 = vpop.f32.mrb[8].mxu1 }
 0x130   :  { %v5834_v30 = vadd.f32 %v3683_v26, %v120_v25  ;;  %v400_v31 = vpop.f32.mrb[9].mxu1 }
 0x133   :  { %v3686_v32 = vpop.f32.mrb[10].mxu1 }
 0x134   :  { %v5836_v33 = vadd.f32 %v3686_v32, %v120_v25  ;;  %v410_v37 = vpop.f32.mrb[11].mxu1  ;;  %v115_v32 = vsub.s32 1, %v110_v15 }
 0x135   :  { %v5838_v38 = vadd.f32 %v410_v37, %v120_v25 }
 0x137   :  { %v3689_v39 = vpop.f32.mrb[12].mxu1 }
 0x138   :  { %v5840_v43 = vadd.f32 %v3689_v39, %v120_v25  ;;  %v420_v44 = vpop.f32.mrb[13].mxu1  ;;  %v5860_v39 = vrot.slane %v107_v24, %v111_v11 }
 0x139   :  { %v5842_v46 = vadd.f32 %v420_v44, %v120_v25 }
 0x13b   :  { %v3692_v47 = vpop.f32.mrb[14].mxu1 }
 0x13c   :  { %v5844_v48 = vadd.f32 %v3692_v47, %v120_v25  ;;  %v430_v54 = vpop.f32.mrb[15].mxu1 }
 0x13d   :  { %v5846_v55 = vadd.f32 %v430_v54, %v120_v25 }
 0x13f   :  { %v3695_v56 = vpop.f32.mrb[16].mxu1 }
 0x140   :  { %v5848_v58 = vadd.f32 %v3695_v56, %v120_v25  ;;  %v440_v59 = vpop.f32.mrb[17].mxu1 }
 0x141   :  { %v5850_v63 = vadd.f32 %v440_v59, %v120_v25 }
 0x143   :  { %v3698_v1 = vpop.f32.mrb[18].mxu1 }
 0x144   :  { %v5852_v3 = vadd.f32 %v3698_v1, %v120_v25  ;;  %v450_v4 = vpop.f32.mrb[19].mxu1 }
 0x145   :  { %v5854_v5 = vadd.f32 %v450_v4, %v120_v25  ;;  %v5867_v4 = vrot.slane %v107_v24, %v115_v32 }
 0x147   :  { %v3701_v10 = vpop.f32.mrb[20].mxu1 }
 0x148   :  { %v5856_v7 = vadd.f32 %v3701_v10, %v120_v25  ;;  %v460_v19 = vpop.f32.mrb[21].mxu1 }
 0x149   :  { %v5858_v26 = vadd.f32 %v460_v19, %v120_v25 }
 0x14b   :  { %v3704_v37 = vpop.f32.mrb[22].mxu1 }
 0x14c   :  { %v5862_v44 = vadd.f32 %v3704_v37, %v120_v25  ;;  %v470_v47 = vpop.f32.mrb[23].mxu1 }
 0x14d   :  { %v649_v54 = vpop.f32.mrb[0].mxu0  ;;  %v5864_v56 = vadd.f32 %v470_v47, %v120_v25  ;;  %v5873_v47 = vld [vmem:[%s6540_s4] ss:$0 sm:$0xff] }
 0x14e   :  { %6549 = vst [vmem:[#allocation17_spill] sm:$0xff] %v5862_v44  ;;  %v5201_v59 = vadd.f32 %v649_v54, %v5860_v39  ;;  %v651_v1 = vpop.f32.mrb[1].mxu0 }
 0x14f   :  { %6550 = vst [vmem:[#allocation18_spill] sm:$0xff] %v5864_v56  ;;  %v720_v10 = vpop.f32.mrb[24].mxu1  ;;  %v5202_v19 = vadd.f32 %v651_v1, %v5867_v4 }
 0x150   :  { %v3337_v0 = vmul.f32 -1.442695, %v5201_v59  ;;  %v3739_v22 = vpop.f32.mrb[25].mxu1  ;;  %v741_v24 = vadd.f32 %v5873_v47, %v720_v10  ;;  %v401_v59 = vadd.f32 %v400_v31, %v120_v25  ;;  %v6551_v25 = vmov 0.0|0.0  }
 0x151   :  { %v3338_v15 = vmul.f32 -1.442695, %v5202_v19  ;;  %v6552_v31 = vmov 0.0  }
 0x152   :  { %5276 = vpow2.f32 %v3337_v0 }
 0x153   :  { %5278 = vpow2.f32 %v3338_v15 }
 0x15c   :  { %v5277_v11 = vpop.eup %5276 }
 0x15d   :  { %v731_v37 = vadd.f32 1.0, %v5277_v11  ;;  %v5279_v44 = vpop.eup %5278 }
 0x15e   :  { %v738_v54 = vadd.f32 1.0, %v5279_v44 }
 0x15f   :  { %5280 = vrcp.f32 %v731_v37 }
 0x160   :  { %5282 = vrcp.f32 %v738_v54 }
 0x169   :  { %v5281_v32 = vpop.eup %5280 }
 0x16a   :  { %v742_v22 = vmul.f32 %v5281_v32, %v741_v24  ;;  %v5283_v0 = vpop.eup %5282 }
 0x16b   :  { %v745_v19 = vsub.f32 1.0, %v5283_v0  ;;  %v747_v37 = vmul.f32 0.0, %v5283_v0 }
 0x16c   :  { %v743_v1 = vadd.f32 %v742_v22, %v401_v59 }
 0x16e   :  { %5284 = vtanh.f32 %v743_v1 }
 0x178   :  { %v5285_v15 = vpop.eup %5284 }
 0x179   :  { %v746_v11 = vmul.f32 %v5285_v15, %v745_v19 }
 0x17b   :  { %v5876_v21 = vadd.f32 %v747_v37, %v746_v11 }
 0x17d   :  { %749 = vst [vmem:[#allocation10] sm:$0xff] %v5876_v21  ;;  %815 = vmatmul.mubr.f32.vlgmr.msra.gmra.mrb[2].mxu0 %v5876_v21  ;;  %3773 = vmatmul.mubr.f32.vlgmr.msra.gmra.mrb[26].mxu1 %v5876_v21 }
 0x17e   :  { %4412 = vmatpush1.bf16.msra.mxu0 %v5623_v35  ;;  %4443 = vmatpush3.bf16.msra.mxu1 %v5689_v23 }
 0x17f   :  { %4414 = vmatprep.subr.bf16.mxu0 %v5628_v40  ;;  %4444 = vmatprep.subr.bf16.mxu1 %v6551_v25 }
 0x180   :  { %983 = vmatprep.mubr.f32.mxu0 %v6552_v31  ;;  %3807 = vmatprep.mubr.msk.f32.mxu1 %vm5540_vm1, %v6552_v31 }
 0x182   :  { %4416 = vmatpush1.bf16.msra.mxu0 %v5638_v49  ;;  %4446 = vmatpush3.bf16.msra.mxu1 %v5704_v34 }
 0x183   :  { %4418 = vmatprep.subr.bf16.mxu0 %v5643_v51  ;;  %4447 = vmatprep.subr.bf16.mxu1 %v6551_v25 }
 0x186   :  { %4420 = vmatpush1.bf16.msra.mxu0 %v5654_v60  ;;  %4449 = vmatpush3.bf16.msra.mxu1 %v5718_v45 }
 0x187   :  { %4422 = vmatprep.subr.bf16.mxu0 %v5659_v62  ;;  %4450 = vmatprep.subr.bf16.mxu1 %v6551_v25 }
 0x18a   :  { %4424 = vmatpush1.bf16.msra.mxu0 %v5668_v6  ;;  %4452 = vmatpush3.bf16.msra.mxu1 %v5730_v53 }
 0x18b   :  { %4426 = vmatprep.subr.bf16.mxu0 %v5673_v8  ;;  %4453 = vmatprep.subr.bf16.mxu1 %v6551_v25 }
 0x18e   :  { %4428 = vmatpush1.bf16.msra.mxu0 %v5681_v16  ;;  %4455 = vmatpush3.bf16.msra.mxu1 %v5740_v57 }
 0x18f   :  { %4430 = vmatprep.subr.bf16.mxu0 %v5684_v17  ;;  %4456 = vmatprep.subr.bf16.mxu1 %v6551_v25 }
 0x192   :  { %4432 = vmatpush1.bf16.msra.mxu0 %v5694_v28  ;;  %4458 = vmatpush3.bf16.msra.mxu1 %v5748_v2 }
 0x193   :  { %4434 = vmatprep.subr.bf16.mxu0 %v5697_v29  ;;  %4459 = vmatprep.subr.bf16.mxu1 %v6551_v25 }
 0x196   :  { %4436 = vmatpush1.bf16.msra.mxu0 %v5710_v41  ;;  %4461 = vmatpush3.bf16.msra.mxu1 %v5757_v9 }
 0x197   :  { %4438 = vmatprep.subr.bf16.mxu0 %v5713_v42  ;;  %4462 = vmatprep.subr.bf16.mxu1 %v6551_v25 }
 0x19a   :  { %4440 = vmatpush1.bf16.msra.mxu0 %v5724_v52  ;;  %4464 = vmatpush3.bf16.msra.mxu1 %v5767_v12 }
 0x19b   :  { %4466 = vmatprep.subr.bf16.mxu0 %v5619_v27  ;;  %4497 = vmatprep.subr.bf16.mxu1 %v6551_v25 }
 0x250   :  { %v816_v44 = vpop.f32.mrb[2].mxu0  ;;  %v887_v10 = vpop.f32.mrb[26].mxu1 }
 0x251   :  { %v5203_v54 = vadd.f32 %v816_v44, %v5860_v39  ;;  %v818_v24 = vpop.f32.mrb[3].mxu0  ;;  %v3774_v32 = vpop.f32.mrb[27].mxu1  ;;  %v909_v37 = vadd.f32 %v5873_v47, %v887_v10 }
 0x252   :  { %v5204_v22 = vadd.f32 %v818_v24, %v5867_v4 }
 0x253   :  { %v3339_v59 = vmul.f32 -1.442695, %v5203_v54 }
 0x254   :  { %v3340_v1 = vmul.f32 -1.442695, %v5204_v22 }
 0x255   :  { %5286 = vpow2.f32 %v3339_v59 }
 0x256   :  { %5288 = vpow2.f32 %v3340_v1 }
 0x25f   :  { %v5287_v0 = vpop.eup %5286 }
 0x260   :  { %v899_v19 = vadd.f32 1.0, %v5287_v0  ;;  %v5289_v15 = vpop.eup %5288 }
 0x261   :  { %v906_v11 = vadd.f32 1.0, %v5289_v15 }
 0x262   :  { %5290 = vrcp.f32 %v899_v19 }
 0x263   :  { %5292 = vrcp.f32 %v906_v11 }
 0x26c   :  { %v5291_v20 = vpop.eup %5290 }
 0x26d   :  { %v910_v56 = vmul.f32 %v5291_v20, %v909_v37  ;;  %v5293_v32 = vpop.eup %5292 }
 0x26e   :  { %v913_v54 = vsub.f32 1.0, %v5293_v32  ;;  %v915_v59 = vmul.f32 %v5293_v32, %v5876_v21 }
 0x26f   :  { %v911_v44 = vadd.f32 %v910_v56, %v5834_v30 }
 0x271   :  { %5294 = vtanh.f32 %v911_v44 }
 0x27b   :  { %v5295_v18 = vpop.eup %5294 }
 0x27c   :  { %v914_v24 = vmul.f32 %v5295_v18, %v913_v54 }
 0x27e   :  { %v5921_v22 = vadd.f32 %v915_v59, %v914_v24 }
 0x280   :  { %918 = vst [vmem:[#allocation10 + $0x8] sm:$0xff] %v5921_v22  ;;  %984 = vmatmul.mubr.f32.vlgmr.msra.gmra.mrb[4].mxu0 %v5921_v22  ;;  %3808 = vmatmul.mubr.f32.vlgmr.msra.gmra.mrb[28].mxu1 %v5921_v22 }
 0x281   :  { %4468 = vmatpush1.bf16.msra.mxu0 %v5623_v35  ;;  %4499 = vmatpush3.bf16.msra.mxu1 %v5689_v23 }
 0x282   :  { %4470 = vmatprep.subr.bf16.mxu0 %v5628_v40  ;;  %4500 = vmatprep.subr.bf16.mxu1 %v6551_v25 }
 0x283   :  { %1152 = vmatprep.mubr.f32.mxu0 %v6552_v31  ;;  %3842 = vmatprep.mubr.msk.f32.mxu1 %vm5540_vm1, %v6552_v31 }
 0x285   :  { %4472 = vmatpush1.bf16.msra.mxu0 %v5638_v49  ;;  %4502 = vmatpush3.bf16.msra.mxu1 %v5704_v34 }
 0x286   :  { %4474 = vmatprep.subr.bf16.mxu0 %v5643_v51  ;;  %4503 = vmatprep.subr.bf16.mxu1 %v6551_v25 }
 0x289   :  { %4476 = vmatpush1.bf16.msra.mxu0 %v5654_v60  ;;  %4505 = vmatpush3.bf16.msra.mxu1 %v5718_v45 }
 0x28a   :  { %4478 = vmatprep.subr.bf16.mxu0 %v5659_v62  ;;  %4506 = vmatprep.subr.bf16.mxu1 %v6551_v25 }
 0x28d   :  { %4480 = vmatpush1.bf16.msra.mxu0 %v5668_v6  ;;  %4508 = vmatpush3.bf16.msra.mxu1 %v5730_v53 }
 0x28e   :  { %4482 = vmatprep.subr.bf16.mxu0 %v5673_v8  ;;  %4509 = vmatprep.subr.bf16.mxu1 %v6551_v25 }
 0x291   :  { %4484 = vmatpush1.bf16.msra.mxu0 %v5681_v16  ;;  %4511 = vmatpush3.bf16.msra.mxu1 %v5740_v57 }
 0x292   :  { %4486 = vmatprep.subr.bf16.mxu0 %v5684_v17  ;;  %4512 = vmatprep.subr.bf16.mxu1 %v6551_v25 }
 0x295   :  { %4488 = vmatpush1.bf16.msra.mxu0 %v5694_v28  ;;  %4514 = vmatpush3.bf16.msra.mxu1 %v5748_v2 }
 0x296   :  { %4490 = vmatprep.subr.bf16.mxu0 %v5697_v29  ;;  %4515 = vmatprep.subr.bf16.mxu1 %v6551_v25 }
 0x299   :  { %4492 = vmatpush1.bf16.msra.mxu0 %v5710_v41  ;;  %4517 = vmatpush3.bf16.msra.mxu1 %v5757_v9 }
 0x29a   :  { %4494 = vmatprep.subr.bf16.mxu0 %v5713_v42  ;;  %4518 = vmatprep.subr.bf16.mxu1 %v6551_v25 }
 0x29d   :  { %4496 = vmatpush1.bf16.msra.mxu0 %v5724_v52  ;;  %4520 = vmatpush3.bf16.msra.mxu1 %v5767_v12 }
 0x29e   :  { %4522 = vmatprep.subr.bf16.mxu0 %v5619_v27  ;;  %4553 = vmatprep.subr.bf16.mxu1 %v6551_v25 }
 0x353   :  { %v985_v18 = vpop.f32.mrb[4].mxu0  ;;  %v1056_v20 = vpop.f32.mrb[28].mxu1 }
 0x354   :  { %v5205_v21 = vadd.f32 %v985_v18, %v5860_v39  ;;  %v987_v30 = vpop.f32.mrb[5].mxu0  ;;  %v3809_v56 = vpop.f32.mrb[29].mxu1  ;;  %v1078_v44 = vadd.f32 %v5873_v47, %v1056_v20 }
 0x355   :  { %v5206_v1 = vadd.f32 %v987_v30, %v5867_v4 }
 0x356   :  { %v3341_v10 = vmul.f32 -1.442695, %v5205_v21 }
 0x357   :  { %v3342_v0 = vmul.f32 -1.442695, %v5206_v1 }
 0x358   :  { %5296 = vpow2.f32 %v3341_v10 }
 0x359   :  { %5298 = vpow2.f32 %v3342_v0 }
 0x362   :  { %v5297_v19 = vpop.eup %5296 }
 0x363   :  { %v1068_v15 = vadd.f32 1.0, %v5297_v19  ;;  %v5299_v11 = vpop.eup %5298 }
 0x364   :  { %v1075_v37 = vadd.f32 1.0, %v5299_v11 }
 0x365   :  { %5300 = vrcp.f32 %v1068_v15 }
 0x366   :  { %5302 = vrcp.f32 %v1075_v37 }
 0x36f   :  { %v5301_v32 = vpop.eup %5300 }
 0x370   :  { %v1079_v54 = vmul.f32 %v5301_v32, %v1078_v44  ;;  %v5303_v59 = vpop.eup %5302 }
 0x371   :  { %v1082_v18 = vsub.f32 1.0, %v5303_v59  ;;  %v1084_v56 = vmul.f32 %v5303_v59, %v5921_v22 }
 0x372   :  { %v1080_v24 = vadd.f32 %v1079_v54, %v5838_v38 }
 0x374   :  { %5304 = vtanh.f32 %v1080_v24 }
 0x37e   :  { %v5305_v21 = vpop.eup %5304 }
 0x37f   :  { %v1083_v30 = vmul.f32 %v5305_v21, %v1082_v18 }
 0x381   :  { %v5966_v10 = vadd.f32 %v1084_v56, %v1083_v30 }
 0x383   :  { %1087 = vst [vmem:[#allocation10 + $0x10] sm:$0xff] %v5966_v10  ;;  %1153 = vmatmul.mubr.f32.vlgmr.msra.gmra.mrb[6].mxu0 %v5966_v10  ;;  %3843 = vmatmul.mubr.f32.vlgmr.msra.gmra.mrb[30].mxu1 %v5966_v10 }
 0x384   :  { %4524 = vmatpush1.bf16.msra.mxu0 %v5623_v35  ;;  %4555 = vmatpush3.bf16.msra.mxu1 %v5689_v23 }
 0x385   :  { %4526 = vmatprep.subr.bf16.mxu0 %v5628_v40  ;;  %4556 = vmatprep.subr.bf16.mxu1 %v6551_v25 }
 0x386   :  { %1321 = vmatprep.mubr.f32.mxu0 %v6552_v31  ;;  %3877 = vmatprep.mubr.msk.f32.mxu1 %vm5540_vm1, %v6552_v31 }
 0x388   :  { %4528 = vmatpush1.bf16.msra.mxu0 %v5638_v49  ;;  %4558 = vmatpush3.bf16.msra.mxu1 %v5704_v34 }
 0x389   :  { %4530 = vmatprep.subr.bf16.mxu0 %v5643_v51  ;;  %4559 = vmatprep.subr.bf16.mxu1 %v6551_v25 }
 0x38c   :  { %4532 = vmatpush1.bf16.msra.mxu0 %v5654_v60  ;;  %4561 = vmatpush3.bf16.msra.mxu1 %v5718_v45 }
 0x38d   :  { %4534 = vmatprep.subr.bf16.mxu0 %v5659_v62  ;;  %4562 = vmatprep.subr.bf16.mxu1 %v6551_v25 }
 0x390   :  { %4536 = vmatpush1.bf16.msra.mxu0 %v5668_v6  ;;  %4564 = vmatpush3.bf16.msra.mxu1 %v5730_v53 }
 0x391   :  { %4538 = vmatprep.subr.bf16.mxu0 %v5673_v8  ;;  %4565 = vmatprep.subr.bf16.mxu1 %v6551_v25 }
 0x394   :  { %4540 = vmatpush1.bf16.msra.mxu0 %v5681_v16  ;;  %4567 = vmatpush3.bf16.msra.mxu1 %v5740_v57 }
 0x395   :  { %4542 = vmatprep.subr.bf16.mxu0 %v5684_v17  ;;  %4568 = vmatprep.subr.bf16.mxu1 %v6551_v25 }
 0x398   :  { %4544 = vmatpush1.bf16.msra.mxu0 %v5694_v28  ;;  %4570 = vmatpush3.bf16.msra.mxu1 %v5748_v2 }
 0x399   :  { %4546 = vmatprep.subr.bf16.mxu0 %v5697_v29  ;;  %4571 = vmatprep.subr.bf16.mxu1 %v6551_v25 }
 0x39c   :  { %4548 = vmatpush1.bf16.msra.mxu0 %v5710_v41  ;;  %4573 = vmatpush3.bf16.msra.mxu1 %v5757_v9 }
 0x39d   :  { %4550 = vmatprep.subr.bf16.mxu0 %v5713_v42  ;;  %4574 = vmatprep.subr.bf16.mxu1 %v6551_v25 }
 0x3a0   :  { %4552 = vmatpush1.bf16.msra.mxu0 %v5724_v52  ;;  %4576 = vmatpush3.bf16.msra.mxu1 %v5767_v12 }
 0x3a1   :  { %4578 = vmatprep.subr.bf16.mxu0 %v5619_v27  ;;  %4609 = vmatprep.subr.bf16.mxu1 %v6551_v25 }
 0x456   :  { %v1154_v38 = vpop.f32.mrb[6].mxu0  ;;  %v1225_v22 = vpop.f32.mrb[30].mxu1 }
 0x457   :  { %v5207_v20 = vadd.f32 %v1154_v38, %v5860_v39  ;;  %v1156_v1 = vpop.f32.mrb[7].mxu0  ;;  %v3844_v0 = vpop.f32.mrb[31].mxu1  ;;  %v1247_v24 = vadd.f32 %v5873_v47, %v1225_v22 }
 0x458   :  { %v5208_v15 = vadd.f32 %v1156_v1, %v5867_v4 }
 0x459   :  { %v3343_v19 = vmul.f32 -1.442695, %v5207_v20 }
 0x45a   :  { %v3344_v11 = vmul.f32 -1.442695, %v5208_v15 }
 0x45b   :  { %5306 = vpow2.f32 %v3343_v19 }
 0x45c   :  { %5308 = vpow2.f32 %v3344_v11 }
 0x465   :  { %v5307_v37 = vpop.eup %5306 }
 0x466   :  { %v1237_v44 = vadd.f32 1.0, %v5307_v37  ;;  %v5309_v32 = vpop.eup %5308 }
 0x467   :  { %v1244_v54 = vadd.f32 1.0, %v5309_v32 }
 0x468   :  { %5310 = vrcp.f32 %v1237_v44 }
 0x469   :  { %5312 = vrcp.f32 %v1244_v54 }
 0x472   :  { %v5311_v59 = vpop.eup %5310 }
 0x473   :  { %v1248_v18 = vmul.f32 %v5311_v59, %v1247_v24  ;;  %v5313_v30 = vpop.eup %5312 }
 0x474   :  { %v1251_v56 = vsub.f32 1.0, %v5313_v30  ;;  %v1253_v1 = vmul.f32 %v5313_v30, %v5966_v10 }
 0x475   :  { %v1249_v21 = vadd.f32 %v1248_v18, %v5836_v33 }
 0x477   :  { %5314 = vtanh.f32 %v1249_v21 }
 0x481   :  { %v5315_v38 = vpop.eup %5314 }
 0x482   :  { %v1252_v20 = vmul.f32 %v5315_v38, %v1251_v56 }
 0x484   :  { %v6011_v0 = vadd.f32 %v1253_v1, %v1252_v20 }
 0x486   :  { %1256 = vst [vmem:[#allocation10 + $0x18] sm:$0xff] %v6011_v0  ;;  %1322 = vmatmul.mubr.f32.vlgmr.msra.gmra.mrb[8].mxu0 %v6011_v0  ;;  %3878 = vmatmul.mubr.f32.vlgmr.msra.gmra.mrb[32].mxu1 %v6011_v0 }
 0x487   :  { %4580 = vmatpush1.bf16.msra.mxu0 %v5623_v35  ;;  %4611 = vmatpush3.bf16.msra.mxu1 %v5689_v23 }
 0x488   :  { %4582 = vmatprep.subr.bf16.mxu0 %v5628_v40  ;;  %4612 = vmatprep.subr.bf16.mxu1 %v6551_v25 }
 0x489   :  { %1490 = vmatprep.mubr.f32.mxu0 %v6552_v31  ;;  %3912 = vmatprep.mubr.msk.f32.mxu1 %vm5540_vm1, %v6552_v31 }
 0x48b   :  { %4584 = vmatpush1.bf16.msra.mxu0 %v5638_v49  ;;  %4614 = vmatpush3.bf16.msra.mxu1 %v5704_v34 }
 0x48c   :  { %4586 = vmatprep.subr.bf16.mxu0 %v5643_v51  ;;  %4615 = vmatprep.subr.bf16.mxu1 %v6551_v25 }
 0x48f   :  { %4588 = vmatpush1.bf16.msra.mxu0 %v5654_v60  ;;  %4617 = vmatpush3.bf16.msra.mxu1 %v5718_v45 }
 0x490   :  { %4590 = vmatprep.subr.bf16.mxu0 %v5659_v62  ;;  %4618 = vmatprep.subr.bf16.mxu1 %v6551_v25 }
 0x493   :  { %4592 = vmatpush1.bf16.msra.mxu0 %v5668_v6  ;;  %4620 = vmatpush3.bf16.msra.mxu1 %v5730_v53 }
 0x494   :  { %4594 = vmatprep.subr.bf16.mxu0 %v5673_v8  ;;  %4621 = vmatprep.subr.bf16.mxu1 %v6551_v25 }
 0x497   :  { %4596 = vmatpush1.bf16.msra.mxu0 %v5681_v16  ;;  %4623 = vmatpush3.bf16.msra.mxu1 %v5740_v57 }
 0x498   :  { %4598 = vmatprep.subr.bf16.mxu0 %v5684_v17  ;;  %4624 = vmatprep.subr.bf16.mxu1 %v6551_v25 }
 0x49b   :  { %4600 = vmatpush1.bf16.msra.mxu0 %v5694_v28  ;;  %4626 = vmatpush3.bf16.msra.mxu1 %v5748_v2 }
 0x49c   :  { %4602 = vmatprep.subr.bf16.mxu0 %v5697_v29  ;;  %4627 = vmatprep.subr.bf16.mxu1 %v6551_v25 }
 0x49f   :  { %4604 = vmatpush1.bf16.msra.mxu0 %v5710_v41  ;;  %4629 = vmatpush3.bf16.msra.mxu1 %v5757_v9 }
 0x4a0   :  { %4606 = vmatprep.subr.bf16.mxu0 %v5713_v42  ;;  %4630 = vmatprep.subr.bf16.mxu1 %v6551_v25 }
 0x4a3   :  { %4608 = vmatpush1.bf16.msra.mxu0 %v5724_v52  ;;  %4632 = vmatpush3.bf16.msra.mxu1 %v5767_v12 }
 0x4a4   :  { %4634 = vmatprep.subr.bf16.mxu0 %v5619_v27  ;;  %4665 = vmatprep.subr.bf16.mxu1 %v6551_v25 }
 0x559   :  { %v1323_v33 = vpop.f32.mrb[8].mxu0  ;;  %v1394_v10 = vpop.f32.mrb[32].mxu1 }
 0x55a   :  { %v5209_v22 = vadd.f32 %v1323_v33, %v5860_v39  ;;  %v1325_v19 = vpop.f32.mrb[9].mxu0  ;;  %v3879_v15 = vpop.f32.mrb[33].mxu1  ;;  %v1416_v18 = vadd.f32 %v5873_v47, %v1394_v10 }
 0x55b   :  { %v5210_v37 = vadd.f32 %v1325_v19, %v5867_v4 }
 0x55c   :  { %v3345_v11 = vmul.f32 -1.442695, %v5209_v22 }
 0x55d   :  { %v3346_v44 = vmul.f32 -1.442695, %v5210_v37 }
 0x55e   :  { %5316 = vpow2.f32 %v3345_v11 }
 0x55f   :  { %5318 = vpow2.f32 %v3346_v44 }
 0x568   :  { %v5317_v32 = vpop.eup %5316 }
 0x569   :  { %v1406_v54 = vadd.f32 1.0, %v5317_v32  ;;  %v5319_v24 = vpop.eup %5318 }
 0x56a   :  { %v1413_v59 = vadd.f32 1.0, %v5319_v24 }
 0x56b   :  { %5320 = vrcp.f32 %v1406_v54 }
 0x56c   :  { %5322 = vrcp.f32 %v1413_v59 }
 0x575   :  { %v5321_v21 = vpop.eup %5320 }
 0x576   :  { %v1417_v30 = vmul.f32 %v5321_v21, %v1416_v18  ;;  %v5323_v38 = vpop.eup %5322 }
 0x577   :  { %v1420_v20 = vsub.f32 1.0, %v5323_v38  ;;  %v1422_v22 = vmul.f32 %v5323_v38, %v6011_v0 }
 0x578   :  { %v1418_v56 = vadd.f32 %v1417_v30, %v5842_v46 }
 0x57a   :  { %5324 = vtanh.f32 %v1418_v56 }
 0x584   :  { %v5325_v1 = vpop.eup %5324 }
 0x585   :  { %v1421_v33 = vmul.f32 %v5325_v1, %v1420_v20 }
 0x587   :  { %v6056_v19 = vadd.f32 %v1422_v22, %v1421_v33 }
 0x589   :  { %1425 = vst [vmem:[#allocation10 + $0x20] sm:$0xff] %v6056_v19  ;;  %1491 = vmatmul.mubr.f32.vlgmr.msra.gmra.mrb[10].mxu0 %v6056_v19  ;;  %3913 = vmatmul.mubr.f32.vlgmr.msra.gmra.mrb[34].mxu1 %v6056_v19 }
 0x58a   :  { %4636 = vmatpush1.bf16.msra.mxu0 %v5623_v35  ;;  %4667 = vmatpush3.bf16.msra.mxu1 %v5689_v23 }
 0x58b   :  { %4638 = vmatprep.subr.bf16.mxu0 %v5628_v40  ;;  %4668 = vmatprep.subr.bf16.mxu1 %v6551_v25 }
 0x58c   :  { %1659 = vmatprep.mubr.f32.mxu0 %v6552_v31  ;;  %3947 = vmatprep.mubr.msk.f32.mxu1 %vm5540_vm1, %v6552_v31 }
 0x58e   :  { %4640 = vmatpush1.bf16.msra.mxu0 %v5638_v49  ;;  %4670 = vmatpush3.bf16.msra.mxu1 %v5704_v34 }
 0x58f   :  { %4642 = vmatprep.subr.bf16.mxu0 %v5643_v51  ;;  %4671 = vmatprep.subr.bf16.mxu1 %v6551_v25 }
 0x592   :  { %4644 = vmatpush1.bf16.msra.mxu0 %v5654_v60  ;;  %4673 = vmatpush3.bf16.msra.mxu1 %v5718_v45 }
 0x593   :  { %4646 = vmatprep.subr.bf16.mxu0 %v5659_v62  ;;  %4674 = vmatprep.subr.bf16.mxu1 %v6551_v25 }
 0x596   :  { %4648 = vmatpush1.bf16.msra.mxu0 %v5668_v6  ;;  %4676 = vmatpush3.bf16.msra.mxu1 %v5730_v53 }
 0x597   :  { %4650 = vmatprep.subr.bf16.mxu0 %v5673_v8  ;;  %4677 = vmatprep.subr.bf16.mxu1 %v6551_v25 }
 0x59a   :  { %4652 = vmatpush1.bf16.msra.mxu0 %v5681_v16  ;;  %4679 = vmatpush3.bf16.msra.mxu1 %v5740_v57 }
 0x59b   :  { %4654 = vmatprep.subr.bf16.mxu0 %v5684_v17  ;;  %4680 = vmatprep.subr.bf16.mxu1 %v6551_v25 }
 0x59e   :  { %4656 = vmatpush1.bf16.msra.mxu0 %v5694_v28  ;;  %4682 = vmatpush3.bf16.msra.mxu1 %v5748_v2 }
 0x59f   :  { %4658 = vmatprep.subr.bf16.mxu0 %v5697_v29  ;;  %4683 = vmatprep.subr.bf16.mxu1 %v6551_v25 }
 0x5a2   :  { %4660 = vmatpush1.bf16.msra.mxu0 %v5710_v41  ;;  %4685 = vmatpush3.bf16.msra.mxu1 %v5757_v9 }
 0x5a3   :  { %4662 = vmatprep.subr.bf16.mxu0 %v5713_v42  ;;  %4686 = vmatprep.subr.bf16.mxu1 %v6551_v25 }
 0x5a6   :  { %4664 = vmatpush1.bf16.msra.mxu0 %v5724_v52  ;;  %4688 = vmatpush3.bf16.msra.mxu1 %v5767_v12 }
 0x5a7   :  { %4690 = vmatprep.subr.bf16.mxu0 %v5619_v27  ;;  %4721 = vmatprep.subr.bf16.mxu1 %v6551_v25 }
 0x65c   :  { %v1492_v46 = vpop.f32.mrb[10].mxu0  ;;  %v1563_v0 = vpop.f32.mrb[34].mxu1 }
 0x65d   :  { %v5211_v10 = vadd.f32 %v1492_v46, %v5860_v39  ;;  %v1494_v15 = vpop.f32.mrb[11].mxu0  ;;  %v3914_v11 = vpop.f32.mrb[35].mxu1  ;;  %v1585_v21 = vadd.f32 %v5873_v47, %v1563_v0 }
 0x65e   :  { %v5212_v44 = vadd.f32 %v1494_v15, %v5867_v4 }
 0x65f   :  { %v3347_v37 = vmul.f32 -1.442695, %v5211_v10 }
 0x660   :  { %v3348_v32 = vmul.f32 -1.442695, %v5212_v44 }
 0x661   :  { %5326 = vpow2.f32 %v3347_v37 }
 0x662   :  { %5328 = vpow2.f32 %v3348_v32 }
 0x66b   :  { %v5327_v54 = vpop.eup %5326 }
 0x66c   :  { %v1575_v24 = vadd.f32 1.0, %v5327_v54  ;;  %v5329_v59 = vpop.eup %5328 }
 0x66d   :  { %v1582_v18 = vadd.f32 1.0, %v5329_v59 }
 0x66e   :  { %5330 = vrcp.f32 %v1575_v24 }
 0x66f   :  { %5332 = vrcp.f32 %v1582_v18 }
 0x678   :  { %v5331_v30 = vpop.eup %5330 }
 0x679   :  { %v1586_v56 = vmul.f32 %v5331_v30, %v1585_v21  ;;  %v5333_v20 = vpop.eup %5332 }
 0x67a   :  { %v1589_v1 = vsub.f32 1.0, %v5333_v20  ;;  %v1591_v46 = vmul.f32 %v5333_v20, %v6056_v19 }
 0x67b   :  { %v1587_v38 = vadd.f32 %v1586_v56, %v5840_v43 }
 0x67d   :  { %5334 = vtanh.f32 %v1587_v38 }
 0x687   :  { %v5335_v33 = vpop.eup %5334 }
 0x688   :  { %v1590_v22 = vmul.f32 %v5335_v33, %v1589_v1 }
 0x68a   :  { %v6101_v10 = vadd.f32 %v1591_v46, %v1590_v22 }
 0x68c   :  { %1594 = vst [vmem:[#allocation10 + $0x28] sm:$0xff] %v6101_v10  ;;  %1660 = vmatmul.mubr.f32.vlgmr.msra.gmra.mrb[12].mxu0 %v6101_v10  ;;  %3948 = vmatmul.mubr.f32.vlgmr.msra.gmra.mrb[36].mxu1 %v6101_v10 }
 0x68d   :  { %4692 = vmatpush1.bf16.msra.mxu0 %v5623_v35  ;;  %4723 = vmatpush3.bf16.msra.mxu1 %v5689_v23 }
 0x68e   :  { %4694 = vmatprep.subr.bf16.mxu0 %v5628_v40  ;;  %4724 = vmatprep.subr.bf16.mxu1 %v6551_v25 }
 0x68f   :  { %1828 = vmatprep.mubr.f32.mxu0 %v6552_v31  ;;  %3982 = vmatprep.mubr.msk.f32.mxu1 %vm5540_vm1, %v6552_v31 }
 0x691   :  { %4696 = vmatpush1.bf16.msra.mxu0 %v5638_v49  ;;  %4726 = vmatpush3.bf16.msra.mxu1 %v5704_v34 }
 0x692   :  { %4698 = vmatprep.subr.bf16.mxu0 %v5643_v51  ;;  %4727 = vmatprep.subr.bf16.mxu1 %v6551_v25 }
 0x695   :  { %4700 = vmatpush1.bf16.msra.mxu0 %v5654_v60  ;;  %4729 = vmatpush3.bf16.msra.mxu1 %v5718_v45 }
 0x696   :  { %4702 = vmatprep.subr.bf16.mxu0 %v5659_v62  ;;  %4730 = vmatprep.subr.bf16.mxu1 %v6551_v25 }
 0x699   :  { %4704 = vmatpush1.bf16.msra.mxu0 %v5668_v6  ;;  %4732 = vmatpush3.bf16.msra.mxu1 %v5730_v53 }
 0x69a   :  { %4706 = vmatprep.subr.bf16.mxu0 %v5673_v8  ;;  %4733 = vmatprep.subr.bf16.mxu1 %v6551_v25 }
 0x69d   :  { %4708 = vmatpush1.bf16.msra.mxu0 %v5681_v16  ;;  %4735 = vmatpush3.bf16.msra.mxu1 %v5740_v57 }
 0x69e   :  { %4710 = vmatprep.subr.bf16.mxu0 %v5684_v17  ;;  %4736 = vmatprep.subr.bf16.mxu1 %v6551_v25 }
 0x6a1   :  { %4712 = vmatpush1.bf16.msra.mxu0 %v5694_v28  ;;  %4738 = vmatpush3.bf16.msra.mxu1 %v5748_v2 }
 0x6a2   :  { %4714 = vmatprep.subr.bf16.mxu0 %v5697_v29  ;;  %4739 = vmatprep.subr.bf16.mxu1 %v6551_v25 }
 0x6a5   :  { %4716 = vmatpush1.bf16.msra.mxu0 %v5710_v41  ;;  %4741 = vmatpush3.bf16.msra.mxu1 %v5757_v9 }
 0x6a6   :  { %4718 = vmatprep.subr.bf16.mxu0 %v5713_v42  ;;  %4742 = vmatprep.subr.bf16.mxu1 %v6551_v25 }
 0x6a9   :  { %4720 = vmatpush1.bf16.msra.mxu0 %v5724_v52  ;;  %4744 = vmatpush3.bf16.msra.mxu1 %v5767_v12 }
 0x6aa   :  { %4746 = vmatprep.subr.bf16.mxu0 %v5619_v27  ;;  %4777 = vmatprep.subr.bf16.mxu1 %v6551_v25 }
 0x75f   :  { %v1661_v43 = vpop.f32.mrb[12].mxu0  ;;  %v1732_v19 = vpop.f32.mrb[36].mxu1 }
 0x760   :  { %v5213_v0 = vadd.f32 %v1661_v43, %v5860_v39  ;;  %v1663_v15 = vpop.f32.mrb[13].mxu0  ;;  %v3949_v11 = vpop.f32.mrb[37].mxu1  ;;  %v1754_v21 = vadd.f32 %v5873_v47, %v1732_v19 }
 0x761   :  { %v5214_v44 = vadd.f32 %v1663_v15, %v5867_v4 }
 0x762   :  { %v3349_v37 = vmul.f32 -1.442695, %v5213_v0 }
 0x763   :  { %v3350_v32 = vmul.f32 -1.442695, %v5214_v44 }
 0x764   :  { %5336 = vpow2.f32 %v3349_v37 }
 0x765   :  { %5338 = vpow2.f32 %v3350_v32 }
 0x76e   :  { %v5337_v54 = vpop.eup %5336 }
 0x76f   :  { %v1744_v24 = vadd.f32 1.0, %v5337_v54  ;;  %v5339_v59 = vpop.eup %5338 }
 0x770   :  { %v1751_v18 = vadd.f32 1.0, %v5339_v59 }
 0x771   :  { %5340 = vrcp.f32 %v1744_v24 }
 0x772   :  { %5342 = vrcp.f32 %v1751_v18 }
 0x77b   :  { %v5341_v30 = vpop.eup %5340 }
 0x77c   :  { %v1755_v56 = vmul.f32 %v5341_v30, %v1754_v21  ;;  %v5343_v20 = vpop.eup %5342 }
 0x77d   :  { %v1758_v1 = vsub.f32 1.0, %v5343_v20  ;;  %v1760_v46 = vmul.f32 %v5343_v20, %v6101_v10 }
 0x77e   :  { %v1756_v38 = vadd.f32 %v1755_v56, %v5846_v55 }
 0x780   :  { %5344 = vtanh.f32 %v1756_v38 }
 0x78a   :  { %v5345_v33 = vpop.eup %5344 }
 0x78b   :  { %v1759_v22 = vmul.f32 %v5345_v33, %v1758_v1 }
 0x78d   :  { %v6146_v43 = vadd.f32 %v1760_v46, %v1759_v22 }
 0x78f   :  { %1763 = vst [vmem:[#allocation10 + $0x30] sm:$0xff] %v6146_v43  ;;  %1829 = vmatmul.mubr.f32.vlgmr.msra.gmra.mrb[14].mxu0 %v6146_v43  ;;  %3983 = vmatmul.mubr.f32.vlgmr.msra.gmra.mrb[38].mxu1 %v6146_v43 }
 0x790   :  { %4748 = vmatpush1.bf16.msra.mxu0 %v5623_v35  ;;  %4779 = vmatpush3.bf16.msra.mxu1 %v5689_v23 }
 0x791   :  { %4750 = vmatprep.subr.bf16.mxu0 %v5628_v40  ;;  %4780 = vmatprep.subr.bf16.mxu1 %v6551_v25 }
 0x792   :  { %1997 = vmatprep.mubr.f32.mxu0 %v6552_v31  ;;  %4017 = vmatprep.mubr.msk.f32.mxu1 %vm5540_vm1, %v6552_v31 }
 0x794   :  { %4752 = vmatpush1.bf16.msra.mxu0 %v5638_v49  ;;  %4782 = vmatpush3.bf16.msra.mxu1 %v5704_v34 }
 0x795   :  { %4754 = vmatprep.subr.bf16.mxu0 %v5643_v51  ;;  %4783 = vmatprep.subr.bf16.mxu1 %v6551_v25 }
 0x798   :  { %4756 = vmatpush1.bf16.msra.mxu0 %v5654_v60  ;;  %4785 = vmatpush3.bf16.msra.mxu1 %v5718_v45 }
 0x799   :  { %4758 = vmatprep.subr.bf16.mxu0 %v5659_v62  ;;  %4786 = vmatprep.subr.bf16.mxu1 %v6551_v25 }
 0x79c   :  { %4760 = vmatpush1.bf16.msra.mxu0 %v5668_v6  ;;  %4788 = vmatpush3.bf16.msra.mxu1 %v5730_v53 }
 0x79d   :  { %4762 = vmatprep.subr.bf16.mxu0 %v5673_v8  ;;  %4789 = vmatprep.subr.bf16.mxu1 %v6551_v25 }
 0x7a0   :  { %4764 = vmatpush1.bf16.msra.mxu0 %v5681_v16  ;;  %4791 = vmatpush3.bf16.msra.mxu1 %v5740_v57 }
 0x7a1   :  { %4766 = vmatprep.subr.bf16.mxu0 %v5684_v17  ;;  %4792 = vmatprep.subr.bf16.mxu1 %v6551_v25 }
 0x7a4   :  { %4768 = vmatpush1.bf16.msra.mxu0 %v5694_v28  ;;  %4794 = vmatpush3.bf16.msra.mxu1 %v5748_v2 }
 0x7a5   :  { %4770 = vmatprep.subr.bf16.mxu0 %v5697_v29  ;;  %4795 = vmatprep.subr.bf16.mxu1 %v6551_v25 }
 0x7a8   :  { %4772 = vmatpush1.bf16.msra.mxu0 %v5710_v41  ;;  %4797 = vmatpush3.bf16.msra.mxu1 %v5757_v9 }
 0x7a9   :  { %4774 = vmatprep.subr.bf16.mxu0 %v5713_v42  ;;  %4798 = vmatprep.subr.bf16.mxu1 %v6551_v25 }
 0x7ac   :  { %4776 = vmatpush1.bf16.msra.mxu0 %v5724_v52  ;;  %4800 = vmatpush3.bf16.msra.mxu1 %v5767_v12 }
 0x7ad   :  { %4802 = vmatprep.subr.bf16.mxu0 %v5619_v27  ;;  %4833 = vmatprep.subr.bf16.mxu1 %v6551_v25 }
 0x862   :  { %v1830_v55 = vpop.f32.mrb[14].mxu0  ;;  %v1901_v10 = vpop.f32.mrb[38].mxu1 }
 0x863   :  { %v5215_v19 = vadd.f32 %v1830_v55, %v5860_v39  ;;  %v1832_v0 = vpop.f32.mrb[15].mxu0  ;;  %v3984_v15 = vpop.f32.mrb[39].mxu1  ;;  %v1923_v18 = vadd.f32 %v5873_v47, %v1901_v10 }
 0x864   :  { %v5216_v37 = vadd.f32 %v1832_v0, %v5867_v4 }
 0x865   :  { %v3351_v11 = vmul.f32 -1.442695, %v5215_v19 }
 0x866   :  { %v3352_v44 = vmul.f32 -1.442695, %v5216_v37 }
 0x867   :  { %5346 = vpow2.f32 %v3351_v11 }
 0x868   :  { %5348 = vpow2.f32 %v3352_v44 }
 0x871   :  { %v5347_v32 = vpop.eup %5346 }
 0x872   :  { %v1913_v54 = vadd.f32 1.0, %v5347_v32  ;;  %v5349_v24 = vpop.eup %5348 }
 0x873   :  { %v1920_v59 = vadd.f32 1.0, %v5349_v24 }
 0x874   :  { %5350 = vrcp.f32 %v1913_v54  ;;  %v6236_v54 = vld [vmem:[%s6540_s4] ss:$0 sm:$0xff]  ;;  %s5541_s4 = smov [#allocation10]  }
 0x875   :  { %5352 = vrcp.f32 %v1920_v59  ;;  %s3291_s10 = sshll.u32 %s5541_s4, 4  ;;  %s3292_s10 = int_to_ptr.vmem [resolvable:$true] %s3291_s10 }
 0x876   :  { %s5503_s11 = scalar_lea.vmem %s3292_s10, 2048  ;;  %p5508_p11 = scmp.lt.s32.totalorder %s3292_s10, %s3292_s10 }
 0x877   :  { %p5504_p10 = scmp.ne.s32.totalorder %s3292_s10, %s5503_s11  ;;  %p5509_p12 = scmp.lt.s32.totalorder %s5503_s11, %s5503_s11 }
 0x879   :  { %p5510_p13 = por %p5509_p12, %p5508_p11 }
 0x87b   :  { %p5511_p0 = pnand %p5510_p13, %p5504_p10 }
 0x87e   :  { %v5351_v21 = vpop.eup %5350 }
 0x87f   :  { %v1924_v30 = vmul.f32 %v5351_v21, %v1923_v18  ;;  %v5353_v38 = vpop.eup %5352 }
 0x880   :  { %v1927_v20 = vsub.f32 1.0, %v5353_v38  ;;  %v1929_v22 = vmul.f32 %v5353_v38, %v6146_v43 }
 0x881   :  { %v1925_v56 = vadd.f32 %v1924_v30, %v5844_v48 }
 0x883   :  { %5354 = vtanh.f32 %v1925_v56 }
 0x88d   :  { %v5355_v1 = vpop.eup %5354 }
 0x88e   :  { %v1928_v33 = vmul.f32 %v5355_v1, %v1927_v20 }
 0x890   :  { %v6191_v46 = vadd.f32 %v1929_v22, %v1928_v33 }
 0x892   :  { %1932 = vst [vmem:[#allocation10 + $0x38] sm:$0xff] %v6191_v46  ;;  %1998 = vmatmul.mubr.f32.vlgmr.msra.gmra.mrb[16].mxu0 %v6191_v46  ;;  %4018 = vmatmul.mubr.f32.vlgmr.msra.gmra.mrb[40].mxu1 %v6191_v46 }
 0x893   :  { %4804 = vmatpush1.bf16.msra.mxu0 %v5623_v35  ;;  %4835 = vmatpush3.bf16.msra.mxu1 %v5689_v23 }
 0x894   :  { %4806 = vmatprep.subr.bf16.mxu0 %v5628_v40  ;;  %4836 = vmatprep.subr.bf16.mxu1 %v6551_v25 }
 0x895   :  { %2166 = vmatprep.mubr.f32.mxu0 %v6552_v31  ;;  %4052 = vmatprep.mubr.msk.f32.mxu1 %vm5540_vm1, %v6552_v31 }
 0x897   :  { %4808 = vmatpush1.bf16.msra.mxu0 %v5638_v49  ;;  %4838 = vmatpush3.bf16.msra.mxu1 %v5704_v34 }
 0x898   :  { %4810 = vmatprep.subr.bf16.mxu0 %v5643_v51  ;;  %4839 = vmatprep.subr.bf16.mxu1 %v6551_v25 }
 0x89b   :  { %4812 = vmatpush1.bf16.msra.mxu0 %v5654_v60  ;;  %4841 = vmatpush3.bf16.msra.mxu1 %v5718_v45 }
 0x89c   :  { %4814 = vmatprep.subr.bf16.mxu0 %v5659_v62  ;;  %4842 = vmatprep.subr.bf16.mxu1 %v6551_v25 }
 0x89f   :  { %4816 = vmatpush1.bf16.msra.mxu0 %v5668_v6  ;;  %4844 = vmatpush3.bf16.msra.mxu1 %v5730_v53 }
 0x8a0   :  { %4818 = vmatprep.subr.bf16.mxu0 %v5673_v8  ;;  %4845 = vmatprep.subr.bf16.mxu1 %v6551_v25 }
 0x8a3   :  { %4820 = vmatpush1.bf16.msra.mxu0 %v5681_v16  ;;  %4847 = vmatpush3.bf16.msra.mxu1 %v5740_v57 }
 0x8a4   :  { %4822 = vmatprep.subr.bf16.mxu0 %v5684_v17  ;;  %4848 = vmatprep.subr.bf16.mxu1 %v6551_v25 }
 0x8a7   :  { %4824 = vmatpush1.bf16.msra.mxu0 %v5694_v28  ;;  %4850 = vmatpush3.bf16.msra.mxu1 %v5748_v2 }
 0x8a8   :  { %4826 = vmatprep.subr.bf16.mxu0 %v5697_v29  ;;  %4851 = vmatprep.subr.bf16.mxu1 %v6551_v25 }
 0x8ab   :  { %4828 = vmatpush1.bf16.msra.mxu0 %v5710_v41  ;;  %4853 = vmatpush3.bf16.msra.mxu1 %v5757_v9 }
 0x8ac   :  { %4830 = vmatprep.subr.bf16.mxu0 %v5713_v42  ;;  %4854 = vmatprep.subr.bf16.mxu1 %v6551_v25 }
 0x8af   :  { %4832 = vmatpush1.bf16.msra.mxu0 %v5724_v52  ;;  %4856 = vmatpush3.bf16.msra.mxu1 %v5767_v12 }
 0x8b0   :  { %4858 = vmatprep.subr.bf16.mxu0 %v5619_v27  ;;  %4889 = vmatprep.subr.bf16.mxu1 %v6551_v25 }
 0x965   :  { %v1999_v48 = vpop.f32.mrb[16].mxu0  ;;  %v2070_v47 = vpop.f32.mrb[40].mxu1 }
 0x966   :  { %v5217_v43 = vadd.f32 %v1999_v48, %v5860_v39  ;;  %v2001_v55 = vpop.f32.mrb[17].mxu0  ;;  %v4019_v10 = vpop.f32.mrb[41].mxu1  ;;  %v2092_v24 = vadd.f32 %v6236_v54, %v2070_v47 }
 0x967   :  { %v5218_v0 = vadd.f32 %v2001_v55, %v5867_v4 }
 0x968   :  { %v3353_v19 = vmul.f32 -1.442695, %v5217_v43 }
 0x969   :  { %v3354_v15 = vmul.f32 -1.442695, %v5218_v0 }
 0x96a   :  { %5356 = vpow2.f32 %v3353_v19 }
 0x96b   :  { %5358 = vpow2.f32 %v3354_v15 }
 0x974   :  { %v5357_v11 = vpop.eup %5356 }
 0x975   :  { %v2082_v37 = vadd.f32 1.0, %v5357_v11  ;;  %v5359_v44 = vpop.eup %5358 }
 0x976   :  { %v2089_v32 = vadd.f32 1.0, %v5359_v44 }
 0x977   :  { %5360 = vrcp.f32 %v2082_v37 }
 0x978   :  { %5362 = vrcp.f32 %v2089_v32 }
 0x981   :  { %v5361_v59 = vpop.eup %5360 }
 0x982   :  { %v2093_v18 = vmul.f32 %v5361_v59, %v2092_v24  ;;  %v5363_v30 = vpop.eup %5362 }
 0x983   :  { %v2096_v56 = vsub.f32 1.0, %v5363_v30  ;;  %v2098_v1 = vmul.f32 %v5363_v30, %v6191_v46 }
 0x984   :  { %v2094_v21 = vadd.f32 %v2093_v18, %v5850_v63 }
 0x986   :  { %5364 = vtanh.f32 %v2094_v21 }
 0x990   :  { %v5365_v38 = vpop.eup %5364 }
 0x991   :  { %v2097_v20 = vmul.f32 %v5365_v38, %v2096_v56 }
 0x993   :  { %v6241_v33 = vadd.f32 %v2098_v1, %v2097_v20 }
 0x995   :  { %2101 = vst [vmem:[#allocation10 + $0x40] sm:$0xff] %v6241_v33  ;;  %2167 = vmatmul.mubr.f32.vlgmr.msra.gmra.mrb[18].mxu0 %v6241_v33  ;;  %4053 = vmatmul.mubr.f32.vlgmr.msra.gmra.mrb[42].mxu1 %v6241_v33 }
 0x996   :  { %4860 = vmatpush1.bf16.msra.mxu0 %v5623_v35  ;;  %4891 = vmatpush3.bf16.msra.mxu1 %v5689_v23 }
 0x997   :  { %4862 = vmatprep.subr.bf16.mxu0 %v5628_v40  ;;  %4892 = vmatprep.subr.bf16.mxu1 %v6551_v25 }
 0x998   :  { %2335 = vmatprep.mubr.f32.mxu0 %v6552_v31  ;;  %4087 = vmatprep.mubr.msk.f32.mxu1 %vm5540_vm1, %v6552_v31 }
 0x99a   :  { %4864 = vmatpush1.bf16.msra.mxu0 %v5638_v49  ;;  %4894 = vmatpush3.bf16.msra.mxu1 %v5704_v34 }
 0x99b   :  { %4866 = vmatprep.subr.bf16.mxu0 %v5643_v51  ;;  %4895 = vmatprep.subr.bf16.mxu1 %v6551_v25 }
 0x99e   :  { %4868 = vmatpush1.bf16.msra.mxu0 %v5654_v60  ;;  %4897 = vmatpush3.bf16.msra.mxu1 %v5718_v45 }
 0x99f   :  { %4870 = vmatprep.subr.bf16.mxu0 %v5659_v62  ;;  %4898 = vmatprep.subr.bf16.mxu1 %v6551_v25 }
 0x9a2   :  { %4872 = vmatpush1.bf16.msra.mxu0 %v5668_v6  ;;  %4900 = vmatpush3.bf16.msra.mxu1 %v5730_v53 }
 0x9a3   :  { %4874 = vmatprep.subr.bf16.mxu0 %v5673_v8  ;;  %4901 = vmatprep.subr.bf16.mxu1 %v6551_v25 }
 0x9a6   :  { %4876 = vmatpush1.bf16.msra.mxu0 %v5681_v16  ;;  %4903 = vmatpush3.bf16.msra.mxu1 %v5740_v57 }
 0x9a7   :  { %4878 = vmatprep.subr.bf16.mxu0 %v5684_v17  ;;  %4904 = vmatprep.subr.bf16.mxu1 %v6551_v25 }
 0x9aa   :  { %4880 = vmatpush1.bf16.msra.mxu0 %v5694_v28  ;;  %4906 = vmatpush3.bf16.msra.mxu1 %v5748_v2 }
 0x9ab   :  { %4882 = vmatprep.subr.bf16.mxu0 %v5697_v29  ;;  %4907 = vmatprep.subr.bf16.mxu1 %v6551_v25 }
 0x9ae   :  { %4884 = vmatpush1.bf16.msra.mxu0 %v5710_v41  ;;  %4909 = vmatpush3.bf16.msra.mxu1 %v5757_v9 }
 0x9af   :  { %4886 = vmatprep.subr.bf16.mxu0 %v5713_v42  ;;  %4910 = vmatprep.subr.bf16.mxu1 %v6551_v25 }
 0x9b2   :  { %4888 = vmatpush1.bf16.msra.mxu0 %v5724_v52  ;;  %4912 = vmatpush3.bf16.msra.mxu1 %v5767_v12 }
 0x9b3   :  { %4914 = vmatprep.subr.bf16.mxu0 %v5619_v27  ;;  %4945 = vmatprep.subr.bf16.mxu1 %v6551_v25 }
 0xa68   :  { %v2168_v63 = vpop.f32.mrb[18].mxu0  ;;  %v2239_v22 = vpop.f32.mrb[42].mxu1 }
 0xa69   :  { %v5219_v46 = vadd.f32 %v2168_v63, %v5860_v39  ;;  %v2170_v48 = vpop.f32.mrb[19].mxu0  ;;  %v4054_v47 = vpop.f32.mrb[43].mxu1  ;;  %v2261_v37 = vadd.f32 %v6236_v54, %v2239_v22 }
 0xa6a   :  { %v5220_v55 = vadd.f32 %v2170_v48, %v5867_v4 }
 0xa6b   :  { %v3355_v43 = vmul.f32 -1.442695, %v5219_v46 }
 0xa6c   :  { %v3356_v10 = vmul.f32 -1.442695, %v5220_v55 }
 0xa6d   :  { %5366 = vpow2.f32 %v3355_v43 }
 0xa6e   :  { %5368 = vpow2.f32 %v3356_v10 }
 0xa77   :  { %v5367_v19 = vpop.eup %5366 }
 0xa78   :  { %v2251_v0 = vadd.f32 1.0, %v5367_v19  ;;  %v5369_v15 = vpop.eup %5368 }
 0xa79   :  { %v2258_v11 = vadd.f32 1.0, %v5369_v15 }
 0xa7a   :  { %5370 = vrcp.f32 %v2251_v0 }
 0xa7b   :  { %5372 = vrcp.f32 %v2258_v11 }
 0xa84   :  { %v5371_v44 = vpop.eup %5370 }
 0xa85   :  { %v2262_v32 = vmul.f32 %v5371_v44, %v2261_v37  ;;  %v5373_v59 = vpop.eup %5372 }
 0xa86   :  { %v2265_v18 = vsub.f32 1.0, %v5373_v59  ;;  %v2267_v56 = vmul.f32 %v5373_v59, %v6241_v33 }
 0xa87   :  { %v2263_v24 = vadd.f32 %v2262_v32, %v5848_v58 }
 0xa89   :  { %5374 = vtanh.f32 %v2263_v24 }
 0xa93   :  { %v5375_v21 = vpop.eup %5374 }
 0xa94   :  { %v2266_v30 = vmul.f32 %v5375_v21, %v2265_v18 }
 0xa96   :  { %v6286_v38 = vadd.f32 %v2267_v56, %v2266_v30 }
 0xa98   :  { %2270 = vst [vmem:[#allocation10 + $0x48] sm:$0xff] %v6286_v38  ;;  %2336 = vmatmul.mubr.f32.vlgmr.msra.gmra.mrb[20].mxu0 %v6286_v38  ;;  %4088 = vmatmul.mubr.f32.vlgmr.msra.gmra.mrb[44].mxu1 %v6286_v38 }
 0xa99   :  { %4916 = vmatpush1.bf16.msra.mxu0 %v5623_v35  ;;  %4947 = vmatpush3.bf16.msra.mxu1 %v5689_v23 }
 0xa9a   :  { %4918 = vmatprep.subr.bf16.mxu0 %v5628_v40  ;;  %4948 = vmatprep.subr.bf16.mxu1 %v6551_v25 }
 0xa9b   :  { %2504 = vmatprep.mubr.f32.mxu0 %v6552_v31  ;;  %4122 = vmatprep.mubr.msk.f32.mxu1 %vm5540_vm1, %v6552_v31 }
 0xa9d   :  { %4920 = vmatpush1.bf16.msra.mxu0 %v5638_v49  ;;  %4950 = vmatpush3.bf16.msra.mxu1 %v5704_v34 }
 0xa9e   :  { %4922 = vmatprep.subr.bf16.mxu0 %v5643_v51  ;;  %4951 = vmatprep.subr.bf16.mxu1 %v6551_v25 }
 0xaa1   :  { %4924 = vmatpush1.bf16.msra.mxu0 %v5654_v60  ;;  %4953 = vmatpush3.bf16.msra.mxu1 %v5718_v45 }
 0xaa2   :  { %4926 = vmatprep.subr.bf16.mxu0 %v5659_v62  ;;  %4954 = vmatprep.subr.bf16.mxu1 %v6551_v25 }
 0xaa5   :  { %4928 = vmatpush1.bf16.msra.mxu0 %v5668_v6  ;;  %4956 = vmatpush3.bf16.msra.mxu1 %v5730_v53 }
 0xaa6   :  { %4930 = vmatprep.subr.bf16.mxu0 %v5673_v8  ;;  %4957 = vmatprep.subr.bf16.mxu1 %v6551_v25 }
 0xaa9   :  { %4932 = vmatpush1.bf16.msra.mxu0 %v5681_v16  ;;  %4959 = vmatpush3.bf16.msra.mxu1 %v5740_v57 }
 0xaaa   :  { %4934 = vmatprep.subr.bf16.mxu0 %v5684_v17  ;;  %4960 = vmatprep.subr.bf16.mxu1 %v6551_v25 }
 0xaad   :  { %4936 = vmatpush1.bf16.msra.mxu0 %v5694_v28  ;;  %4962 = vmatpush3.bf16.msra.mxu1 %v5748_v2 }
 0xaae   :  { %4938 = vmatprep.subr.bf16.mxu0 %v5697_v29  ;;  %4963 = vmatprep.subr.bf16.mxu1 %v6551_v25 }
 0xab1   :  { %4940 = vmatpush1.bf16.msra.mxu0 %v5710_v41  ;;  %4965 = vmatpush3.bf16.msra.mxu1 %v5757_v9 }
 0xab2   :  { %4942 = vmatprep.subr.bf16.mxu0 %v5713_v42  ;;  %4966 = vmatprep.subr.bf16.mxu1 %v6551_v25 }
 0xab5   :  { %4944 = vmatpush1.bf16.msra.mxu0 %v5724_v52  ;;  %4968 = vmatpush3.bf16.msra.mxu1 %v5767_v12 }
 0xab6   :  { %4970 = vmatprep.subr.bf16.mxu0 %v5619_v27  ;;  %5001 = vmatprep.subr.bf16.mxu1 %v6551_v25 }
 0xb6b   :  { %v2337_v58 = vpop.f32.mrb[20].mxu0  ;;  %v2408_v20 = vpop.f32.mrb[44].mxu1 }
 0xb6c   :  { %v5221_v1 = vadd.f32 %v2337_v58, %v5860_v39  ;;  %v2339_v33 = vpop.f32.mrb[21].mxu0  ;;  %v4089_v63 = vpop.f32.mrb[45].mxu1  ;;  %v2430_v19 = vadd.f32 %v6236_v54, %v2408_v20 }
 0xb6d   :  { %v5222_v46 = vadd.f32 %v2339_v33, %v5867_v4 }
 0xb6e   :  { %v3357_v22 = vmul.f32 -1.442695, %v5221_v1 }
 0xb6f   :  { %v3358_v48 = vmul.f32 -1.442695, %v5222_v46 }
 0xb70   :  { %5376 = vpow2.f32 %v3357_v22 }
 0xb71   :  { %5378 = vpow2.f32 %v3358_v48 }
 0xb7a   :  { %v5377_v47 = vpop.eup %5376 }
 0xb7b   :  { %v2420_v43 = vadd.f32 1.0, %v5377_v47  ;;  %v5379_v55 = vpop.eup %5378 }
 0xb7c   :  { %v2427_v10 = vadd.f32 1.0, %v5379_v55 }
 0xb7d   :  { %5380 = vrcp.f32 %v2420_v43 }
 0xb7e   :  { %5382 = vrcp.f32 %v2427_v10 }
 0xb87   :  { %v5381_v0 = vpop.eup %5380 }
 0xb88   :  { %v2431_v15 = vmul.f32 %v5381_v0, %v2430_v19  ;;  %v5383_v37 = vpop.eup %5382 }
 0xb89   :  { %v2434_v44 = vsub.f32 1.0, %v5383_v37  ;;  %v2436_v59 = vmul.f32 %v5383_v37, %v6286_v38 }
 0xb8a   :  { %v2432_v11 = vadd.f32 %v2431_v15, %v5854_v5 }
 0xb8c   :  { %5384 = vtanh.f32 %v2432_v11 }
 0xb96   :  { %v5385_v32 = vpop.eup %5384 }
 0xb97   :  { %v2435_v24 = vmul.f32 %v5385_v32, %v2434_v44  ;;  %v314_v44 = vadd.f32 %v5817_v50, %v5867_v4 }
 0xb99   :  { %v6331_v18 = vadd.f32 %v2436_v59, %v2435_v24 }
 0xb9b   :  { %2439 = vst [vmem:[#allocation10 + $0x50] sm:$0xff] %v6331_v18  ;;  %2505 = vmatmul.mubr.f32.vlgmr.msra.gmra.mrb[22].mxu0 %v6331_v18  ;;  %4123 = vmatmul.mubr.f32.vlgmr.msra.gmra.mrb[46].mxu1 %v6331_v18 }
 0xb9c   :  { %4972 = vmatpush1.bf16.msra.mxu0 %v5623_v35  ;;  %5003 = vmatpush3.bf16.msra.mxu1 %v5689_v23 }
 0xb9d   :  { %4974 = vmatprep.subr.bf16.mxu0 %v5628_v40  ;;  %5004 = vmatprep.subr.bf16.mxu1 %v6551_v25 }
 0xb9e   :  { %2673 = vmatprep.mubr.f32.mxu0 %v6552_v31  ;;  %4157 = vmatprep.mubr.msk.f32.mxu1 %vm5540_vm1, %v6552_v31 }
 0xba0   :  { %4976 = vmatpush1.bf16.msra.mxu0 %v5638_v49  ;;  %5006 = vmatpush3.bf16.msra.mxu1 %v5704_v34 }
 0xba1   :  { %4978 = vmatprep.subr.bf16.mxu0 %v5643_v51  ;;  %5007 = vmatprep.subr.bf16.mxu1 %v6551_v25 }
 0xba4   :  { %4980 = vmatpush1.bf16.msra.mxu0 %v5654_v60  ;;  %5009 = vmatpush3.bf16.msra.mxu1 %v5718_v45 }
 0xba5   :  { %4982 = vmatprep.subr.bf16.mxu0 %v5659_v62  ;;  %5010 = vmatprep.subr.bf16.mxu1 %v6551_v25 }
 0xba8   :  { %4984 = vmatpush1.bf16.msra.mxu0 %v5668_v6  ;;  %5012 = vmatpush3.bf16.msra.mxu1 %v5730_v53 }
 0xba9   :  { %4986 = vmatprep.subr.bf16.mxu0 %v5673_v8  ;;  %5013 = vmatprep.subr.bf16.mxu1 %v6551_v25 }
 0xbac   :  { %4988 = vmatpush1.bf16.msra.mxu0 %v5681_v16  ;;  %5015 = vmatpush3.bf16.msra.mxu1 %v5740_v57 }
 0xbad   :  { %4990 = vmatprep.subr.bf16.mxu0 %v5684_v17  ;;  %5016 = vmatprep.subr.bf16.mxu1 %v6551_v25 }
 0xbb0   :  { %4992 = vmatpush1.bf16.msra.mxu0 %v5694_v28  ;;  %5018 = vmatpush3.bf16.msra.mxu1 %v5748_v2 }
 0xbb1   :  { %4994 = vmatprep.subr.bf16.mxu0 %v5697_v29  ;;  %5019 = vmatprep.subr.bf16.mxu1 %v6551_v25 }
 0xbb4   :  { %4996 = vmatpush1.bf16.msra.mxu0 %v5710_v41  ;;  %5021 = vmatpush3.bf16.msra.mxu1 %v5757_v9 }
 0xbb5   :  { %4998 = vmatprep.subr.bf16.mxu0 %v5713_v42  ;;  %5022 = vmatprep.subr.bf16.mxu1 %v6551_v25 }
 0xbb8   :  { %5000 = vmatpush1.bf16.msra.mxu0 %v5724_v52  ;;  %5024 = vmatpush3.bf16.msra.mxu1 %v5767_v12 }
 0xbb9   :  { %5026 = vmatprep.subr.bf16.mxu0 %v5619_v27  ;;  %5057 = vmatprep.subr.bf16.mxu1 %v6551_v25 }
 0xc6e   :  { %v2506_v5 = vpop.f32.mrb[22].mxu0  ;;  %v2577_v21 = vpop.f32.mrb[46].mxu1 }
 0xc6f   :  { %v5223_v30 = vadd.f32 %v2506_v5, %v5860_v39  ;;  %v2508_v56 = vpop.f32.mrb[23].mxu0  ;;  %v4124_v38 = vpop.f32.mrb[47].mxu1  ;;  %v2599_v48 = vadd.f32 %v6236_v54, %v2577_v21 }
 0xc70   :  { %v5224_v20 = vadd.f32 %v2508_v56, %v5867_v4 }
 0xc71   :  { %v3359_v58 = vmul.f32 -1.442695, %v5223_v30 }
 0xc72   :  { %v3360_v1 = vmul.f32 -1.442695, %v5224_v20 }
 0xc73   :  { %5386 = vpow2.f32 %v3359_v58 }
 0xc74   :  { %5388 = vpow2.f32 %v3360_v1 }
 0xc7d   :  { %v5387_v33 = vpop.eup %5386 }
 0xc7e   :  { %v2589_v63 = vadd.f32 1.0, %v5387_v33  ;;  %v5389_v22 = vpop.eup %5388 }
 0xc7f   :  { %v2596_v46 = vadd.f32 1.0, %v5389_v22 }
 0xc80   :  { %5390 = vrcp.f32 %v2589_v63 }
 0xc81   :  { %5392 = vrcp.f32 %v2596_v46 }
 0xc8a   :  { %v5391_v47 = vpop.eup %5390 }
 0xc8b   :  { %v2600_v43 = vmul.f32 %v5391_v47, %v2599_v48  ;;  %v5393_v10 = vpop.eup %5392 }
 0xc8c   :  { %v2603_v19 = vsub.f32 1.0, %v5393_v10  ;;  %v2605_v11 = vmul.f32 %v5393_v10, %v6331_v18  ;;  %v320_v10 = vadd.f32 %v5821_v13, %v5867_v4 }
 0xc8d   :  { %v2601_v55 = vadd.f32 %v2600_v43, %v5852_v3  ;;  %v312_v3 = vadd.f32 %v5815_v36, %v5860_v39 }
 0xc8f   :  { %5394 = vtanh.f32 %v2601_v55 }
 0xc99   :  { %v5395_v0 = vpop.eup %5394 }
 0xc9a   :  { %v2604_v15 = vmul.f32 %v5395_v0, %v2603_v19 }
 0xc9c   :  { %v6376_v37 = vadd.f32 %v2605_v11, %v2604_v15 }
 0xc9e   :  { %2608 = vst [vmem:[#allocation10 + $0x58] sm:$0xff] %v6376_v37  ;;  %2674 = vmatmul.mubr.f32.vlgmr.msra.gmra.mrb[24].mxu0 %v6376_v37  ;;  %4158 = vmatmul.mubr.f32.vlgmr.msra.gmra.mrb[48].mxu1 %v6376_v37 }
 0xc9f   :  { %5028 = vmatpush1.bf16.msra.mxu0 %v5623_v35  ;;  %5059 = vmatpush3.bf16.msra.mxu1 %v5689_v23 }
 0xca0   :  { %5030 = vmatprep.subr.bf16.mxu0 %v5628_v40  ;;  %5060 = vmatprep.subr.bf16.mxu1 %v6551_v25 }
 0xca1   :  { %2842 = vmatprep.mubr.f32.mxu0 %v6552_v31  ;;  %4192 = vmatprep.mubr.msk.f32.mxu1 %vm5540_vm1, %v6552_v31 }
 0xca3   :  { %5032 = vmatpush1.bf16.msra.mxu0 %v5638_v49  ;;  %5062 = vmatpush3.bf16.msra.mxu1 %v5704_v34 }
 0xca4   :  { %5034 = vmatprep.subr.bf16.mxu0 %v5643_v51  ;;  %5063 = vmatprep.subr.bf16.mxu1 %v6551_v25 }
 0xca7   :  { %5036 = vmatpush1.bf16.msra.mxu0 %v5654_v60  ;;  %5065 = vmatpush3.bf16.msra.mxu1 %v5718_v45 }
 0xca8   :  { %5038 = vmatprep.subr.bf16.mxu0 %v5659_v62  ;;  %5066 = vmatprep.subr.bf16.mxu1 %v6551_v25 }
 0xcab   :  { %5040 = vmatpush1.bf16.msra.mxu0 %v5668_v6  ;;  %5068 = vmatpush3.bf16.msra.mxu1 %v5730_v53 }
 0xcac   :  { %5042 = vmatprep.subr.bf16.mxu0 %v5673_v8  ;;  %5069 = vmatprep.subr.bf16.mxu1 %v6551_v25 }
 0xcaf   :  { %5044 = vmatpush1.bf16.msra.mxu0 %v5681_v16  ;;  %5071 = vmatpush3.bf16.msra.mxu1 %v5740_v57 }
 0xcb0   :  { %5046 = vmatprep.subr.bf16.mxu0 %v5684_v17  ;;  %5072 = vmatprep.subr.bf16.mxu1 %v6551_v25 }
 0xcb3   :  { %5048 = vmatpush1.bf16.msra.mxu0 %v5694_v28  ;;  %5074 = vmatpush3.bf16.msra.mxu1 %v5748_v2 }
 0xcb4   :  { %5050 = vmatprep.subr.bf16.mxu0 %v5697_v29  ;;  %5075 = vmatprep.subr.bf16.mxu1 %v6551_v25 }
 0xcb7   :  { %5052 = vmatpush1.bf16.msra.mxu0 %v5710_v41  ;;  %5077 = vmatpush3.bf16.msra.mxu1 %v5757_v9 }
 0xcb8   :  { %5054 = vmatprep.subr.bf16.mxu0 %v5713_v42  ;;  %5078 = vmatprep.subr.bf16.mxu1 %v6551_v25 }
 0xcbb   :  { %5056 = vmatpush1.bf16.msra.mxu0 %v5724_v52  ;;  %5080 = vmatpush3.bf16.msra.mxu1 %v5767_v12 }
 0xcbc   :  { %5082 = vmatprep.subr.bf16.mxu0 %v5619_v27  ;;  %5113 = vmatprep.subr.bf16.mxu1 %v6551_v25 }
 0xd71   :  { %v2675_v32 = vpop.f32.mrb[24].mxu0  ;;  %v2746_v24 = vpop.f32.mrb[48].mxu1 }
 0xd72   :  { %v2754_v59 = vadd.f32 %v2675_v32, %v312_v3  ;;  %v2677_v18 = vpop.f32.mrb[25].mxu0  ;;  %v4159_v5 = vpop.f32.mrb[49].mxu1  ;;  %v2768_v36 = vadd.f32 %v6236_v54, %v2746_v24 }
 0xd73   :  { %v2761_v21 = vadd.f32 %v2677_v18, %v314_v44 }
 0xd74   :  { %v3361_v30 = vmul.f32 -1.442695, %v2754_v59 }
 0xd75   :  { %v3362_v56 = vmul.f32 -1.442695, %v2761_v21 }
 0xd76   :  { %5396 = vpow2.f32 %v3361_v30 }
 0xd77   :  { %5398 = vpow2.f32 %v3362_v56 }
 0xd80   :  { %v5397_v38 = vpop.eup %5396 }
 0xd81   :  { %v2758_v58 = vadd.f32 1.0, %v5397_v38  ;;  %v5399_v20 = vpop.eup %5398 }
 0xd82   :  { %v2765_v1 = vadd.f32 1.0, %v5399_v20 }
 0xd83   :  { %5400 = vrcp.f32 %v2758_v58 }
 0xd84   :  { %5402 = vrcp.f32 %v2765_v1 }
 0xd8d   :  { %v5401_v33 = vpop.eup %5400 }
 0xd8e   :  { %v2769_v63 = vmul.f32 %v5401_v33, %v2768_v36  ;;  %v5403_v22 = vpop.eup %5402  ;;  %v6556_v33 = vld [vmem:[#allocation16_spill] sm:$0xff] }
 0xd8f   :  { %v2772_v46 = vsub.f32 1.0, %v5403_v22  ;;  %v2774_v43 = vmul.f32 %v5403_v22, %v6376_v37 }
 0xd90   :  { %v2770_v50 = vadd.f32 %v2769_v63, %v5858_v26  ;;  %v318_v26 = vadd.f32 %v5819_v61, %v5860_v39  ;;  %v332_v63 = vadd.f32 %v6556_v33, %v5867_v4 }
 0xd92   :  { %5404 = vtanh.f32 %v2770_v50 }
 0xd9c   :  { %v5405_v48 = vpop.eup %5404 }
 0xd9d   :  { %v2773_v47 = vmul.f32 %v5405_v48, %v2772_v46 }
 0xd9f   :  { %v6423_v55 = vadd.f32 %v2774_v43, %v2773_v47 }
 0xda1   :  { %2777 = vst [vmem:[#allocation10 + $0x60] sm:$0xff] %v6423_v55  ;;  %2843 = vmatmul.mubr.f32.vlgmr.msra.gmra.mrb[26].mxu0 %v6423_v55  ;;  %4193 = vmatmul.mubr.f32.vlgmr.msra.gmra.mrb[50].mxu1 %v6423_v55 }
 0xda2   :  { %5084 = vmatpush1.bf16.msra.mxu0 %v5623_v35  ;;  %5115 = vmatpush3.bf16.msra.mxu1 %v5689_v23 }
 0xda3   :  { %5086 = vmatprep.subr.bf16.mxu0 %v5628_v40  ;;  %5116 = vmatprep.subr.bf16.mxu1 %v6551_v25 }
 0xda4   :  { %3011 = vmatprep.mubr.f32.mxu0 %v6552_v31  ;;  %4227 = vmatprep.mubr.msk.f32.mxu1 %vm5540_vm1, %v6552_v31 }
 0xda6   :  { %5088 = vmatpush1.bf16.msra.mxu0 %v5638_v49  ;;  %5118 = vmatpush3.bf16.msra.mxu1 %v5704_v34 }
 0xda7   :  { %5090 = vmatprep.subr.bf16.mxu0 %v5643_v51  ;;  %5119 = vmatprep.subr.bf16.mxu1 %v6551_v25 }
 0xdaa   :  { %5092 = vmatpush1.bf16.msra.mxu0 %v5654_v60  ;;  %5121 = vmatpush3.bf16.msra.mxu1 %v5718_v45 }
 0xdab   :  { %5094 = vmatprep.subr.bf16.mxu0 %v5659_v62  ;;  %5122 = vmatprep.subr.bf16.mxu1 %v6551_v25 }
 0xdae   :  { %5096 = vmatpush1.bf16.msra.mxu0 %v5668_v6  ;;  %5124 = vmatpush3.bf16.msra.mxu1 %v5730_v53 }
 0xdaf   :  { %5098 = vmatprep.subr.bf16.mxu0 %v5673_v8  ;;  %5125 = vmatprep.subr.bf16.mxu1 %v6551_v25 }
 0xdb2   :  { %5100 = vmatpush1.bf16.msra.mxu0 %v5681_v16  ;;  %5127 = vmatpush3.bf16.msra.mxu1 %v5740_v57 }
 0xdb3   :  { %5102 = vmatprep.subr.bf16.mxu0 %v5684_v17  ;;  %5128 = vmatprep.subr.bf16.mxu1 %v6551_v25 }
 0xdb6   :  { %5104 = vmatpush1.bf16.msra.mxu0 %v5694_v28  ;;  %5130 = vmatpush3.bf16.msra.mxu1 %v5748_v2 }
 0xdb7   :  { %5106 = vmatprep.subr.bf16.mxu0 %v5697_v29  ;;  %5131 = vmatprep.subr.bf16.mxu1 %v6551_v25 }
 0xdba   :  { %5108 = vmatpush1.bf16.msra.mxu0 %v5710_v41  ;;  %5133 = vmatpush3.bf16.msra.mxu1 %v5757_v9 }
 0xdbb   :  { %5110 = vmatprep.subr.bf16.mxu0 %v5713_v42  ;;  %5134 = vmatprep.subr.bf16.mxu1 %v6551_v25 }
 0xdbe   :  { %5112 = vmatpush1.bf16.msra.mxu0 %v5724_v52  ;;  %5136 = vmatpush3.bf16.msra.mxu1 %v5767_v12 }
 0xdbf   :  { %5138 = vmatprep.subr.bf16.mxu0 %v5619_v27  ;;  %5169 = vmatprep.subr.bf16.mxu1 %v6551_v25 }
 0xe74   :  { %v2844_v19 = vpop.f32.mrb[26].mxu0  ;;  %v2915_v0 = vpop.f32.mrb[50].mxu1 }
 0xe75   :  { %v2923_v15 = vadd.f32 %v2844_v19, %v318_v26  ;;  %v2846_v11 = vpop.f32.mrb[27].mxu0  ;;  %v4194_v37 = vpop.f32.mrb[51].mxu1  ;;  %v2937_v61 = vadd.f32 %v6236_v54, %v2915_v0 }
 0xe76   :  { %v2930_v3 = vadd.f32 %v2846_v11, %v320_v10 }
 0xe77   :  { %v3363_v44 = vmul.f32 -1.442695, %v2923_v15 }
 0xe78   :  { %v3364_v32 = vmul.f32 -1.442695, %v2930_v3 }
 0xe79   :  { %5406 = vpow2.f32 %v3363_v44 }
 0xe7a   :  { %5408 = vpow2.f32 %v3364_v32 }
 0xe83   :  { %v5407_v24 = vpop.eup %5406 }
 0xe84   :  { %v2927_v27 = vadd.f32 1.0, %v5407_v24  ;;  %v5409_v59 = vpop.eup %5408 }
 0xe85   :  { %v2934_v18 = vadd.f32 1.0, %v5409_v59 }
 0xe86   :  { %5410 = vrcp.f32 %v2927_v27 }
 0xe87   :  { %5412 = vrcp.f32 %v2934_v18 }
 0xe90   :  { %v5411_v5 = vpop.eup %5410 }
 0xe91   :  { %v2938_v21 = vmul.f32 %v5411_v5, %v2937_v61  ;;  %v5413_v30 = vpop.eup %5412 }
 0xe92   :  { %v2941_v56 = vsub.f32 1.0, %v5413_v30  ;;  %v2943_v20 = vmul.f32 %v5413_v30, %v6423_v55 }
 0xe93   :  { %v2939_v13 = vadd.f32 %v2938_v21, %v5856_v7 }
 0xe95   :  { %5414 = vtanh.f32 %v2939_v13 }
 0xe9f   :  { %v5415_v38 = vpop.eup %5414 }
 0xea0   :  { %v2942_v58 = vmul.f32 %v5415_v38, %v2941_v56 }
 0xea2   :  { %v6470_v1 = vadd.f32 %v2943_v20, %v2942_v58 }
 0xea4   :  { %2946 = vst [vmem:[#allocation10 + $0x68] sm:$0xff] %v6470_v1  ;;  %3012 = vmatmul.mubr.f32.vlgmr.msra.gmra.mrb[28].mxu0 %v6470_v1  ;;  %4228 = vmatmul.mubr.f32.vlgmr.msra.gmra.mrb[52].mxu1 %v6470_v1 }
 0xea5   :  { %5140 = vmatpush1.bf16.msra.mxu0 %v5623_v35  ;;  %5171 = vmatpush3.bf16.msra.mxu1 %v5689_v23  ;;  %v324_v35 = vadd.f32 %v5823_v14, %v5860_v39 }
 0xea6   :  { %5142 = vmatprep.subr.bf16.mxu0 %v5628_v40  ;;  %5172 = vmatprep.subr.bf16.mxu1 %v6551_v25  ;;  %v6553_v40 = vld [vmem:[#allocation14_spill] sm:$0xff] }
 0xea7   :  { %3180 = vmatprep.mubr.f32.mxu0 %v6552_v31  ;;  %4262 = vmatprep.mubr.msk.f32.mxu1 %vm5540_vm1, %v6552_v31  ;;  %v6555_v31 = vld [vmem:[#allocation15_spill] sm:$0xff] }
 0xea8   :  { %v330_v36 = vadd.f32 %v6555_v31, %v5860_v39 }
 0xea9   :  { %5144 = vmatpush1.bf16.msra.mxu0 %v5638_v49  ;;  %5174 = vmatpush3.bf16.msra.mxu1 %v5704_v34  ;;  %v326_v49 = vadd.f32 %v6553_v40, %v5867_v4  ;;  %v6557_v4 = vld [vmem:[#allocation17_spill] sm:$0xff] }
 0xeaa   :  { %5146 = vmatprep.subr.bf16.mxu0 %v5643_v51  ;;  %5175 = vmatprep.subr.bf16.mxu1 %v6551_v25 }
 0xead   :  { %5148 = vmatpush1.bf16.msra.mxu0 %v5654_v60  ;;  %5177 = vmatpush3.bf16.msra.mxu1 %v5718_v45 }
 0xeae   :  { %5150 = vmatprep.subr.bf16.mxu0 %v5659_v62  ;;  %5178 = vmatprep.subr.bf16.mxu1 %v6551_v25 }
 0xeb1   :  { %5152 = vmatpush1.bf16.msra.mxu0 %v5668_v6  ;;  %5180 = vmatpush3.bf16.msra.mxu1 %v5730_v53  ;;  %v6554_v53 = vld [vmem:[#allocation18_spill] sm:$0xff] }
 0xeb2   :  { %5154 = vmatprep.subr.bf16.mxu0 %v5673_v8  ;;  %5181 = vmatprep.subr.bf16.mxu1 %v6551_v25 }
 0xeb5   :  { %5156 = vmatpush1.bf16.msra.mxu0 %v5681_v16  ;;  %5183 = vmatpush3.bf16.msra.mxu1 %v5740_v57 }
 0xeb6   :  { %5158 = vmatprep.subr.bf16.mxu0 %v5684_v17  ;;  %5184 = vmatprep.subr.bf16.mxu1 %v6551_v25 }
 0xeb9   :  { %5160 = vmatpush1.bf16.msra.mxu0 %v5694_v28  ;;  %5186 = vmatpush3.bf16.msra.mxu1 %v5748_v2 }
 0xeba   :  { %5162 = vmatprep.subr.bf16.mxu0 %v5697_v29  ;;  %5187 = vmatprep.subr.bf16.mxu1 %v6551_v25 }
 0xebd   :  { %5164 = vmatpush1.bf16.msra.mxu0 %v5710_v41  ;;  %5189 = vmatpush3.bf16.msra.mxu1 %v5757_v9 }
 0xebe   :  { %5166 = vmatprep.subr.bf16.mxu0 %v5713_v42  ;;  %5190 = vmatprep.subr.bf16.mxu1 %v6551_v25 }
 0xec1   :  { %5168 = vmatpush1.bf16.msra.mxu0 %v5724_v52  ;;  %5192 = vmatpush3.bf16.msra.mxu1 %v5767_v12 }
 0xf77   :  { %v3013_v51 = vpop.f32.mrb[28].mxu0  ;;  %v3084_v60 = vpop.f32.mrb[52].mxu1 }
 0xf78   :  { %v3092_v62 = vadd.f32 %v3013_v51, %v324_v35  ;;  %v3015_v6 = vpop.f32.mrb[29].mxu0  ;;  %v4229_v8 = vpop.f32.mrb[53].mxu1  ;;  %v3106_v42 = vadd.f32 %v6236_v54, %v3084_v60 }
 0xf79   :  { %v3099_v16 = vadd.f32 %v3015_v6, %v326_v49 }
 0xf7a   :  { %v3365_v17 = vmul.f32 -1.442695, %v3092_v62 }
 0xf7b   :  { %v3366_v23 = vmul.f32 -1.442695, %v3099_v16 }
 0xf7c   :  { %5416 = vpow2.f32 %v3365_v17 }
 0xf7d   :  { %5418 = vpow2.f32 %v3366_v23 }
 0xf86   :  { %v5417_v28 = vpop.eup %5416 }
 0xf87   :  { %v3096_v29 = vadd.f32 1.0, %v5417_v28  ;;  %v5419_v34 = vpop.eup %5418 }
 0xf88   :  { %v3103_v41 = vadd.f32 1.0, %v5419_v34 }
 0xf89   :  { %5420 = vrcp.f32 %v3096_v29 }
 0xf8a   :  { %5422 = vrcp.f32 %v3103_v41 }
 0xf93   :  { %v5421_v45 = vpop.eup %5420 }
 0xf94   :  { %v3107_v52 = vmul.f32 %v5421_v45, %v3106_v42  ;;  %v5423_v2 = vpop.eup %5422 }
 0xf95   :  { %v3110_v9 = vsub.f32 1.0, %v5423_v2  ;;  %v3112_v7 = vmul.f32 %v5423_v2, %v6470_v1 }
 0xf96   :  { %v3108_v57 = vadd.f32 %v3107_v52, %v6554_v53 }
 0xf98   :  { %5424 = vtanh.f32 %v3108_v57 }
 0xfa2   :  { %v5425_v12 = vpop.eup %5424 }
 0xfa3   :  { %v3111_v14 = vmul.f32 %v5425_v12, %v3110_v9 }
 0xfa5   :  { %v3113_v25 = vadd.f32 %v3112_v7, %v3111_v14 }
 0xfa7   :  { %3115 = vst [vmem:[#allocation10 + $0x70] sm:$0xff] %v3113_v25  ;;  %3181 = vmatmul.mubr.f32.vlgmr.msra.gmra.mrb[30].mxu0 %v3113_v25  ;;  %4263 = vmatmul.mubr.f32.vlgmr.msra.gmra.mrb[54].mxu1 %v3113_v25 }
0x107a   :  { %v3182_v50 = vpop.f32.mrb[30].mxu0  ;;  %v3253_v22 = vpop.f32.mrb[54].mxu1 }
0x107b   :  { %v3261_v46 = vadd.f32 %v3182_v50, %v330_v36  ;;  %v3184_v48 = vpop.f32.mrb[31].mxu0  ;;  %v4264_v47 = vpop.f32.mrb[55].mxu1  ;;  %v3275_v39 = vadd.f32 %v6236_v54, %v3253_v22 }
0x107c   :  { %v3268_v43 = vadd.f32 %v3184_v48, %v332_v63 }
0x107d   :  { %v3367_v55 = vmul.f32 -1.442695, %v3261_v46 }
0x107e   :  { %v3368_v26 = vmul.f32 -1.442695, %v3268_v43 }
0x107f   :  { %5426 = vpow2.f32 %v3367_v55 }
0x1080   :  { %5428 = vpow2.f32 %v3368_v26 }
0x1089   :  { %v5427_v10 = vpop.eup %5426 }
0x108a   :  { %v3265_v19 = vadd.f32 1.0, %v5427_v10  ;;  %v5429_v0 = vpop.eup %5428 }
0x108b   :  { %v3272_v15 = vadd.f32 1.0, %v5429_v0 }
0x108c   :  { %5430 = vrcp.f32 %v3265_v19 }
0x108d   :  { %5432 = vrcp.f32 %v3272_v15 }
0x1096   :  { %v5431_v11 = vpop.eup %5430 }
0x1097   :  { %v3276_v37 = vmul.f32 %v5431_v11, %v3275_v39  ;;  %v5433_v44 = vpop.eup %5432 }
0x1098   :  { %v3279_v32 = vsub.f32 1.0, %v5433_v44  ;;  %v3281_v59 = vmul.f32 %v5433_v44, %v3113_v25 }
0x1099   :  { %v3277_v3 = vadd.f32 %v3276_v37, %v6557_v4 }
0x109b   :  { %5434 = vtanh.f32 %v3277_v3 }
0x10a5   :  { %v5435_v24 = vpop.eup %5434 }
0x10a6   :  { %v3280_v27 = vmul.f32 %v5435_v24, %v3279_v32 }
0x10a8   :  { %v3282_v18 = vadd.f32 %v3281_v59, %v3280_v27 }
0x10aa   :  { %3284 = vst [vmem:[#allocation10 + $0x78] sm:$0xff] %v3282_v18 }
0x10ab   :  { %5514 = shalt.err (!%p5511_p0)
}
0x10ac   :  { %s5515_s14 = scalar_lea.hbm %s6541_s5, 2048 }
0x10ad   :  { %p5516_p1 = scmp.ne.s32.totalorder %s6541_s5, %s5515_s14  ;;  %p5519_p2 = scmp.lt.u32.totalorder %s5515_s14, %s6541_s5 }
0x10af   :  { %p5521_p3 = pnand %p5519_p2, %p5516_p1 }
0x10b1   :  { %5524 = shalt.err (!%p5521_p3)
}
0x10b2   :  { %3297 = dma.vmem_to_hbm [thread:$0]  %s3292_s10, 2048, %s6541_s5, [#allocation6], %s5535_s1, %s5535_s1, %s5536_s17  }
0x10b3   :  { %5529 = dma.done.wait [#allocation6], 2048  }
0x10b4   :  { %5530 = vsyncadd [#allocation6], 4294965248 }
0x10b5   :  { %3301 = vsyncpa [#allocation5], 1 }
0x10b6   :  { %3302 = vsyncpa [#allocation8], 1 }
0x10b7   :  { %3303 = vsyncpa [#allocation6], 1 }

</bundles_post_ra>
